<compile_context>
chip_gen: v7x
topology: tpu7x:2x2x1
jax: 0.10.0
libtpu: 0.0.40
codegen_flags: <defaults>
</compile_context>

<pallas_src>
import functools
import numpy as np
import jax
import jax.numpy as jnp
from jax import lax
from jax.experimental import pallas as pl
from jax.experimental.pallas import tpu as pltpu

LANE = 128
NEG = -1e30        # "minus infinity" that stays finite under repeated adds (no NaN risk)
SUB = 64           # DP working-set rows per sub-tile (dp/best/bestp = 8 vregs each)
MAX_SUBTILES = 4   # max sub-tiles per grid step (amortizes ~0.35us/step pipeline overhead)


# ----------------------------------------------------------------------------------
# Batched Viterbi decode kernel (one emission matmul + DP + backtrack).
# ----------------------------------------------------------------------------------
def _crf_viterbi_kernel(f_ref, w_ref, t_ref, out_ref, e_ref, bp_ref,
                        *, M, TB, S, Y, Y_PAD):
    # f_ref  : (TB*M, D)      f32  batch-major features; row b*M + t = char t of word b
    # w_ref  : (D, Y_PAD)     f32  emission weights (conv folded in); label cols >= Y are 0
    # t_ref  : (Y_PAD, Y_PAD) f32  transitions T[prev, cur]; entries outside [:Y,:Y] = NEG
    # out_ref: (TB, LANE)     i32  decoded labels, lane == timestep (lanes >= M are 0)
    # e_ref  : (TB*M, Y_PAD)  f32  scratch: all emissions for the block
    # bp_ref : (M, S, Y_PAD)  i32  scratch: backpointers, reused across sub-tiles

    # --- All M*TB emissions in ONE MXU matmul, off the serial Viterbi chain ----------
    e_ref[...] = jnp.dot(f_ref[...], w_ref[...], preferred_element_type=jnp.float32)

    lane = lax.broadcasted_iota(jnp.int32, (S, Y_PAD), 1)    # label index per lane
    valid = lane < Y
    col = lax.broadcasted_iota(jnp.int32, (S, LANE), 1)      # output lane == timestep

    # Transition rows loaded once per block (t-invariant); regalloc keeps what fits.
    trows = [t_ref[p:p + 1, :] for p in range(Y)]

    for g in range(TB // S):                     # static sub-tile loop: DP stays (S, 128)
        base = g * S * M

        def e_at(t, base=base):
            # Emission rows of this sub-tile's S words at char t: sublane-strided read
            # (stride M), hidden under the VALU-bound select chain below.
            return e_ref[pl.ds(base + t, S, stride=M), :]

        dp = jnp.where(valid, e_at(0), NEG)      # poison padded labels once, at t = 0

        # Forward recursion, statically unrolled (M and Y are small, static).
        for t in range(1, M):
            best = jnp.full((S, Y_PAD), NEG, jnp.float32)
            bestp = jnp.zeros((S, Y_PAD), jnp.int32)
            for p in range(Y):                   # real previous labels only
                cand = dp[:, p:p + 1] + trows[p]            # (S,1)+(1,128) -> (S,128)
                better = cand > best                         # '>' keeps lowest p on ties
                best = jnp.where(better, cand, best)
                bestp = jnp.where(better, jnp.int32(p), bestp)
            bp_ref[t] = bestp
            dp = e_at(t) + best                  # padded lanes stay ~NEG via t_pad cols

        # Final argmax over labels (first index on ties; padded lanes are ~NEG).
        rowmax = jnp.max(dp, axis=1, keepdims=True)
        y = jnp.min(jnp.where(dp == rowmax, lane, Y_PAD), axis=1, keepdims=True)

        # Backtrack over the S words at once; build a lane-dense (S, 128) path tile.
        path = jnp.where(col == (M - 1), y, 0)
        for t in range(M - 1, 0, -1):
            bpt = bp_ref[t]                                                  # (S, Y_PAD)
            y = jnp.sum(jnp.where(lane == y, bpt, 0), axis=1, keepdims=True)  # gather
            path = jnp.where(col == (t - 1), y, path)
        out_ref[g * S:(g + 1) * S, :] = path     # single unmasked lane-dense store


def _round_up(x, m):
    return ((x + m - 1) // m) * m


def _choose_blocking(B):
    """Pick (TB, S): TB words per grid step, S words per in-kernel DP sub-tile."""
    if B <= 8:
        return 8, 8                                   # single tiny sublane-dense block
    if B <= 2 * SUB:
        tb = _round_up((B + 1) // 2, 8)               # >= 2 blocks -> both v7x TCs busy
        return tb, tb
    tb = min(_round_up((B + 1) // 2, SUB), MAX_SUBTILES * SUB)
    return tb, SUB


def crf_decode_indices(x, w_eff, t_mat, *, num_labels):
    """x: (B, M, D) f32 raw flattened inputs (conv already folded into w_eff),
    w_eff: (D, Y) f32, t_mat: (Y, Y) f32  ->  decoded label indices (B, M) int32."""
    B, M, D = x.shape
    Y = int(num_labels)
    assert Y <= LANE and M <= LANE

    # Label axis padded to 128 lanes. Transitions INTO padded labels are NEG so padded
    # lanes can never be decoded (no per-timestep masking needed inside the kernel).
    w_pad = jnp.zeros((D, LANE), jnp.float32).at[:, :Y].set(w_eff.astype(jnp.float32))
    t_pad = jnp.full((LANE, LANE), NEG, jnp.float32).at[:Y, :Y].set(
        t_mat.astype(jnp.float32))

    TB, S = _choose_blocking(B)
    Bp = _round_up(B, TB)
    xb = x if Bp == B else jnp.pad(x, ((0, Bp - B), (0, 0), (0, 0)))
    x2 = xb.reshape(Bp * M, D)                   # contiguous reshape: no HBM transpose

    out = pl.pallas_call(
        functools.partial(_crf_viterbi_kernel, M=M, TB=TB, S=S, Y=Y, Y_PAD=LANE),
        out_shape=jax.ShapeDtypeStruct((Bp, LANE), jnp.int32),
        grid=(Bp // TB,),
        in_specs=[
            pl.BlockSpec((TB * M, D), lambda b: (b, 0)),
            pl.BlockSpec((D, LANE), lambda b: (0, 0)),
            pl.BlockSpec((LANE, LANE), lambda b: (0, 0)),
        ],
        out_specs=pl.BlockSpec((TB, LANE), lambda b: (b, 0)),
        scratch_shapes=[pltpu.VMEM((TB * M, LANE), jnp.float32),   # emissions
                        pltpu.VMEM((M, S, LANE), jnp.int32)],      # backpointers
        compiler_params=pltpu.CompilerParams(
            dimension_semantics=("parallel",)),   # independent word blocks (v7x 2 TCs)
    )(x2, w_pad, t_pad)
    return out[:B, :M]


# ----------------------------------------------------------------------------------
# Host-side fold of the conv into a (H*W, h_out*w_out) matrix (conv is linear, no bias).
# ----------------------------------------------------------------------------------
def _conv_as_matrix(w_conv, H, W, pad, stride=1):
    K = int(w_conv.shape[0])
    h_out = 1 + (H + 2 * pad - K) // stride
    w_out = 1 + (W + 2 * pad - K) // stride
    C = np.zeros((H * W, h_out * w_out), np.float64)
    for i in range(h_out):
        for j in range(w_out):
            o = i * w_out + j
            for di in range(K):
                for dj in range(K):
                    ii, jj = i * stride + di - pad, j * stride + dj - pad
                    if 0 <= ii < H and 0 <= jj < W:
                        C[ii * W + jj, o] += float(w_conv[di, dj])
    return C


# ----------------------------------------------------------------------------------
# Module-level wrapper matching CRF.forward
# ----------------------------------------------------------------------------------
class CRFPallas:
    def __init__(self, input_dim=(16, 8), kernel_size=5, padding=2, stride=1,
                 num_labels=26, C=1000, *, key):
        self.input_dim = input_dim
        self.k, self.pad, self.stride = kernel_size, padding, stride
        self.num_labels = num_labels
        self.C = C
        h_out = 1 + (input_dim[0] + 2 * padding - (kernel_size - 1) - 1) // stride
        w_out = 1 + (input_dim[1] + 2 * padding - (kernel_size - 1) - 1) // stride
        self.embed_dim = h_out * w_out
        # Deterministic synthetic parameters (module zero-inits; zeros would make the
        # decode degenerate, so use small deterministic random values instead).
        k1, k2, k3 = jax.random.split(key, 3)
        self.w_conv = 0.2 * jax.random.normal(k1, (kernel_size, kernel_size), jnp.float32)
        self.W = 0.1 * jax.random.normal(k2, (self.embed_dim, num_labels), jnp.float32)
        self.T = 0.1 * jax.random.normal(k3, (num_labels, num_labels), jnp.float32)
        # Fold conv into the emission weights:  conv_flat(x) = x_flat @ C_conv
        #   => features @ W = x_flat @ (C_conv @ W)
        c_conv = _conv_as_matrix(np.asarray(self.w_conv, np.float64),
                                 input_dim[0], input_dim[1], padding, stride)
        self.W_eff = jnp.asarray(c_conv @ np.asarray(self.W, np.float64), jnp.float32)

    def forward(self, X):
        """X: (B, max_chars, H*W) f32 -> one-hot predictions (B, max_chars, num_labels)."""
        labels = crf_decode_indices(X, self.W_eff, self.T, num_labels=self.num_labels)
        return jax.nn.one_hot(labels, self.num_labels, dtype=jnp.float32)


# ----------------------------------------------------------------------------------
# Pure numpy reference (float64, explicit conv) + tie-tolerant path-score check.
# ----------------------------------------------------------------------------------
def _reference_decode(x, w_conv, W, T, input_dim=(16, 8), pad=2):
    x = np.asarray(x, np.float64); w_conv = np.asarray(w_conv, np.float64)
    W = np.asarray(W, np.float64); T = np.asarray(T, np.float64)
    B, M, D = x.shape
    H, Wd = input_dim
    K = w_conv.shape[0]
    imgs = x.reshape(B * M, H, Wd)
    xp = np.pad(imgs, ((0, 0), (pad, pad), (pad, pad)))
    out = np.zeros_like(imgs)
    for di in range(K):
        for dj in range(K):
            out += w_conv[di, dj] * xp[:, di:di + H, dj:dj + Wd]
    pot = out.reshape(B, M, D) @ W                      # (B, M, Y)
    Y = W.shape[1]
    labels = np.zeros((B, M), np.int64)
    for b in range(B):
        dp = pot[b, 0].copy()
        bp = np.zeros((M, Y), np.int64)
        for t in range(1, M):
            sc = dp[:, None] + T
            bp[t] = sc.argmax(axis=0)
            dp = pot[b, t] + sc.max(axis=0)
        y = int(dp.argmax()); path = [y]
        for t in range(M - 1, 0, -1):
            y = int(bp[t, y]); path.append(y)
        labels[b] = path[::-1]
    return labels, pot


def _path_score(pot_b, T, lab_b):
    s = pot_b[0, lab_b[0]]
    for t in range(1, len(lab_b)):
        s += T[lab_b[t - 1], lab_b[t]] + pot_b[t, lab_b[t]]
    return s


if __name__ == "__main__":
    B, M = 2, 8
    H, Wd = 16, 8
    num_labels = 26

    key = jax.random.PRNGKey(0)
    k_x, k_params = jax.random.split(key)
    x = jax.random.normal(k_x, (B, M, H * Wd), dtype=jnp.float32)

    model = CRFPallas(input_dim=(H, Wd), kernel_size=5, padding=2, stride=1,
                      num_labels=num_labels, C=1000, key=k_params)

    preds = model.forward(x)
    preds = jax.block_until_ready(preds)

    assert preds.shape == (B, M, num_labels) and preds.dtype == jnp.float32
    preds_np = np.asarray(preds)
    assert np.all(preds_np.sum(-1) == 1.0)              # valid one-hot rows

    ref_labels, pot64 = _reference_decode(np.asarray(x), np.asarray(model.w_conv),
                                          np.asarray(model.W), np.asarray(model.T),
                                          input_dim=(H, Wd), pad=2)
    k_labels = np.argmax(preds_np, axis=-1)
    if not np.array_equal(k_labels, ref_labels):
        # Tie-tolerant check: decoded path must achieve the optimal Viterbi score
        # under the float64 reference potentials/transitions.
        T64 = np.asarray(model.T, np.float64)
        for b in range(B):
            s_k = _path_score(pot64[b], T64, k_labels[b])
            s_r = _path_score(pot64[b], T64, ref_labels[b])
            np.testing.assert_allclose(s_k, s_r, rtol=1e-5, atol=1e-5)
    print("KERNEL_OK")
</pallas_src>

<mosaic_0001>
module attributes {stable_mosaic.version = 11 : i64} {
  func.func @_crf_viterbi_kernel(%arg0: i32, %arg1: memref<64x128xf32, #tpu.memory_space<vmem>>, %arg2: memref<128x128xf32, #tpu.memory_space<vmem>>, %arg3: memref<128x128xf32, #tpu.memory_space<vmem>>, %arg4: memref<8x128xi32, #tpu.memory_space<vmem>>, %arg5: memref<64x128xf32, #tpu.memory_space<vmem>>, %arg6: memref<8x8x128xi32, #tpu.memory_space<vmem>>) attributes {dimension_semantics = [#tpu.dimension_semantics<parallel>], iteration_bounds = array<i64: 1>, scalar_prefetch = 0 : i64, scratch_operands = 2 : i64, tpu.core_type = #tpu.core_type<tc>, window_params = [{transform_indices = @transform_0, window_bounds = array<i64: 64, 128>}, {pipeline_mode = #tpu.pipeline_mode<synchronous>, transform_indices = @transform_1, window_bounds = array<i64: 128, 128>}, {pipeline_mode = #tpu.pipeline_mode<synchronous>, transform_indices = @transform_2, window_bounds = array<i64: 128, 128>}, {transform_indices = @transform_3, window_bounds = array<i64: 8, 128>}]} {
    %c0 = arith.constant 0 : index
    %c0_0 = arith.constant 0 : index
    %0 = vector.load %arg1[%c0, %c0_0] : memref<64x128xf32, #tpu.memory_space<vmem>>, vector<64x128xf32>
    %c0_1 = arith.constant 0 : index
    %c0_2 = arith.constant 0 : index
    %1 = vector.load %arg2[%c0_1, %c0_2] : memref<128x128xf32, #tpu.memory_space<vmem>>, vector<128x128xf32>
    %cst = arith.constant dense<0.000000e+00> : vector<64x128xf32>
    %2 = tpu.matmul %0, %1, %cst {dimension_numbers = #tpu.dot_dimension_numbers<[1], [0], [0], [1], [0, 0, 1, 1], [], []>} : vector<64x128xf32>, vector<128x128xf32>, vector<64x128xf32> -> vector<64x128xf32>
    %c0_3 = arith.constant 0 : index
    %c0_4 = arith.constant 0 : index
    %3 = vector.load %arg5[%c0_3, %c0_4] : memref<64x128xf32, #tpu.memory_space<vmem>>, vector<64x128xf32>
    tpu.vector_store %arg5[%c0_3, %c0_4], %2 {strides = array<i32>} : memref<64x128xf32, #tpu.memory_space<vmem>>, vector<64x128xf32>,
    %4 = tpu.iota {dimensions = array<i32: 1>} : vector<8x128xi32>
    %c26_i32 = arith.constant 26 : i32
    %5 = vector.broadcast %c26_i32 : i32 to vector<8x128xi32>
    %6 = arith.cmpi slt, %4, %5 : vector<8x128xi32>
    %7 = tpu.iota {dimensions = array<i32: 1>} : vector<8x128xi32>
    %c0_5 = arith.constant 0 : index
    %c0_6 = arith.constant 0 : index
    %8 = vector.load %arg3[%c0_5, %c0_6] : memref<128x128xf32, #tpu.memory_space<vmem>>, vector<1x128xf32>
    %c1 = arith.constant 1 : index
    %c0_7 = arith.constant 0 : index
    %9 = vector.load %arg3[%c1, %c0_7] : memref<128x128xf32, #tpu.memory_space<vmem>>, vector<1x128xf32>
    %c2 = arith.constant 2 : index
    %c0_8 = arith.constant 0 : index
    %10 = vector.load %arg3[%c2, %c0_8] : memref<128x128xf32, #tpu.memory_space<vmem>>, vector<1x128xf32>
    %c3 = arith.constant 3 : index
    %c0_9 = arith.constant 0 : index
    %11 = vector.load %arg3[%c3, %c0_9] : memref<128x128xf32, #tpu.memory_space<vmem>>, vector<1x128xf32>
    %c4 = arith.constant 4 : index
    %c0_10 = arith.constant 0 : index
    %12 = vector.load %arg3[%c4, %c0_10] : memref<128x128xf32, #tpu.memory_space<vmem>>, vector<1x128xf32>
    %c5 = arith.constant 5 : index
    %c0_11 = arith.constant 0 : index
    %13 = vector.load %arg3[%c5, %c0_11] : memref<128x128xf32, #tpu.memory_space<vmem>>, vector<1x128xf32>
    %c6 = arith.constant 6 : index
    %c0_12 = arith.constant 0 : index
    %14 = vector.load %arg3[%c6, %c0_12] : memref<128x128xf32, #tpu.memory_space<vmem>>, vector<1x128xf32>
    %c7 = arith.constant 7 : index
    %c0_13 = arith.constant 0 : index
    %15 = vector.load %arg3[%c7, %c0_13] : memref<128x128xf32, #tpu.memory_space<vmem>>, vector<1x128xf32>
    %c8 = arith.constant 8 : index
    %c0_14 = arith.constant 0 : index
    %16 = vector.load %arg3[%c8, %c0_14] : memref<128x128xf32, #tpu.memory_space<vmem>>, vector<1x128xf32>
    %c9 = arith.constant 9 : index
    %c0_15 = arith.constant 0 : index
    %17 = vector.load %arg3[%c9, %c0_15] : memref<128x128xf32, #tpu.memory_space<vmem>>, vector<1x128xf32>
    %c10 = arith.constant 10 : index
    %c0_16 = arith.constant 0 : index
    %18 = vector.load %arg3[%c10, %c0_16] : memref<128x128xf32, #tpu.memory_space<vmem>>, vector<1x128xf32>
    %c11 = arith.constant 11 : index
    %c0_17 = arith.constant 0 : index
    %19 = vector.load %arg3[%c11, %c0_17] : memref<128x128xf32, #tpu.memory_space<vmem>>, vector<1x128xf32>
    %c12 = arith.constant 12 : index
    %c0_18 = arith.constant 0 : index
    %20 = vector.load %arg3[%c12, %c0_18] : memref<128x128xf32, #tpu.memory_space<vmem>>, vector<1x128xf32>
    %c13 = arith.constant 13 : index
    %c0_19 = arith.constant 0 : index
    %21 = vector.load %arg3[%c13, %c0_19] : memref<128x128xf32, #tpu.memory_space<vmem>>, vector<1x128xf32>
    %c14 = arith.constant 14 : index
    %c0_20 = arith.constant 0 : index
    %22 = vector.load %arg3[%c14, %c0_20] : memref<128x128xf32, #tpu.memory_space<vmem>>, vector<1x128xf32>
    %c15 = arith.constant 15 : index
    %c0_21 = arith.constant 0 : index
    %23 = vector.load %arg3[%c15, %c0_21] : memref<128x128xf32, #tpu.memory_space<vmem>>, vector<1x128xf32>
    %c16 = arith.constant 16 : index
    %c0_22 = arith.constant 0 : index
    %24 = vector.load %arg3[%c16, %c0_22] : memref<128x128xf32, #tpu.memory_space<vmem>>, vector<1x128xf32>
    %c17 = arith.constant 17 : index
    %c0_23 = arith.constant 0 : index
    %25 = vector.load %arg3[%c17, %c0_23] : memref<128x128xf32, #tpu.memory_space<vmem>>, vector<1x128xf32>
    %c18 = arith.constant 18 : index
    %c0_24 = arith.constant 0 : index
    %26 = vector.load %arg3[%c18, %c0_24] : memref<128x128xf32, #tpu.memory_space<vmem>>, vector<1x128xf32>
    %c19 = arith.constant 19 : index
    %c0_25 = arith.constant 0 : index
    %27 = vector.load %arg3[%c19, %c0_25] : memref<128x128xf32, #tpu.memory_space<vmem>>, vector<1x128xf32>
    %c20 = arith.constant 20 : index
    %c0_26 = arith.constant 0 : index
    %28 = vector.load %arg3[%c20, %c0_26] : memref<128x128xf32, #tpu.memory_space<vmem>>, vector<1x128xf32>
    %c21 = arith.constant 21 : index
    %c0_27 = arith.constant 0 : index
    %29 = vector.load %arg3[%c21, %c0_27] : memref<128x128xf32, #tpu.memory_space<vmem>>, vector<1x128xf32>
    %c22 = arith.constant 22 : index
    %c0_28 = arith.constant 0 : index
    %30 = vector.load %arg3[%c22, %c0_28] : memref<128x128xf32, #tpu.memory_space<vmem>>, vector<1x128xf32>
    %c23 = arith.constant 23 : index
    %c0_29 = arith.constant 0 : index
    %31 = vector.load %arg3[%c23, %c0_29] : memref<128x128xf32, #tpu.memory_space<vmem>>, vector<1x128xf32>
    %c24 = arith.constant 24 : index
    %c0_30 = arith.constant 0 : index
    %32 = vector.load %arg3[%c24, %c0_30] : memref<128x128xf32, #tpu.memory_space<vmem>>, vector<1x128xf32>
    %c25 = arith.constant 25 : index
    %c0_31 = arith.constant 0 : index
    %33 = vector.load %arg3[%c25, %c0_31] : memref<128x128xf32, #tpu.memory_space<vmem>>, vector<1x128xf32>
    %c0_32 = arith.constant 0 : index
    %c0_33 = arith.constant 0 : index
    %34 = tpu.strided_load %arg5[%c0_32, %c0_33] {strides = array<i32: 8, 1>} : memref<64x128xf32, #tpu.memory_space<vmem>>, vector<8x128xf32>
    %cst_34 = arith.constant -1.000000e+30 : f32
    %35 = vector.broadcast %cst_34 : f32 to vector<8x128xf32>
    %36 = arith.select %6, %34, %35 : vector<8x128xi1>, vector<8x128xf32>
    %cst_35 = arith.constant -1.000000e+30 : f32
    %37 = vector.broadcast %cst_35 : f32 to vector<8x128xf32>
    %c0_i32 = arith.constant 0 : i32
    %38 = vector.broadcast %c0_i32 : i32 to vector<8x128xi32>
    %39 = vector.extract_strided_slice %36 {offsets = [0, 0], sizes = [8, 1], strides = [1, 1]} : vector<8x128xf32> to vector<8x1xf32>
    %40 = vector.broadcast %39 : vector<8x1xf32> to vector<8x128xf32>
    %41 = vector.broadcast %8 : vector<1x128xf32> to vector<8x128xf32>
    %42 = arith.addf %40, %41 : vector<8x128xf32>
    %43 = arith.cmpf ogt, %42, %37 : vector<8x128xf32>
    %44 = arith.select %43, %42, %37 : vector<8x128xi1>, vector<8x128xf32>
    %c0_i32_36 = arith.constant 0 : i32
    %45 = vector.broadcast %c0_i32_36 : i32 to vector<8x128xi32>
    %46 = arith.select %43, %45, %38 : vector<8x128xi1>, vector<8x128xi32>
    %47 = vector.extract_strided_slice %36 {offsets = [0, 1], sizes = [8, 1], strides = [1, 1]} : vector<8x128xf32> to vector<8x1xf32>
    %48 = vector.broadcast %47 : vector<8x1xf32> to vector<8x128xf32>
    %49 = vector.broadcast %9 : vector<1x128xf32> to vector<8x128xf32>
    %50 = arith.addf %48, %49 : vector<8x128xf32>
    %51 = arith.cmpf ogt, %50, %44 : vector<8x128xf32>
    %52 = arith.select %51, %50, %44 : vector<8x128xi1>, vector<8x128xf32>
    %c1_i32 = arith.constant 1 : i32
    %53 = vector.broadcast %c1_i32 : i32 to vector<8x128xi32>
    %54 = arith.select %51, %53, %46 : vector<8x128xi1>, vector<8x128xi32>
    %55 = vector.extract_strided_slice %36 {offsets = [0, 2], sizes = [8, 1], strides = [1, 1]} : vector<8x128xf32> to vector<8x1xf32>
    %56 = vector.broadcast %55 : vector<8x1xf32> to vector<8x128xf32>
    %57 = vector.broadcast %10 : vector<1x128xf32> to vector<8x128xf32>
    %58 = arith.addf %56, %57 : vector<8x128xf32>
    %59 = arith.cmpf ogt, %58, %52 : vector<8x128xf32>
    %60 = arith.select %59, %58, %52 : vector<8x128xi1>, vector<8x128xf32>
    %c2_i32 = arith.constant 2 : i32
    %61 = vector.broadcast %c2_i32 : i32 to vector<8x128xi32>
    %62 = arith.select %59, %61, %54 : vector<8x128xi1>, vector<8x128xi32>
    %63 = vector.extract_strided_slice %36 {offsets = [0, 3], sizes = [8, 1], strides = [1, 1]} : vector<8x128xf32> to vector<8x1xf32>
    %64 = vector.broadcast %63 : vector<8x1xf32> to vector<8x128xf32>
    %65 = vector.broadcast %11 : vector<1x128xf32> to vector<8x128xf32>
    %66 = arith.addf %64, %65 : vector<8x128xf32>
    %67 = arith.cmpf ogt, %66, %60 : vector<8x128xf32>
    %68 = arith.select %67, %66, %60 : vector<8x128xi1>, vector<8x128xf32>
    %c3_i32 = arith.constant 3 : i32
    %69 = vector.broadcast %c3_i32 : i32 to vector<8x128xi32>
    %70 = arith.select %67, %69, %62 : vector<8x128xi1>, vector<8x128xi32>
    %71 = vector.extract_strided_slice %36 {offsets = [0, 4], sizes = [8, 1], strides = [1, 1]} : vector<8x128xf32> to vector<8x1xf32>
    %72 = vector.broadcast %71 : vector<8x1xf32> to vector<8x128xf32>
    %73 = vector.broadcast %12 : vector<1x128xf32> to vector<8x128xf32>
    %74 = arith.addf %72, %73 : vector<8x128xf32>
    %75 = arith.cmpf ogt, %74, %68 : vector<8x128xf32>
    %76 = arith.select %75, %74, %68 : vector<8x128xi1>, vector<8x128xf32>
    %c4_i32 = arith.constant 4 : i32
    %77 = vector.broadcast %c4_i32 : i32 to vector<8x128xi32>
    %78 = arith.select %75, %77, %70 : vector<8x128xi1>, vector<8x128xi32>
    %79 = vector.extract_strided_slice %36 {offsets = [0, 5], sizes = [8, 1], strides = [1, 1]} : vector<8x128xf32> to vector<8x1xf32>
    %80 = vector.broadcast %79 : vector<8x1xf32> to vector<8x128xf32>
    %81 = vector.broadcast %13 : vector<1x128xf32> to vector<8x128xf32>
    %82 = arith.addf %80, %81 : vector<8x128xf32>
    %83 = arith.cmpf ogt, %82, %76 : vector<8x128xf32>
    %84 = arith.select %83, %82, %76 : vector<8x128xi1>, vector<8x128xf32>
    %c5_i32 = arith.constant 5 : i32
    %85 = vector.broadcast %c5_i32 : i32 to vector<8x128xi32>
    %86 = arith.select %83, %85, %78 : vector<8x128xi1>, vector<8x128xi32>
    %87 = vector.extract_strided_slice %36 {offsets = [0, 6], sizes = [8, 1], strides = [1, 1]} : vector<8x128xf32> to vector<8x1xf32>
    %88 = vector.broadcast %87 : vector<8x1xf32> to vector<8x128xf32>
    %89 = vector.broadcast %14 : vector<1x128xf32> to vector<8x128xf32>
    %90 = arith.addf %88, %89 : vector<8x128xf32>
    %91 = arith.cmpf ogt, %90, %84 : vector<8x128xf32>
    %92 = arith.select %91, %90, %84 : vector<8x128xi1>, vector<8x128xf32>
    %c6_i32 = arith.constant 6 : i32
    %93 = vector.broadcast %c6_i32 : i32 to vector<8x128xi32>
    %94 = arith.select %91, %93, %86 : vector<8x128xi1>, vector<8x128xi32>
    %95 = vector.extract_strided_slice %36 {offsets = [0, 7], sizes = [8, 1], strides = [1, 1]} : vector<8x128xf32> to vector<8x1xf32>
    %96 = vector.broadcast %95 : vector<8x1xf32> to vector<8x128xf32>
    %97 = vector.broadcast %15 : vector<1x128xf32> to vector<8x128xf32>
    %98 = arith.addf %96, %97 : vector<8x128xf32>
    %99 = arith.cmpf ogt, %98, %92 : vector<8x128xf32>
    %100 = arith.select %99, %98, %92 : vector<8x128xi1>, vector<8x128xf32>
    %c7_i32 = arith.constant 7 : i32
    %101 = vector.broadcast %c7_i32 : i32 to vector<8x128xi32>
    %102 = arith.select %99, %101, %94 : vector<8x128xi1>, vector<8x128xi32>
    %103 = vector.extract_strided_slice %36 {offsets = [0, 8], sizes = [8, 1], strides = [1, 1]} : vector<8x128xf32> to vector<8x1xf32>
    %104 = vector.broadcast %103 : vector<8x1xf32> to vector<8x128xf32>
    %105 = vector.broadcast %16 : vector<1x128xf32> to vector<8x128xf32>
    %106 = arith.addf %104, %105 : vector<8x128xf32>
    %107 = arith.cmpf ogt, %106, %100 : vector<8x128xf32>
    %108 = arith.select %107, %106, %100 : vector<8x128xi1>, vector<8x128xf32>
    %c8_i32 = arith.constant 8 : i32
    %109 = vector.broadcast %c8_i32 : i32 to vector<8x128xi32>
    %110 = arith.select %107, %109, %102 : vector<8x128xi1>, vector<8x128xi32>
    %111 = vector.extract_strided_slice %36 {offsets = [0, 9], sizes = [8, 1], strides = [1, 1]} : vector<8x128xf32> to vector<8x1xf32>
    %112 = vector.broadcast %111 : vector<8x1xf32> to vector<8x128xf32>
    %113 = vector.broadcast %17 : vector<1x128xf32> to vector<8x128xf32>
    %114 = arith.addf %112, %113 : vector<8x128xf32>
    %115 = arith.cmpf ogt, %114, %108 : vector<8x128xf32>
    %116 = arith.select %115, %114, %108 : vector<8x128xi1>, vector<8x128xf32>
    %c9_i32 = arith.constant 9 : i32
    %117 = vector.broadcast %c9_i32 : i32 to vector<8x128xi32>
    %118 = arith.select %115, %117, %110 : vector<8x128xi1>, vector<8x128xi32>
    %119 = vector.extract_strided_slice %36 {offsets = [0, 10], sizes = [8, 1], strides = [1, 1]} : vector<8x128xf32> to vector<8x1xf32>
    %120 = vector.broadcast %119 : vector<8x1xf32> to vector<8x128xf32>
    %121 = vector.broadcast %18 : vector<1x128xf32> to vector<8x128xf32>
    %122 = arith.addf %120, %121 : vector<8x128xf32>
    %123 = arith.cmpf ogt, %122, %116 : vector<8x128xf32>
    %124 = arith.select %123, %122, %116 : vector<8x128xi1>, vector<8x128xf32>
    %c10_i32 = arith.constant 10 : i32
    %125 = vector.broadcast %c10_i32 : i32 to vector<8x128xi32>
    %126 = arith.select %123, %125, %118 : vector<8x128xi1>, vector<8x128xi32>
    %127 = vector.extract_strided_slice %36 {offsets = [0, 11], sizes = [8, 1], strides = [1, 1]} : vector<8x128xf32> to vector<8x1xf32>
    %128 = vector.broadcast %127 : vector<8x1xf32> to vector<8x128xf32>
    %129 = vector.broadcast %19 : vector<1x128xf32> to vector<8x128xf32>
    %130 = arith.addf %128, %129 : vector<8x128xf32>
    %131 = arith.cmpf ogt, %130, %124 : vector<8x128xf32>
    %132 = arith.select %131, %130, %124 : vector<8x128xi1>, vector<8x128xf32>
    %c11_i32 = arith.constant 11 : i32
    %133 = vector.broadcast %c11_i32 : i32 to vector<8x128xi32>
    %134 = arith.select %131, %133, %126 : vector<8x128xi1>, vector<8x128xi32>
    %135 = vector.extract_strided_slice %36 {offsets = [0, 12], sizes = [8, 1], strides = [1, 1]} : vector<8x128xf32> to vector<8x1xf32>
    %136 = vector.broadcast %135 : vector<8x1xf32> to vector<8x128xf32>
    %137 = vector.broadcast %20 : vector<1x128xf32> to vector<8x128xf32>
    %138 = arith.addf %136, %137 : vector<8x128xf32>
    %139 = arith.cmpf ogt, %138, %132 : vector<8x128xf32>
    %140 = arith.select %139, %138, %132 : vector<8x128xi1>, vector<8x128xf32>
    %c12_i32 = arith.constant 12 : i32
    %141 = vector.broadcast %c12_i32 : i32 to vector<8x128xi32>
    %142 = arith.select %139, %141, %134 : vector<8x128xi1>, vector<8x128xi32>
    %143 = vector.extract_strided_slice %36 {offsets = [0, 13], sizes = [8, 1], strides = [1, 1]} : vector<8x128xf32> to vector<8x1xf32>
    %144 = vector.broadcast %143 : vector<8x1xf32> to vector<8x128xf32>
    %145 = vector.broadcast %21 : vector<1x128xf32> to vector<8x128xf32>
    %146 = arith.addf %144, %145 : vector<8x128xf32>
    %147 = arith.cmpf ogt, %146, %140 : vector<8x128xf32>
    %148 = arith.select %147, %146, %140 : vector<8x128xi1>, vector<8x128xf32>
    %c13_i32 = arith.constant 13 : i32
    %149 = vector.broadcast %c13_i32 : i32 to vector<8x128xi32>
    %150 = arith.select %147, %149, %142 : vector<8x128xi1>, vector<8x128xi32>
    %151 = vector.extract_strided_slice %36 {offsets = [0, 14], sizes = [8, 1], strides = [1, 1]} : vector<8x128xf32> to vector<8x1xf32>
    %152 = vector.broadcast %151 : vector<8x1xf32> to vector<8x128xf32>
    %153 = vector.broadcast %22 : vector<1x128xf32> to vector<8x128xf32>
    %154 = arith.addf %152, %153 : vector<8x128xf32>
    %155 = arith.cmpf ogt, %154, %148 : vector<8x128xf32>
    %156 = arith.select %155, %154, %148 : vector<8x128xi1>, vector<8x128xf32>
    %c14_i32 = arith.constant 14 : i32
    %157 = vector.broadcast %c14_i32 : i32 to vector<8x128xi32>
    %158 = arith.select %155, %157, %150 : vector<8x128xi1>, vector<8x128xi32>
    %159 = vector.extract_strided_slice %36 {offsets = [0, 15], sizes = [8, 1], strides = [1, 1]} : vector<8x128xf32> to vector<8x1xf32>
    %160 = vector.broadcast %159 : vector<8x1xf32> to vector<8x128xf32>
    %161 = vector.broadcast %23 : vector<1x128xf32> to vector<8x128xf32>
    %162 = arith.addf %160, %161 : vector<8x128xf32>
    %163 = arith.cmpf ogt, %162, %156 : vector<8x128xf32>
    %164 = arith.select %163, %162, %156 : vector<8x128xi1>, vector<8x128xf32>
    %c15_i32 = arith.constant 15 : i32
    %165 = vector.broadcast %c15_i32 : i32 to vector<8x128xi32>
    %166 = arith.select %163, %165, %158 : vector<8x128xi1>, vector<8x128xi32>
    %167 = vector.extract_strided_slice %36 {offsets = [0, 16], sizes = [8, 1], strides = [1, 1]} : vector<8x128xf32> to vector<8x1xf32>
    %168 = vector.broadcast %167 : vector<8x1xf32> to vector<8x128xf32>
    %169 = vector.broadcast %24 : vector<1x128xf32> to vector<8x128xf32>
    %170 = arith.addf %168, %169 : vector<8x128xf32>
    %171 = arith.cmpf ogt, %170, %164 : vector<8x128xf32>
    %172 = arith.select %171, %170, %164 : vector<8x128xi1>, vector<8x128xf32>
    %c16_i32 = arith.constant 16 : i32
    %173 = vector.broadcast %c16_i32 : i32 to vector<8x128xi32>
    %174 = arith.select %171, %173, %166 : vector<8x128xi1>, vector<8x128xi32>
    %175 = vector.extract_strided_slice %36 {offsets = [0, 17], sizes = [8, 1], strides = [1, 1]} : vector<8x128xf32> to vector<8x1xf32>
    %176 = vector.broadcast %175 : vector<8x1xf32> to vector<8x128xf32>
    %177 = vector.broadcast %25 : vector<1x128xf32> to vector<8x128xf32>
    %178 = arith.addf %176, %177 : vector<8x128xf32>
    %179 = arith.cmpf ogt, %178, %172 : vector<8x128xf32>
    %180 = arith.select %179, %178, %172 : vector<8x128xi1>, vector<8x128xf32>
    %c17_i32 = arith.constant 17 : i32
    %181 = vector.broadcast %c17_i32 : i32 to vector<8x128xi32>
    %182 = arith.select %179, %181, %174 : vector<8x128xi1>, vector<8x128xi32>
    %183 = vector.extract_strided_slice %36 {offsets = [0, 18], sizes = [8, 1], strides = [1, 1]} : vector<8x128xf32> to vector<8x1xf32>
    %184 = vector.broadcast %183 : vector<8x1xf32> to vector<8x128xf32>
    %185 = vector.broadcast %26 : vector<1x128xf32> to vector<8x128xf32>
    %186 = arith.addf %184, %185 : vector<8x128xf32>
    %187 = arith.cmpf ogt, %186, %180 : vector<8x128xf32>
    %188 = arith.select %187, %186, %180 : vector<8x128xi1>, vector<8x128xf32>
    %c18_i32 = arith.constant 18 : i32
    %189 = vector.broadcast %c18_i32 : i32 to vector<8x128xi32>
    %190 = arith.select %187, %189, %182 : vector<8x128xi1>, vector<8x128xi32>
    %191 = vector.extract_strided_slice %36 {offsets = [0, 19], sizes = [8, 1], strides = [1, 1]} : vector<8x128xf32> to vector<8x1xf32>
    %192 = vector.broadcast %191 : vector<8x1xf32> to vector<8x128xf32>
    %193 = vector.broadcast %27 : vector<1x128xf32> to vector<8x128xf32>
    %194 = arith.addf %192, %193 : vector<8x128xf32>
    %195 = arith.cmpf ogt, %194, %188 : vector<8x128xf32>
    %196 = arith.select %195, %194, %188 : vector<8x128xi1>, vector<8x128xf32>
    %c19_i32 = arith.constant 19 : i32
    %197 = vector.broadcast %c19_i32 : i32 to vector<8x128xi32>
    %198 = arith.select %195, %197, %190 : vector<8x128xi1>, vector<8x128xi32>
    %199 = vector.extract_strided_slice %36 {offsets = [0, 20], sizes = [8, 1], strides = [1, 1]} : vector<8x128xf32> to vector<8x1xf32>
    %200 = vector.broadcast %199 : vector<8x1xf32> to vector<8x128xf32>
    %201 = vector.broadcast %28 : vector<1x128xf32> to vector<8x128xf32>
    %202 = arith.addf %200, %201 : vector<8x128xf32>
    %203 = arith.cmpf ogt, %202, %196 : vector<8x128xf32>
    %204 = arith.select %203, %202, %196 : vector<8x128xi1>, vector<8x128xf32>
    %c20_i32 = arith.constant 20 : i32
    %205 = vector.broadcast %c20_i32 : i32 to vector<8x128xi32>
    %206 = arith.select %203, %205, %198 : vector<8x128xi1>, vector<8x128xi32>
    %207 = vector.extract_strided_slice %36 {offsets = [0, 21], sizes = [8, 1], strides = [1, 1]} : vector<8x128xf32> to vector<8x1xf32>
    %208 = vector.broadcast %207 : vector<8x1xf32> to vector<8x128xf32>
    %209 = vector.broadcast %29 : vector<1x128xf32> to vector<8x128xf32>
    %210 = arith.addf %208, %209 : vector<8x128xf32>
    %211 = arith.cmpf ogt, %210, %204 : vector<8x128xf32>
    %212 = arith.select %211, %210, %204 : vector<8x128xi1>, vector<8x128xf32>
    %c21_i32 = arith.constant 21 : i32
    %213 = vector.broadcast %c21_i32 : i32 to vector<8x128xi32>
    %214 = arith.select %211, %213, %206 : vector<8x128xi1>, vector<8x128xi32>
    %215 = vector.extract_strided_slice %36 {offsets = [0, 22], sizes = [8, 1], strides = [1, 1]} : vector<8x128xf32> to vector<8x1xf32>
    %216 = vector.broadcast %215 : vector<8x1xf32> to vector<8x128xf32>
    %217 = vector.broadcast %30 : vector<1x128xf32> to vector<8x128xf32>
    %218 = arith.addf %216, %217 : vector<8x128xf32>
    %219 = arith.cmpf ogt, %218, %212 : vector<8x128xf32>
    %220 = arith.select %219, %218, %212 : vector<8x128xi1>, vector<8x128xf32>
    %c22_i32 = arith.constant 22 : i32
    %221 = vector.broadcast %c22_i32 : i32 to vector<8x128xi32>
    %222 = arith.select %219, %221, %214 : vector<8x128xi1>, vector<8x128xi32>
    %223 = vector.extract_strided_slice %36 {offsets = [0, 23], sizes = [8, 1], strides = [1, 1]} : vector<8x128xf32> to vector<8x1xf32>
    %224 = vector.broadcast %223 : vector<8x1xf32> to vector<8x128xf32>
    %225 = vector.broadcast %31 : vector<1x128xf32> to vector<8x128xf32>
    %226 = arith.addf %224, %225 : vector<8x128xf32>
    %227 = arith.cmpf ogt, %226, %220 : vector<8x128xf32>
    %228 = arith.select %227, %226, %220 : vector<8x128xi1>, vector<8x128xf32>
    %c23_i32 = arith.constant 23 : i32
    %229 = vector.broadcast %c23_i32 : i32 to vector<8x128xi32>
    %230 = arith.select %227, %229, %222 : vector<8x128xi1>, vector<8x128xi32>
    %231 = vector.extract_strided_slice %36 {offsets = [0, 24], sizes = [8, 1], strides = [1, 1]} : vector<8x128xf32> to vector<8x1xf32>
    %232 = vector.broadcast %231 : vector<8x1xf32> to vector<8x128xf32>
    %233 = vector.broadcast %32 : vector<1x128xf32> to vector<8x128xf32>
    %234 = arith.addf %232, %233 : vector<8x128xf32>
    %235 = arith.cmpf ogt, %234, %228 : vector<8x128xf32>
    %236 = arith.select %235, %234, %228 : vector<8x128xi1>, vector<8x128xf32>
    %c24_i32 = arith.constant 24 : i32
    %237 = vector.broadcast %c24_i32 : i32 to vector<8x128xi32>
    %238 = arith.select %235, %237, %230 : vector<8x128xi1>, vector<8x128xi32>
    %239 = vector.extract_strided_slice %36 {offsets = [0, 25], sizes = [8, 1], strides = [1, 1]} : vector<8x128xf32> to vector<8x1xf32>
    %240 = vector.broadcast %239 : vector<8x1xf32> to vector<8x128xf32>
    %241 = vector.broadcast %33 : vector<1x128xf32> to vector<8x128xf32>
    %242 = arith.addf %240, %241 : vector<8x128xf32>
    %243 = arith.cmpf ogt, %242, %236 : vector<8x128xf32>
    %244 = arith.select %243, %242, %236 : vector<8x128xi1>, vector<8x128xf32>
    %c25_i32 = arith.constant 25 : i32
    %245 = vector.broadcast %c25_i32 : i32 to vector<8x128xi32>
    %246 = arith.select %243, %245, %238 : vector<8x128xi1>, vector<8x128xi32>
    %c1_37 = arith.constant 1 : index
    %c0_38 = arith.constant 0 : index
    %c0_39 = arith.constant 0 : index
    %247 = vector.load %arg6[%c1_37, %c0_38, %c0_39] : memref<8x8x128xi32, #tpu.memory_space<vmem>>, vector<1x8x128xi32>
    %248 = vector.shape_cast %247 : vector<1x8x128xi32> to vector<8x128xi32>
    %249 = vector.shape_cast %246 : vector<8x128xi32> to vector<1x8x128xi32>
    tpu.vector_store %arg6[%c1_37, %c0_38, %c0_39], %249 {strides = array<i32>} : memref<8x8x128xi32, #tpu.memory_space<vmem>>, vector<1x8x128xi32>,
    %c1_40 = arith.constant 1 : index
    %c0_41 = arith.constant 0 : index
    %250 = tpu.strided_load %arg5[%c1_40, %c0_41] {strides = array<i32: 8, 1>} : memref<64x128xf32, #tpu.memory_space<vmem>>, vector<8x128xf32>
    %251 = arith.addf %250, %244 : vector<8x128xf32>
    %cst_42 = arith.constant -1.000000e+30 : f32
    %252 = vector.broadcast %cst_42 : f32 to vector<8x128xf32>
    %c0_i32_43 = arith.constant 0 : i32
    %253 = vector.broadcast %c0_i32_43 : i32 to vector<8x128xi32>
    %254 = vector.extract_strided_slice %251 {offsets = [0, 0], sizes = [8, 1], strides = [1, 1]} : vector<8x128xf32> to vector<8x1xf32>
    %255 = vector.broadcast %254 : vector<8x1xf32> to vector<8x128xf32>
    %256 = vector.broadcast %8 : vector<1x128xf32> to vector<8x128xf32>
    %257 = arith.addf %255, %256 : vector<8x128xf32>
    %258 = arith.cmpf ogt, %257, %252 : vector<8x128xf32>
    %259 = arith.select %258, %257, %252 : vector<8x128xi1>, vector<8x128xf32>
    %c0_i32_44 = arith.constant 0 : i32
    %260 = vector.broadcast %c0_i32_44 : i32 to vector<8x128xi32>
    %261 = arith.select %258, %260, %253 : vector<8x128xi1>, vector<8x128xi32>
    %262 = vector.extract_strided_slice %251 {offsets = [0, 1], sizes = [8, 1], strides = [1, 1]} : vector<8x128xf32> to vector<8x1xf32>
    %263 = vector.broadcast %262 : vector<8x1xf32> to vector<8x128xf32>
    %264 = vector.broadcast %9 : vector<1x128xf32> to vector<8x128xf32>
    %265 = arith.addf %263, %264 : vector<8x128xf32>
    %266 = arith.cmpf ogt, %265, %259 : vector<8x128xf32>
    %267 = arith.select %266, %265, %259 : vector<8x128xi1>, vector<8x128xf32>
    %c1_i32_45 = arith.constant 1 : i32
    %268 = vector.broadcast %c1_i32_45 : i32 to vector<8x128xi32>
    %269 = arith.select %266, %268, %261 : vector<8x128xi1>, vector<8x128xi32>
    %270 = vector.extract_strided_slice %251 {offsets = [0, 2], sizes = [8, 1], strides = [1, 1]} : vector<8x128xf32> to vector<8x1xf32>
    %271 = vector.broadcast %270 : vector<8x1xf32> to vector<8x128xf32>
    %272 = vector.broadcast %10 : vector<1x128xf32> to vector<8x128xf32>
    %273 = arith.addf %271, %272 : vector<8x128xf32>
    %274 = arith.cmpf ogt, %273, %267 : vector<8x128xf32>
    %275 = arith.select %274, %273, %267 : vector<8x128xi1>, vector<8x128xf32>
    %c2_i32_46 = arith.constant 2 : i32
    %276 = vector.broadcast %c2_i32_46 : i32 to vector<8x128xi32>
    %277 = arith.select %274, %276, %269 : vector<8x128xi1>, vector<8x128xi32>
    %278 = vector.extract_strided_slice %251 {offsets = [0, 3], sizes = [8, 1], strides = [1, 1]} : vector<8x128xf32> to vector<8x1xf32>
    %279 = vector.broadcast %278 : vector<8x1xf32> to vector<8x128xf32>
    %280 = vector.broadcast %11 : vector<1x128xf32> to vector<8x128xf32>
    %281 = arith.addf %279, %280 : vector<8x128xf32>
    %282 = arith.cmpf ogt, %281, %275 : vector<8x128xf32>
    %283 = arith.select %282, %281, %275 : vector<8x128xi1>, vector<8x128xf32>
    %c3_i32_47 = arith.constant 3 : i32
    %284 = vector.broadcast %c3_i32_47 : i32 to vector<8x128xi32>
    %285 = arith.select %282, %284, %277 : vector<8x128xi1>, vector<8x128xi32>
    %286 = vector.extract_strided_slice %251 {offsets = [0, 4], sizes = [8, 1], strides = [1, 1]} : vector<8x128xf32> to vector<8x1xf32>
    %287 = vector.broadcast %286 : vector<8x1xf32> to vector<8x128xf32>
    %288 = vector.broadcast %12 : vector<1x128xf32> to vector<8x128xf32>
    %289 = arith.addf %287, %288 : vector<8x128xf32>
    %290 = arith.cmpf ogt, %289, %283 : vector<8x128xf32>
    %291 = arith.select %290, %289, %283 : vector<8x128xi1>, vector<8x128xf32>
    %c4_i32_48 = arith.constant 4 : i32
    %292 = vector.broadcast %c4_i32_48 : i32 to vector<8x128xi32>
    %293 = arith.select %290, %292, %285 : vector<8x128xi1>, vector<8x128xi32>
    %294 = vector.extract_strided_slice %251 {offsets = [0, 5], sizes = [8, 1], strides = [1, 1]} : vector<8x128xf32> to vector<8x1xf32>
    %295 = vector.broadcast %294 : vector<8x1xf32> to vector<8x128xf32>
    %296 = vector.broadcast %13 : vector<1x128xf32> to vector<8x128xf32>
    %297 = arith.addf %295, %296 : vector<8x128xf32>
    %298 = arith.cmpf ogt, %297, %291 : vector<8x128xf32>
    %299 = arith.select %298, %297, %291 : vector<8x128xi1>, vector<8x128xf32>
    %c5_i32_49 = arith.constant 5 : i32
    %300 = vector.broadcast %c5_i32_49 : i32 to vector<8x128xi32>
    %301 = arith.select %298, %300, %293 : vector<8x128xi1>, vector<8x128xi32>
    %302 = vector.extract_strided_slice %251 {offsets = [0, 6], sizes = [8, 1], strides = [1, 1]} : vector<8x128xf32> to vector<8x1xf32>
    %303 = vector.broadcast %302 : vector<8x1xf32> to vector<8x128xf32>
    %304 = vector.broadcast %14 : vector<1x128xf32> to vector<8x128xf32>
    %305 = arith.addf %303, %304 : vector<8x128xf32>
    %306 = arith.cmpf ogt, %305, %299 : vector<8x128xf32>
    %307 = arith.select %306, %305, %299 : vector<8x128xi1>, vector<8x128xf32>
    %c6_i32_50 = arith.constant 6 : i32
    %308 = vector.broadcast %c6_i32_50 : i32 to vector<8x128xi32>
    %309 = arith.select %306, %308, %301 : vector<8x128xi1>, vector<8x128xi32>
    %310 = vector.extract_strided_slice %251 {offsets = [0, 7], sizes = [8, 1], strides = [1, 1]} : vector<8x128xf32> to vector<8x1xf32>
    %311 = vector.broadcast %310 : vector<8x1xf32> to vector<8x128xf32>
    %312 = vector.broadcast %15 : vector<1x128xf32> to vector<8x128xf32>
    %313 = arith.addf %311, %312 : vector<8x128xf32>
    %314 = arith.cmpf ogt, %313, %307 : vector<8x128xf32>
    %315 = arith.select %314, %313, %307 : vector<8x128xi1>, vector<8x128xf32>
    %c7_i32_51 = arith.constant 7 : i32
    %316 = vector.broadcast %c7_i32_51 : i32 to vector<8x128xi32>
    %317 = arith.select %314, %316, %309 : vector<8x128xi1>, vector<8x128xi32>
    %318 = vector.extract_strided_slice %251 {offsets = [0, 8], sizes = [8, 1], strides = [1, 1]} : vector<8x128xf32> to vector<8x1xf32>
    %319 = vector.broadcast %318 : vector<8x1xf32> to vector<8x128xf32>
    %320 = vector.broadcast %16 : vector<1x128xf32> to vector<8x128xf32>
    %321 = arith.addf %319, %320 : vector<8x128xf32>
    %322 = arith.cmpf ogt, %321, %315 : vector<8x128xf32>
    %323 = arith.select %322, %321, %315 : vector<8x128xi1>, vector<8x128xf32>
    %c8_i32_52 = arith.constant 8 : i32
    %324 = vector.broadcast %c8_i32_52 : i32 to vector<8x128xi32>
    %325 = arith.select %322, %324, %317 : vector<8x128xi1>, vector<8x128xi32>
    %326 = vector.extract_strided_slice %251 {offsets = [0, 9], sizes = [8, 1], strides = [1, 1]} : vector<8x128xf32> to vector<8x1xf32>
    %327 = vector.broadcast %326 : vector<8x1xf32> to vector<8x128xf32>
    %328 = vector.broadcast %17 : vector<1x128xf32> to vector<8x128xf32>
    %329 = arith.addf %327, %328 : vector<8x128xf32>
    %330 = arith.cmpf ogt, %329, %323 : vector<8x128xf32>
    %331 = arith.select %330, %329, %323 : vector<8x128xi1>, vector<8x128xf32>
    %c9_i32_53 = arith.constant 9 : i32
    %332 = vector.broadcast %c9_i32_53 : i32 to vector<8x128xi32>
    %333 = arith.select %330, %332, %325 : vector<8x128xi1>, vector<8x128xi32>
    %334 = vector.extract_strided_slice %251 {offsets = [0, 10], sizes = [8, 1], strides = [1, 1]} : vector<8x128xf32> to vector<8x1xf32>
    %335 = vector.broadcast %334 : vector<8x1xf32> to vector<8x128xf32>
    %336 = vector.broadcast %18 : vector<1x128xf32> to vector<8x128xf32>
    %337 = arith.addf %335, %336 : vector<8x128xf32>
    %338 = arith.cmpf ogt, %337, %331 : vector<8x128xf32>
    %339 = arith.select %338, %337, %331 : vector<8x128xi1>, vector<8x128xf32>
    %c10_i32_54 = arith.constant 10 : i32
    %340 = vector.broadcast %c10_i32_54 : i32 to vector<8x128xi32>
    %341 = arith.select %338, %340, %333 : vector<8x128xi1>, vector<8x128xi32>
    %342 = vector.extract_strided_slice %251 {offsets = [0, 11], sizes = [8, 1], strides = [1, 1]} : vector<8x128xf32> to vector<8x1xf32>
    %343 = vector.broadcast %342 : vector<8x1xf32> to vector<8x128xf32>
    %344 = vector.broadcast %19 : vector<1x128xf32> to vector<8x128xf32>
    %345 = arith.addf %343, %344 : vector<8x128xf32>
    %346 = arith.cmpf ogt, %345, %339 : vector<8x128xf32>
    %347 = arith.select %346, %345, %339 : vector<8x128xi1>, vector<8x128xf32>
    %c11_i32_55 = arith.constant 11 : i32
    %348 = vector.broadcast %c11_i32_55 : i32 to vector<8x128xi32>
    %349 = arith.select %346, %348, %341 : vector<8x128xi1>, vector<8x128xi32>
    %350 = vector.extract_strided_slice %251 {offsets = [0, 12], sizes = [8, 1], strides = [1, 1]} : vector<8x128xf32> to vector<8x1xf32>
    %351 = vector.broadcast %350 : vector<8x1xf32> to vector<8x128xf32>
    %352 = vector.broadcast %20 : vector<1x128xf32> to vector<8x128xf32>
    %353 = arith.addf %351, %352 : vector<8x128xf32>
    %354 = arith.cmpf ogt, %353, %347 : vector<8x128xf32>
    %355 = arith.select %354, %353, %347 : vector<8x128xi1>, vector<8x128xf32>
    %c12_i32_56 = arith.constant 12 : i32
    %356 = vector.broadcast %c12_i32_56 : i32 to vector<8x128xi32>
    %357 = arith.select %354, %356, %349 : vector<8x128xi1>, vector<8x128xi32>
    %358 = vector.extract_strided_slice %251 {offsets = [0, 13], sizes = [8, 1], strides = [1, 1]} : vector<8x128xf32> to vector<8x1xf32>
    %359 = vector.broadcast %358 : vector<8x1xf32> to vector<8x128xf32>
    %360 = vector.broadcast %21 : vector<1x128xf32> to vector<8x128xf32>
    %361 = arith.addf %359, %360 : vector<8x128xf32>
    %362 = arith.cmpf ogt, %361, %355 : vector<8x128xf32>
    %363 = arith.select %362, %361, %355 : vector<8x128xi1>, vector<8x128xf32>
    %c13_i32_57 = arith.constant 13 : i32
    %364 = vector.broadcast %c13_i32_57 : i32 to vector<8x128xi32>
    %365 = arith.select %362, %364, %357 : vector<8x128xi1>, vector<8x128xi32>
    %366 = vector.extract_strided_slice %251 {offsets = [0, 14], sizes = [8, 1], strides = [1, 1]} : vector<8x128xf32> to vector<8x1xf32>
    %367 = vector.broadcast %366 : vector<8x1xf32> to vector<8x128xf32>
    %368 = vector.broadcast %22 : vector<1x128xf32> to vector<8x128xf32>
    %369 = arith.addf %367, %368 : vector<8x128xf32>
    %370 = arith.cmpf ogt, %369, %363 : vector<8x128xf32>
    %371 = arith.select %370, %369, %363 : vector<8x128xi1>, vector<8x128xf32>
    %c14_i32_58 = arith.constant 14 : i32
    %372 = vector.broadcast %c14_i32_58 : i32 to vector<8x128xi32>
    %373 = arith.select %370, %372, %365 : vector<8x128xi1>, vector<8x128xi32>
    %374 = vector.extract_strided_slice %251 {offsets = [0, 15], sizes = [8, 1], strides = [1, 1]} : vector<8x128xf32> to vector<8x1xf32>
    %375 = vector.broadcast %374 : vector<8x1xf32> to vector<8x128xf32>
    %376 = vector.broadcast %23 : vector<1x128xf32> to vector<8x128xf32>
    %377 = arith.addf %375, %376 : vector<8x128xf32>
    %378 = arith.cmpf ogt, %377, %371 : vector<8x128xf32>
    %379 = arith.select %378, %377, %371 : vector<8x128xi1>, vector<8x128xf32>
    %c15_i32_59 = arith.constant 15 : i32
    %380 = vector.broadcast %c15_i32_59 : i32 to vector<8x128xi32>
    %381 = arith.select %378, %380, %373 : vector<8x128xi1>, vector<8x128xi32>
    %382 = vector.extract_strided_slice %251 {offsets = [0, 16], sizes = [8, 1], strides = [1, 1]} : vector<8x128xf32> to vector<8x1xf32>
    %383 = vector.broadcast %382 : vector<8x1xf32> to vector<8x128xf32>
    %384 = vector.broadcast %24 : vector<1x128xf32> to vector<8x128xf32>
    %385 = arith.addf %383, %384 : vector<8x128xf32>
    %386 = arith.cmpf ogt, %385, %379 : vector<8x128xf32>
    %387 = arith.select %386, %385, %379 : vector<8x128xi1>, vector<8x128xf32>
    %c16_i32_60 = arith.constant 16 : i32
    %388 = vector.broadcast %c16_i32_60 : i32 to vector<8x128xi32>
    %389 = arith.select %386, %388, %381 : vector<8x128xi1>, vector<8x128xi32>
    %390 = vector.extract_strided_slice %251 {offsets = [0, 17], sizes = [8, 1], strides = [1, 1]} : vector<8x128xf32> to vector<8x1xf32>
    %391 = vector.broadcast %390 : vector<8x1xf32> to vector<8x128xf32>
    %392 = vector.broadcast %25 : vector<1x128xf32> to vector<8x128xf32>
    %393 = arith.addf %391, %392 : vector<8x128xf32>
    %394 = arith.cmpf ogt, %393, %387 : vector<8x128xf32>
    %395 = arith.select %394, %393, %387 : vector<8x128xi1>, vector<8x128xf32>
    %c17_i32_61 = arith.constant 17 : i32
    %396 = vector.broadcast %c17_i32_61 : i32 to vector<8x128xi32>
    %397 = arith.select %394, %396, %389 : vector<8x128xi1>, vector<8x128xi32>
    %398 = vector.extract_strided_slice %251 {offsets = [0, 18], sizes = [8, 1], strides = [1, 1]} : vector<8x128xf32> to vector<8x1xf32>
    %399 = vector.broadcast %398 : vector<8x1xf32> to vector<8x128xf32>
    %400 = vector.broadcast %26 : vector<1x128xf32> to vector<8x128xf32>
    %401 = arith.addf %399, %400 : vector<8x128xf32>
    %402 = arith.cmpf ogt, %401, %395 : vector<8x128xf32>
    %403 = arith.select %402, %401, %395 : vector<8x128xi1>, vector<8x128xf32>
    %c18_i32_62 = arith.constant 18 : i32
    %404 = vector.broadcast %c18_i32_62 : i32 to vector<8x128xi32>
    %405 = arith.select %402, %404, %397 : vector<8x128xi1>, vector<8x128xi32>
    %406 = vector.extract_strided_slice %251 {offsets = [0, 19], sizes = [8, 1], strides = [1, 1]} : vector<8x128xf32> to vector<8x1xf32>
    %407 = vector.broadcast %406 : vector<8x1xf32> to vector<8x128xf32>
    %408 = vector.broadcast %27 : vector<1x128xf32> to vector<8x128xf32>
    %409 = arith.addf %407, %408 : vector<8x128xf32>
    %410 = arith.cmpf ogt, %409, %403 : vector<8x128xf32>
    %411 = arith.select %410, %409, %403 : vector<8x128xi1>, vector<8x128xf32>
    %c19_i32_63 = arith.constant 19 : i32
    %412 = vector.broadcast %c19_i32_63 : i32 to vector<8x128xi32>
    %413 = arith.select %410, %412, %405 : vector<8x128xi1>, vector<8x128xi32>
    %414 = vector.extract_strided_slice %251 {offsets = [0, 20], sizes = [8, 1], strides = [1, 1]} : vector<8x128xf32> to vector<8x1xf32>
    %415 = vector.broadcast %414 : vector<8x1xf32> to vector<8x128xf32>
    %416 = vector.broadcast %28 : vector<1x128xf32> to vector<8x128xf32>
    %417 = arith.addf %415, %416 : vector<8x128xf32>
    %418 = arith.cmpf ogt, %417, %411 : vector<8x128xf32>
    %419 = arith.select %418, %417, %411 : vector<8x128xi1>, vector<8x128xf32>
    %c20_i32_64 = arith.constant 20 : i32
    %420 = vector.broadcast %c20_i32_64 : i32 to vector<8x128xi32>
    %421 = arith.select %418, %420, %413 : vector<8x128xi1>, vector<8x128xi32>
    %422 = vector.extract_strided_slice %251 {offsets = [0, 21], sizes = [8, 1], strides = [1, 1]} : vector<8x128xf32> to vector<8x1xf32>
    %423 = vector.broadcast %422 : vector<8x1xf32> to vector<8x128xf32>
    %424 = vector.broadcast %29 : vector<1x128xf32> to vector<8x128xf32>
    %425 = arith.addf %423, %424 : vector<8x128xf32>
    %426 = arith.cmpf ogt, %425, %419 : vector<8x128xf32>
    %427 = arith.select %426, %425, %419 : vector<8x128xi1>, vector<8x128xf32>
    %c21_i32_65 = arith.constant 21 : i32
    %428 = vector.broadcast %c21_i32_65 : i32 to vector<8x128xi32>
    %429 = arith.select %426, %428, %421 : vector<8x128xi1>, vector<8x128xi32>
    %430 = vector.extract_strided_slice %251 {offsets = [0, 22], sizes = [8, 1], strides = [1, 1]} : vector<8x128xf32> to vector<8x1xf32>
    %431 = vector.broadcast %430 : vector<8x1xf32> to vector<8x128xf32>
    %432 = vector.broadcast %30 : vector<1x128xf32> to vector<8x128xf32>
    %433 = arith.addf %431, %432 : vector<8x128xf32>
    %434 = arith.cmpf ogt, %433, %427 : vector<8x128xf32>
    %435 = arith.select %434, %433, %427 : vector<8x128xi1>, vector<8x128xf32>
    %c22_i32_66 = arith.constant 22 : i32
    %436 = vector.broadcast %c22_i32_66 : i32 to vector<8x128xi32>
    %437 = arith.select %434, %436, %429 : vector<8x128xi1>, vector<8x128xi32>
    %438 = vector.extract_strided_slice %251 {offsets = [0, 23], sizes = [8, 1], strides = [1, 1]} : vector<8x128xf32> to vector<8x1xf32>
    %439 = vector.broadcast %438 : vector<8x1xf32> to vector<8x128xf32>
    %440 = vector.broadcast %31 : vector<1x128xf32> to vector<8x128xf32>
    %441 = arith.addf %439, %440 : vector<8x128xf32>
    %442 = arith.cmpf ogt, %441, %435 : vector<8x128xf32>
    %443 = arith.select %442, %441, %435 : vector<8x128xi1>, vector<8x128xf32>
    %c23_i32_67 = arith.constant 23 : i32
    %444 = vector.broadcast %c23_i32_67 : i32 to vector<8x128xi32>
    %445 = arith.select %442, %444, %437 : vector<8x128xi1>, vector<8x128xi32>
    %446 = vector.extract_strided_slice %251 {offsets = [0, 24], sizes = [8, 1], strides = [1, 1]} : vector<8x128xf32> to vector<8x1xf32>
    %447 = vector.broadcast %446 : vector<8x1xf32> to vector<8x128xf32>
    %448 = vector.broadcast %32 : vector<1x128xf32> to vector<8x128xf32>
    %449 = arith.addf %447, %448 : vector<8x128xf32>
    %450 = arith.cmpf ogt, %449, %443 : vector<8x128xf32>
    %451 = arith.select %450, %449, %443 : vector<8x128xi1>, vector<8x128xf32>
    %c24_i32_68 = arith.constant 24 : i32
    %452 = vector.broadcast %c24_i32_68 : i32 to vector<8x128xi32>
    %453 = arith.select %450, %452, %445 : vector<8x128xi1>, vector<8x128xi32>
    %454 = vector.extract_strided_slice %251 {offsets = [0, 25], sizes = [8, 1], strides = [1, 1]} : vector<8x128xf32> to vector<8x1xf32>
    %455 = vector.broadcast %454 : vector<8x1xf32> to vector<8x128xf32>
    %456 = vector.broadcast %33 : vector<1x128xf32> to vector<8x128xf32>
    %457 = arith.addf %455, %456 : vector<8x128xf32>
    %458 = arith.cmpf ogt, %457, %451 : vector<8x128xf32>
    %459 = arith.select %458, %457, %451 : vector<8x128xi1>, vector<8x128xf32>
    %c25_i32_69 = arith.constant 25 : i32
    %460 = vector.broadcast %c25_i32_69 : i32 to vector<8x128xi32>
    %461 = arith.select %458, %460, %453 : vector<8x128xi1>, vector<8x128xi32>
    %c2_70 = arith.constant 2 : index
    %c0_71 = arith.constant 0 : index
    %c0_72 = arith.constant 0 : index
    %462 = vector.load %arg6[%c2_70, %c0_71, %c0_72] : memref<8x8x128xi32, #tpu.memory_space<vmem>>, vector<1x8x128xi32>
    %463 = vector.shape_cast %462 : vector<1x8x128xi32> to vector<8x128xi32>
    %464 = vector.shape_cast %461 : vector<8x128xi32> to vector<1x8x128xi32>
    tpu.vector_store %arg6[%c2_70, %c0_71, %c0_72], %464 {strides = array<i32>} : memref<8x8x128xi32, #tpu.memory_space<vmem>>, vector<1x8x128xi32>,
    %c2_73 = arith.constant 2 : index
    %c0_74 = arith.constant 0 : index
    %465 = tpu.strided_load %arg5[%c2_73, %c0_74] {strides = array<i32: 8, 1>} : memref<64x128xf32, #tpu.memory_space<vmem>>, vector<8x128xf32>
    %466 = arith.addf %465, %459 : vector<8x128xf32>
    %cst_75 = arith.constant -1.000000e+30 : f32
    %467 = vector.broadcast %cst_75 : f32 to vector<8x128xf32>
    %c0_i32_76 = arith.constant 0 : i32
    %468 = vector.broadcast %c0_i32_76 : i32 to vector<8x128xi32>
    %469 = vector.extract_strided_slice %466 {offsets = [0, 0], sizes = [8, 1], strides = [1, 1]} : vector<8x128xf32> to vector<8x1xf32>
    %470 = vector.broadcast %469 : vector<8x1xf32> to vector<8x128xf32>
    %471 = vector.broadcast %8 : vector<1x128xf32> to vector<8x128xf32>
    %472 = arith.addf %470, %471 : vector<8x128xf32>
    %473 = arith.cmpf ogt, %472, %467 : vector<8x128xf32>
    %474 = arith.select %473, %472, %467 : vector<8x128xi1>, vector<8x128xf32>
    %c0_i32_77 = arith.constant 0 : i32
    %475 = vector.broadcast %c0_i32_77 : i32 to vector<8x128xi32>
    %476 = arith.select %473, %475, %468 : vector<8x128xi1>, vector<8x128xi32>
    %477 = vector.extract_strided_slice %466 {offsets = [0, 1], sizes = [8, 1], strides = [1, 1]} : vector<8x128xf32> to vector<8x1xf32>
    %478 = vector.broadcast %477 : vector<8x1xf32> to vector<8x128xf32>
    %479 = vector.broadcast %9 : vector<1x128xf32> to vector<8x128xf32>
    %480 = arith.addf %478, %479 : vector<8x128xf32>
    %481 = arith.cmpf ogt, %480, %474 : vector<8x128xf32>
    %482 = arith.select %481, %480, %474 : vector<8x128xi1>, vector<8x128xf32>
    %c1_i32_78 = arith.constant 1 : i32
    %483 = vector.broadcast %c1_i32_78 : i32 to vector<8x128xi32>
    %484 = arith.select %481, %483, %476 : vector<8x128xi1>, vector<8x128xi32>
    %485 = vector.extract_strided_slice %466 {offsets = [0, 2], sizes = [8, 1], strides = [1, 1]} : vector<8x128xf32> to vector<8x1xf32>
    %486 = vector.broadcast %485 : vector<8x1xf32> to vector<8x128xf32>
    %487 = vector.broadcast %10 : vector<1x128xf32> to vector<8x128xf32>
    %488 = arith.addf %486, %487 : vector<8x128xf32>
    %489 = arith.cmpf ogt, %488, %482 : vector<8x128xf32>
    %490 = arith.select %489, %488, %482 : vector<8x128xi1>, vector<8x128xf32>
    %c2_i32_79 = arith.constant 2 : i32
    %491 = vector.broadcast %c2_i32_79 : i32 to vector<8x128xi32>
    %492 = arith.select %489, %491, %484 : vector<8x128xi1>, vector<8x128xi32>
    %493 = vector.extract_strided_slice %466 {offsets = [0, 3], sizes = [8, 1], strides = [1, 1]} : vector<8x128xf32> to vector<8x1xf32>
    %494 = vector.broadcast %493 : vector<8x1xf32> to vector<8x128xf32>
    %495 = vector.broadcast %11 : vector<1x128xf32> to vector<8x128xf32>
    %496 = arith.addf %494, %495 : vector<8x128xf32>
    %497 = arith.cmpf ogt, %496, %490 : vector<8x128xf32>
    %498 = arith.select %497, %496, %490 : vector<8x128xi1>, vector<8x128xf32>
    %c3_i32_80 = arith.constant 3 : i32
    %499 = vector.broadcast %c3_i32_80 : i32 to vector<8x128xi32>
    %500 = arith.select %497, %499, %492 : vector<8x128xi1>, vector<8x128xi32>
    %501 = vector.extract_strided_slice %466 {offsets = [0, 4], sizes = [8, 1], strides = [1, 1]} : vector<8x128xf32> to vector<8x1xf32>
    %502 = vector.broadcast %501 : vector<8x1xf32> to vector<8x128xf32>
    %503 = vector.broadcast %12 : vector<1x128xf32> to vector<8x128xf32>
    %504 = arith.addf %502, %503 : vector<8x128xf32>
    %505 = arith.cmpf ogt, %504, %498 : vector<8x128xf32>
    %506 = arith.select %505, %504, %498 : vector<8x128xi1>, vector<8x128xf32>
    %c4_i32_81 = arith.constant 4 : i32
    %507 = vector.broadcast %c4_i32_81 : i32 to vector<8x128xi32>
    %508 = arith.select %505, %507, %500 : vector<8x128xi1>, vector<8x128xi32>
    %509 = vector.extract_strided_slice %466 {offsets = [0, 5], sizes = [8, 1], strides = [1, 1]} : vector<8x128xf32> to vector<8x1xf32>
    %510 = vector.broadcast %509 : vector<8x1xf32> to vector<8x128xf32>
    %511 = vector.broadcast %13 : vector<1x128xf32> to vector<8x128xf32>
    %512 = arith.addf %510, %511 : vector<8x128xf32>
    %513 = arith.cmpf ogt, %512, %506 : vector<8x128xf32>
    %514 = arith.select %513, %512, %506 : vector<8x128xi1>, vector<8x128xf32>
    %c5_i32_82 = arith.constant 5 : i32
    %515 = vector.broadcast %c5_i32_82 : i32 to vector<8x128xi32>
    %516 = arith.select %513, %515, %508 : vector<8x128xi1>, vector<8x128xi32>
    %517 = vector.extract_strided_slice %466 {offsets = [0, 6], sizes = [8, 1], strides = [1, 1]} : vector<8x128xf32> to vector<8x1xf32>
    %518 = vector.broadcast %517 : vector<8x1xf32> to vector<8x128xf32>
    %519 = vector.broadcast %14 : vector<1x128xf32> to vector<8x128xf32>
    %520 = arith.addf %518, %519 : vector<8x128xf32>
    %521 = arith.cmpf ogt, %520, %514 : vector<8x128xf32>
    %522 = arith.select %521, %520, %514 : vector<8x128xi1>, vector<8x128xf32>
    %c6_i32_83 = arith.constant 6 : i32
    %523 = vector.broadcast %c6_i32_83 : i32 to vector<8x128xi32>
    %524 = arith.select %521, %523, %516 : vector<8x128xi1>, vector<8x128xi32>
    %525 = vector.extract_strided_slice %466 {offsets = [0, 7], sizes = [8, 1], strides = [1, 1]} : vector<8x128xf32> to vector<8x1xf32>
    %526 = vector.broadcast %525 : vector<8x1xf32> to vector<8x128xf32>
    %527 = vector.broadcast %15 : vector<1x128xf32> to vector<8x128xf32>
    %528 = arith.addf %526, %527 : vector<8x128xf32>
    %529 = arith.cmpf ogt, %528, %522 : vector<8x128xf32>
    %530 = arith.select %529, %528, %522 : vector<8x128xi1>, vector<8x128xf32>
    %c7_i32_84 = arith.constant 7 : i32
    %531 = vector.broadcast %c7_i32_84 : i32 to vector<8x128xi32>
    %532 = arith.select %529, %531, %524 : vector<8x128xi1>, vector<8x128xi32>
    %533 = vector.extract_strided_slice %466 {offsets = [0, 8], sizes = [8, 1], strides = [1, 1]} : vector<8x128xf32> to vector<8x1xf32>
    %534 = vector.broadcast %533 : vector<8x1xf32> to vector<8x128xf32>
    %535 = vector.broadcast %16 : vector<1x128xf32> to vector<8x128xf32>
    %536 = arith.addf %534, %535 : vector<8x128xf32>
    %537 = arith.cmpf ogt, %536, %530 : vector<8x128xf32>
    %538 = arith.select %537, %536, %530 : vector<8x128xi1>, vector<8x128xf32>
    %c8_i32_85 = arith.constant 8 : i32
    %539 = vector.broadcast %c8_i32_85 : i32 to vector<8x128xi32>
    %540 = arith.select %537, %539, %532 : vector<8x128xi1>, vector<8x128xi32>
    %541 = vector.extract_strided_slice %466 {offsets = [0, 9], sizes = [8, 1], strides = [1, 1]} : vector<8x128xf32> to vector<8x1xf32>
    %542 = vector.broadcast %541 : vector<8x1xf32> to vector<8x128xf32>
    %543 = vector.broadcast %17 : vector<1x128xf32> to vector<8x128xf32>
    %544 = arith.addf %542, %543 : vector<8x128xf32>
    %545 = arith.cmpf ogt, %544, %538 : vector<8x128xf32>
    %546 = arith.select %545, %544, %538 : vector<8x128xi1>, vector<8x128xf32>
    %c9_i32_86 = arith.constant 9 : i32
    %547 = vector.broadcast %c9_i32_86 : i32 to vector<8x128xi32>
    %548 = arith.select %545, %547, %540 : vector<8x128xi1>, vector<8x128xi32>
    %549 = vector.extract_strided_slice %466 {offsets = [0, 10], sizes = [8, 1], strides = [1, 1]} : vector<8x128xf32> to vector<8x1xf32>
    %550 = vector.broadcast %549 : vector<8x1xf32> to vector<8x128xf32>
    %551 = vector.broadcast %18 : vector<1x128xf32> to vector<8x128xf32>
    %552 = arith.addf %550, %551 : vector<8x128xf32>
    %553 = arith.cmpf ogt, %552, %546 : vector<8x128xf32>
    %554 = arith.select %553, %552, %546 : vector<8x128xi1>, vector<8x128xf32>
    %c10_i32_87 = arith.constant 10 : i32
    %555 = vector.broadcast %c10_i32_87 : i32 to vector<8x128xi32>
    %556 = arith.select %553, %555, %548 : vector<8x128xi1>, vector<8x128xi32>
    %557 = vector.extract_strided_slice %466 {offsets = [0, 11], sizes = [8, 1], strides = [1, 1]} : vector<8x128xf32> to vector<8x1xf32>
    %558 = vector.broadcast %557 : vector<8x1xf32> to vector<8x128xf32>
    %559 = vector.broadcast %19 : vector<1x128xf32> to vector<8x128xf32>
    %560 = arith.addf %558, %559 : vector<8x128xf32>
    %561 = arith.cmpf ogt, %560, %554 : vector<8x128xf32>
    %562 = arith.select %561, %560, %554 : vector<8x128xi1>, vector<8x128xf32>
    %c11_i32_88 = arith.constant 11 : i32
    %563 = vector.broadcast %c11_i32_88 : i32 to vector<8x128xi32>
    %564 = arith.select %561, %563, %556 : vector<8x128xi1>, vector<8x128xi32>
    %565 = vector.extract_strided_slice %466 {offsets = [0, 12], sizes = [8, 1], strides = [1, 1]} : vector<8x128xf32> to vector<8x1xf32>
    %566 = vector.broadcast %565 : vector<8x1xf32> to vector<8x128xf32>
    %567 = vector.broadcast %20 : vector<1x128xf32> to vector<8x128xf32>
    %568 = arith.addf %566, %567 : vector<8x128xf32>
    %569 = arith.cmpf ogt, %568, %562 : vector<8x128xf32>
    %570 = arith.select %569, %568, %562 : vector<8x128xi1>, vector<8x128xf32>
    %c12_i32_89 = arith.constant 12 : i32
    %571 = vector.broadcast %c12_i32_89 : i32 to vector<8x128xi32>
    %572 = arith.select %569, %571, %564 : vector<8x128xi1>, vector<8x128xi32>
    %573 = vector.extract_strided_slice %466 {offsets = [0, 13], sizes = [8, 1], strides = [1, 1]} : vector<8x128xf32> to vector<8x1xf32>
    %574 = vector.broadcast %573 : vector<8x1xf32> to vector<8x128xf32>
    %575 = vector.broadcast %21 : vector<1x128xf32> to vector<8x128xf32>
    %576 = arith.addf %574, %575 : vector<8x128xf32>
    %577 = arith.cmpf ogt, %576, %570 : vector<8x128xf32>
    %578 = arith.select %577, %576, %570 : vector<8x128xi1>, vector<8x128xf32>
    %c13_i32_90 = arith.constant 13 : i32
    %579 = vector.broadcast %c13_i32_90 : i32 to vector<8x128xi32>
    %580 = arith.select %577, %579, %572 : vector<8x128xi1>, vector<8x128xi32>
    %581 = vector.extract_strided_slice %466 {offsets = [0, 14], sizes = [8, 1], strides = [1, 1]} : vector<8x128xf32> to vector<8x1xf32>
    %582 = vector.broadcast %581 : vector<8x1xf32> to vector<8x128xf32>
    %583 = vector.broadcast %22 : vector<1x128xf32> to vector<8x128xf32>
    %584 = arith.addf %582, %583 : vector<8x128xf32>
    %585 = arith.cmpf ogt, %584, %578 : vector<8x128xf32>
    %586 = arith.select %585, %584, %578 : vector<8x128xi1>, vector<8x128xf32>
    %c14_i32_91 = arith.constant 14 : i32
    %587 = vector.broadcast %c14_i32_91 : i32 to vector<8x128xi32>
    %588 = arith.select %585, %587, %580 : vector<8x128xi1>, vector<8x128xi32>
    %589 = vector.extract_strided_slice %466 {offsets = [0, 15], sizes = [8, 1], strides = [1, 1]} : vector<8x128xf32> to vector<8x1xf32>
    %590 = vector.broadcast %589 : vector<8x1xf32> to vector<8x128xf32>
    %591 = vector.broadcast %23 : vector<1x128xf32> to vector<8x128xf32>
    %592 = arith.addf %590, %591 : vector<8x128xf32>
    %593 = arith.cmpf ogt, %592, %586 : vector<8x128xf32>
    %594 = arith.select %593, %592, %586 : vector<8x128xi1>, vector<8x128xf32>
    %c15_i32_92 = arith.constant 15 : i32
    %595 = vector.broadcast %c15_i32_92 : i32 to vector<8x128xi32>
    %596 = arith.select %593, %595, %588 : vector<8x128xi1>, vector<8x128xi32>
    %597 = vector.extract_strided_slice %466 {offsets = [0, 16], sizes = [8, 1], strides = [1, 1]} : vector<8x128xf32> to vector<8x1xf32>
    %598 = vector.broadcast %597 : vector<8x1xf32> to vector<8x128xf32>
    %599 = vector.broadcast %24 : vector<1x128xf32> to vector<8x128xf32>
    %600 = arith.addf %598, %599 : vector<8x128xf32>
    %601 = arith.cmpf ogt, %600, %594 : vector<8x128xf32>
    %602 = arith.select %601, %600, %594 : vector<8x128xi1>, vector<8x128xf32>
    %c16_i32_93 = arith.constant 16 : i32
    %603 = vector.broadcast %c16_i32_93 : i32 to vector<8x128xi32>
    %604 = arith.select %601, %603, %596 : vector<8x128xi1>, vector<8x128xi32>
    %605 = vector.extract_strided_slice %466 {offsets = [0, 17], sizes = [8, 1], strides = [1, 1]} : vector<8x128xf32> to vector<8x1xf32>
    %606 = vector.broadcast %605 : vector<8x1xf32> to vector<8x128xf32>
    %607 = vector.broadcast %25 : vector<1x128xf32> to vector<8x128xf32>
    %608 = arith.addf %606, %607 : vector<8x128xf32>
    %609 = arith.cmpf ogt, %608, %602 : vector<8x128xf32>
    %610 = arith.select %609, %608, %602 : vector<8x128xi1>, vector<8x128xf32>
    %c17_i32_94 = arith.constant 17 : i32
    %611 = vector.broadcast %c17_i32_94 : i32 to vector<8x128xi32>
    %612 = arith.select %609, %611, %604 : vector<8x128xi1>, vector<8x128xi32>
    %613 = vector.extract_strided_slice %466 {offsets = [0, 18], sizes = [8, 1], strides = [1, 1]} : vector<8x128xf32> to vector<8x1xf32>
    %614 = vector.broadcast %613 : vector<8x1xf32> to vector<8x128xf32>
    %615 = vector.broadcast %26 : vector<1x128xf32> to vector<8x128xf32>
    %616 = arith.addf %614, %615 : vector<8x128xf32>
    %617 = arith.cmpf ogt, %616, %610 : vector<8x128xf32>
    %618 = arith.select %617, %616, %610 : vector<8x128xi1>, vector<8x128xf32>
    %c18_i32_95 = arith.constant 18 : i32
    %619 = vector.broadcast %c18_i32_95 : i32 to vector<8x128xi32>
    %620 = arith.select %617, %619, %612 : vector<8x128xi1>, vector<8x128xi32>
    %621 = vector.extract_strided_slice %466 {offsets = [0, 19], sizes = [8, 1], strides = [1, 1]} : vector<8x128xf32> to vector<8x1xf32>
    %622 = vector.broadcast %621 : vector<8x1xf32> to vector<8x128xf32>
    %623 = vector.broadcast %27 : vector<1x128xf32> to vector<8x128xf32>
    %624 = arith.addf %622, %623 : vector<8x128xf32>
    %625 = arith.cmpf ogt, %624, %618 : vector<8x128xf32>
    %626 = arith.select %625, %624, %618 : vector<8x128xi1>, vector<8x128xf32>
    %c19_i32_96 = arith.constant 19 : i32
    %627 = vector.broadcast %c19_i32_96 : i32 to vector<8x128xi32>
    %628 = arith.select %625, %627, %620 : vector<8x128xi1>, vector<8x128xi32>
    %629 = vector.extract_strided_slice %466 {offsets = [0, 20], sizes = [8, 1], strides = [1, 1]} : vector<8x128xf32> to vector<8x1xf32>
    %630 = vector.broadcast %629 : vector<8x1xf32> to vector<8x128xf32>
    %631 = vector.broadcast %28 : vector<1x128xf32> to vector<8x128xf32>
    %632 = arith.addf %630, %631 : vector<8x128xf32>
    %633 = arith.cmpf ogt, %632, %626 : vector<8x128xf32>
    %634 = arith.select %633, %632, %626 : vector<8x128xi1>, vector<8x128xf32>
    %c20_i32_97 = arith.constant 20 : i32
    %635 = vector.broadcast %c20_i32_97 : i32 to vector<8x128xi32>
    %636 = arith.select %633, %635, %628 : vector<8x128xi1>, vector<8x128xi32>
    %637 = vector.extract_strided_slice %466 {offsets = [0, 21], sizes = [8, 1], strides = [1, 1]} : vector<8x128xf32> to vector<8x1xf32>
    %638 = vector.broadcast %637 : vector<8x1xf32> to vector<8x128xf32>
    %639 = vector.broadcast %29 : vector<1x128xf32> to vector<8x128xf32>
    %640 = arith.addf %638, %639 : vector<8x128xf32>
    %641 = arith.cmpf ogt, %640, %634 : vector<8x128xf32>
    %642 = arith.select %641, %640, %634 : vector<8x128xi1>, vector<8x128xf32>
    %c21_i32_98 = arith.constant 21 : i32
    %643 = vector.broadcast %c21_i32_98 : i32 to vector<8x128xi32>
    %644 = arith.select %641, %643, %636 : vector<8x128xi1>, vector<8x128xi32>
    %645 = vector.extract_strided_slice %466 {offsets = [0, 22], sizes = [8, 1], strides = [1, 1]} : vector<8x128xf32> to vector<8x1xf32>
    %646 = vector.broadcast %645 : vector<8x1xf32> to vector<8x128xf32>
    %647 = vector.broadcast %30 : vector<1x128xf32> to vector<8x128xf32>
    %648 = arith.addf %646, %647 : vector<8x128xf32>
    %649 = arith.cmpf ogt, %648, %642 : vector<8x128xf32>
    %650 = arith.select %649, %648, %642 : vector<8x128xi1>, vector<8x128xf32>
    %c22_i32_99 = arith.constant 22 : i32
    %651 = vector.broadcast %c22_i32_99 : i32 to vector<8x128xi32>
    %652 = arith.select %649, %651, %644 : vector<8x128xi1>, vector<8x128xi32>
    %653 = vector.extract_strided_slice %466 {offsets = [0, 23], sizes = [8, 1], strides = [1, 1]} : vector<8x128xf32> to vector<8x1xf32>
    %654 = vector.broadcast %653 : vector<8x1xf32> to vector<8x128xf32>
    %655 = vector.broadcast %31 : vector<1x128xf32> to vector<8x128xf32>
    %656 = arith.addf %654, %655 : vector<8x128xf32>
    %657 = arith.cmpf ogt, %656, %650 : vector<8x128xf32>
    %658 = arith.select %657, %656, %650 : vector<8x128xi1>, vector<8x128xf32>
    %c23_i32_100 = arith.constant 23 : i32
    %659 = vector.broadcast %c23_i32_100 : i32 to vector<8x128xi32>
    %660 = arith.select %657, %659, %652 : vector<8x128xi1>, vector<8x128xi32>
    %661 = vector.extract_strided_slice %466 {offsets = [0, 24], sizes = [8, 1], strides = [1, 1]} : vector<8x128xf32> to vector<8x1xf32>
    %662 = vector.broadcast %661 : vector<8x1xf32> to vector<8x128xf32>
    %663 = vector.broadcast %32 : vector<1x128xf32> to vector<8x128xf32>
    %664 = arith.addf %662, %663 : vector<8x128xf32>
    %665 = arith.cmpf ogt, %664, %658 : vector<8x128xf32>
    %666 = arith.select %665, %664, %658 : vector<8x128xi1>, vector<8x128xf32>
    %c24_i32_101 = arith.constant 24 : i32
    %667 = vector.broadcast %c24_i32_101 : i32 to vector<8x128xi32>
    %668 = arith.select %665, %667, %660 : vector<8x128xi1>, vector<8x128xi32>
    %669 = vector.extract_strided_slice %466 {offsets = [0, 25], sizes = [8, 1], strides = [1, 1]} : vector<8x128xf32> to vector<8x1xf32>
    %670 = vector.broadcast %669 : vector<8x1xf32> to vector<8x128xf32>
    %671 = vector.broadcast %33 : vector<1x128xf32> to vector<8x128xf32>
    %672 = arith.addf %670, %671 : vector<8x128xf32>
    %673 = arith.cmpf ogt, %672, %666 : vector<8x128xf32>
    %674 = arith.select %673, %672, %666 : vector<8x128xi1>, vector<8x128xf32>
    %c25_i32_102 = arith.constant 25 : i32
    %675 = vector.broadcast %c25_i32_102 : i32 to vector<8x128xi32>
    %676 = arith.select %673, %675, %668 : vector<8x128xi1>, vector<8x128xi32>
    %c3_103 = arith.constant 3 : index
    %c0_104 = arith.constant 0 : index
    %c0_105 = arith.constant 0 : index
    %677 = vector.load %arg6[%c3_103, %c0_104, %c0_105] : memref<8x8x128xi32, #tpu.memory_space<vmem>>, vector<1x8x128xi32>
    %678 = vector.shape_cast %677 : vector<1x8x128xi32> to vector<8x128xi32>
    %679 = vector.shape_cast %676 : vector<8x128xi32> to vector<1x8x128xi32>
    tpu.vector_store %arg6[%c3_103, %c0_104, %c0_105], %679 {strides = array<i32>} : memref<8x8x128xi32, #tpu.memory_space<vmem>>, vector<1x8x128xi32>,
    %c3_106 = arith.constant 3 : index
    %c0_107 = arith.constant 0 : index
    %680 = tpu.strided_load %arg5[%c3_106, %c0_107] {strides = array<i32: 8, 1>} : memref<64x128xf32, #tpu.memory_space<vmem>>, vector<8x128xf32>
    %681 = arith.addf %680, %674 : vector<8x128xf32>
    %cst_108 = arith.constant -1.000000e+30 : f32
    %682 = vector.broadcast %cst_108 : f32 to vector<8x128xf32>
    %c0_i32_109 = arith.constant 0 : i32
    %683 = vector.broadcast %c0_i32_109 : i32 to vector<8x128xi32>
    %684 = vector.extract_strided_slice %681 {offsets = [0, 0], sizes = [8, 1], strides = [1, 1]} : vector<8x128xf32> to vector<8x1xf32>
    %685 = vector.broadcast %684 : vector<8x1xf32> to vector<8x128xf32>
    %686 = vector.broadcast %8 : vector<1x128xf32> to vector<8x128xf32>
    %687 = arith.addf %685, %686 : vector<8x128xf32>
    %688 = arith.cmpf ogt, %687, %682 : vector<8x128xf32>
    %689 = arith.select %688, %687, %682 : vector<8x128xi1>, vector<8x128xf32>
    %c0_i32_110 = arith.constant 0 : i32
    %690 = vector.broadcast %c0_i32_110 : i32 to vector<8x128xi32>
    %691 = arith.select %688, %690, %683 : vector<8x128xi1>, vector<8x128xi32>
    %692 = vector.extract_strided_slice %681 {offsets = [0, 1], sizes = [8, 1], strides = [1, 1]} : vector<8x128xf32> to vector<8x1xf32>
    %693 = vector.broadcast %692 : vector<8x1xf32> to vector<8x128xf32>
    %694 = vector.broadcast %9 : vector<1x128xf32> to vector<8x128xf32>
    %695 = arith.addf %693, %694 : vector<8x128xf32>
    %696 = arith.cmpf ogt, %695, %689 : vector<8x128xf32>
    %697 = arith.select %696, %695, %689 : vector<8x128xi1>, vector<8x128xf32>
    %c1_i32_111 = arith.constant 1 : i32
    %698 = vector.broadcast %c1_i32_111 : i32 to vector<8x128xi32>
    %699 = arith.select %696, %698, %691 : vector<8x128xi1>, vector<8x128xi32>
    %700 = vector.extract_strided_slice %681 {offsets = [0, 2], sizes = [8, 1], strides = [1, 1]} : vector<8x128xf32> to vector<8x1xf32>
    %701 = vector.broadcast %700 : vector<8x1xf32> to vector<8x128xf32>
    %702 = vector.broadcast %10 : vector<1x128xf32> to vector<8x128xf32>
    %703 = arith.addf %701, %702 : vector<8x128xf32>
    %704 = arith.cmpf ogt, %703, %697 : vector<8x128xf32>
    %705 = arith.select %704, %703, %697 : vector<8x128xi1>, vector<8x128xf32>
    %c2_i32_112 = arith.constant 2 : i32
    %706 = vector.broadcast %c2_i32_112 : i32 to vector<8x128xi32>
    %707 = arith.select %704, %706, %699 : vector<8x128xi1>, vector<8x128xi32>
    %708 = vector.extract_strided_slice %681 {offsets = [0, 3], sizes = [8, 1], strides = [1, 1]} : vector<8x128xf32> to vector<8x1xf32>
    %709 = vector.broadcast %708 : vector<8x1xf32> to vector<8x128xf32>
    %710 = vector.broadcast %11 : vector<1x128xf32> to vector<8x128xf32>
    %711 = arith.addf %709, %710 : vector<8x128xf32>
    %712 = arith.cmpf ogt, %711, %705 : vector<8x128xf32>
    %713 = arith.select %712, %711, %705 : vector<8x128xi1>, vector<8x128xf32>
    %c3_i32_113 = arith.constant 3 : i32
    %714 = vector.broadcast %c3_i32_113 : i32 to vector<8x128xi32>
    %715 = arith.select %712, %714, %707 : vector<8x128xi1>, vector<8x128xi32>
    %716 = vector.extract_strided_slice %681 {offsets = [0, 4], sizes = [8, 1], strides = [1, 1]} : vector<8x128xf32> to vector<8x1xf32>
    %717 = vector.broadcast %716 : vector<8x1xf32> to vector<8x128xf32>
    %718 = vector.broadcast %12 : vector<1x128xf32> to vector<8x128xf32>
    %719 = arith.addf %717, %718 : vector<8x128xf32>
    %720 = arith.cmpf ogt, %719, %713 : vector<8x128xf32>
    %721 = arith.select %720, %719, %713 : vector<8x128xi1>, vector<8x128xf32>
    %c4_i32_114 = arith.constant 4 : i32
    %722 = vector.broadcast %c4_i32_114 : i32 to vector<8x128xi32>
    %723 = arith.select %720, %722, %715 : vector<8x128xi1>, vector<8x128xi32>
    %724 = vector.extract_strided_slice %681 {offsets = [0, 5], sizes = [8, 1], strides = [1, 1]} : vector<8x128xf32> to vector<8x1xf32>
    %725 = vector.broadcast %724 : vector<8x1xf32> to vector<8x128xf32>
    %726 = vector.broadcast %13 : vector<1x128xf32> to vector<8x128xf32>
    %727 = arith.addf %725, %726 : vector<8x128xf32>
    %728 = arith.cmpf ogt, %727, %721 : vector<8x128xf32>
    %729 = arith.select %728, %727, %721 : vector<8x128xi1>, vector<8x128xf32>
    %c5_i32_115 = arith.constant 5 : i32
    %730 = vector.broadcast %c5_i32_115 : i32 to vector<8x128xi32>
    %731 = arith.select %728, %730, %723 : vector<8x128xi1>, vector<8x128xi32>
    %732 = vector.extract_strided_slice %681 {offsets = [0, 6], sizes = [8, 1], strides = [1, 1]} : vector<8x128xf32> to vector<8x1xf32>
    %733 = vector.broadcast %732 : vector<8x1xf32> to vector<8x128xf32>
    %734 = vector.broadcast %14 : vector<1x128xf32> to vector<8x128xf32>
    %735 = arith.addf %733, %734 : vector<8x128xf32>
    %736 = arith.cmpf ogt, %735, %729 : vector<8x128xf32>
    %737 = arith.select %736, %735, %729 : vector<8x128xi1>, vector<8x128xf32>
    %c6_i32_116 = arith.constant 6 : i32
    %738 = vector.broadcast %c6_i32_116 : i32 to vector<8x128xi32>
    %739 = arith.select %736, %738, %731 : vector<8x128xi1>, vector<8x128xi32>
    %740 = vector.extract_strided_slice %681 {offsets = [0, 7], sizes = [8, 1], strides = [1, 1]} : vector<8x128xf32> to vector<8x1xf32>
    %741 = vector.broadcast %740 : vector<8x1xf32> to vector<8x128xf32>
    %742 = vector.broadcast %15 : vector<1x128xf32> to vector<8x128xf32>
    %743 = arith.addf %741, %742 : vector<8x128xf32>
    %744 = arith.cmpf ogt, %743, %737 : vector<8x128xf32>
    %745 = arith.select %744, %743, %737 : vector<8x128xi1>, vector<8x128xf32>
    %c7_i32_117 = arith.constant 7 : i32
    %746 = vector.broadcast %c7_i32_117 : i32 to vector<8x128xi32>
    %747 = arith.select %744, %746, %739 : vector<8x128xi1>, vector<8x128xi32>
    %748 = vector.extract_strided_slice %681 {offsets = [0, 8], sizes = [8, 1], strides = [1, 1]} : vector<8x128xf32> to vector<8x1xf32>
    %749 = vector.broadcast %748 : vector<8x1xf32> to vector<8x128xf32>
    %750 = vector.broadcast %16 : vector<1x128xf32> to vector<8x128xf32>
    %751 = arith.addf %749, %750 : vector<8x128xf32>
    %752 = arith.cmpf ogt, %751, %745 : vector<8x128xf32>
    %753 = arith.select %752, %751, %745 : vector<8x128xi1>, vector<8x128xf32>
    %c8_i32_118 = arith.constant 8 : i32
    %754 = vector.broadcast %c8_i32_118 : i32 to vector<8x128xi32>
    %755 = arith.select %752, %754, %747 : vector<8x128xi1>, vector<8x128xi32>
    %756 = vector.extract_strided_slice %681 {offsets = [0, 9], sizes = [8, 1], strides = [1, 1]} : vector<8x128xf32> to vector<8x1xf32>
    %757 = vector.broadcast %756 : vector<8x1xf32> to vector<8x128xf32>
    %758 = vector.broadcast %17 : vector<1x128xf32> to vector<8x128xf32>
    %759 = arith.addf %757, %758 : vector<8x128xf32>
    %760 = arith.cmpf ogt, %759, %753 : vector<8x128xf32>
    %761 = arith.select %760, %759, %753 : vector<8x128xi1>, vector<8x128xf32>
    %c9_i32_119 = arith.constant 9 : i32
    %762 = vector.broadcast %c9_i32_119 : i32 to vector<8x128xi32>
    %763 = arith.select %760, %762, %755 : vector<8x128xi1>, vector<8x128xi32>
    %764 = vector.extract_strided_slice %681 {offsets = [0, 10], sizes = [8, 1], strides = [1, 1]} : vector<8x128xf32> to vector<8x1xf32>
    %765 = vector.broadcast %764 : vector<8x1xf32> to vector<8x128xf32>
    %766 = vector.broadcast %18 : vector<1x128xf32> to vector<8x128xf32>
    %767 = arith.addf %765, %766 : vector<8x128xf32>
    %768 = arith.cmpf ogt, %767, %761 : vector<8x128xf32>
    %769 = arith.select %768, %767, %761 : vector<8x128xi1>, vector<8x128xf32>
    %c10_i32_120 = arith.constant 10 : i32
    %770 = vector.broadcast %c10_i32_120 : i32 to vector<8x128xi32>
    %771 = arith.select %768, %770, %763 : vector<8x128xi1>, vector<8x128xi32>
    %772 = vector.extract_strided_slice %681 {offsets = [0, 11], sizes = [8, 1], strides = [1, 1]} : vector<8x128xf32> to vector<8x1xf32>
    %773 = vector.broadcast %772 : vector<8x1xf32> to vector<8x128xf32>
    %774 = vector.broadcast %19 : vector<1x128xf32> to vector<8x128xf32>
    %775 = arith.addf %773, %774 : vector<8x128xf32>
    %776 = arith.cmpf ogt, %775, %769 : vector<8x128xf32>
    %777 = arith.select %776, %775, %769 : vector<8x128xi1>, vector<8x128xf32>
    %c11_i32_121 = arith.constant 11 : i32
    %778 = vector.broadcast %c11_i32_121 : i32 to vector<8x128xi32>
    %779 = arith.select %776, %778, %771 : vector<8x128xi1>, vector<8x128xi32>
    %780 = vector.extract_strided_slice %681 {offsets = [0, 12], sizes = [8, 1], strides = [1, 1]} : vector<8x128xf32> to vector<8x1xf32>
    %781 = vector.broadcast %780 : vector<8x1xf32> to vector<8x128xf32>
    %782 = vector.broadcast %20 : vector<1x128xf32> to vector<8x128xf32>
    %783 = arith.addf %781, %782 : vector<8x128xf32>
    %784 = arith.cmpf ogt, %783, %777 : vector<8x128xf32>
    %785 = arith.select %784, %783, %777 : vector<8x128xi1>, vector<8x128xf32>
    %c12_i32_122 = arith.constant 12 : i32
    %786 = vector.broadcast %c12_i32_122 : i32 to vector<8x128xi32>
    %787 = arith.select %784, %786, %779 : vector<8x128xi1>, vector<8x128xi32>
    %788 = vector.extract_strided_slice %681 {offsets = [0, 13], sizes = [8, 1], strides = [1, 1]} : vector<8x128xf32> to vector<8x1xf32>
    %789 = vector.broadcast %788 : vector<8x1xf32> to vector<8x128xf32>
    %790 = vector.broadcast %21 : vector<1x128xf32> to vector<8x128xf32>
    %791 = arith.addf %789, %790 : vector<8x128xf32>
    %792 = arith.cmpf ogt, %791, %785 : vector<8x128xf32>
    %793 = arith.select %792, %791, %785 : vector<8x128xi1>, vector<8x128xf32>
    %c13_i32_123 = arith.constant 13 : i32
    %794 = vector.broadcast %c13_i32_123 : i32 to vector<8x128xi32>
    %795 = arith.select %792, %794, %787 : vector<8x128xi1>, vector<8x128xi32>
    %796 = vector.extract_strided_slice %681 {offsets = [0, 14], sizes = [8, 1], strides = [1, 1]} : vector<8x128xf32> to vector<8x1xf32>
    %797 = vector.broadcast %796 : vector<8x1xf32> to vector<8x128xf32>
    %798 = vector.broadcast %22 : vector<1x128xf32> to vector<8x128xf32>
    %799 = arith.addf %797, %798 : vector<8x128xf32>
    %800 = arith.cmpf ogt, %799, %793 : vector<8x128xf32>
    %801 = arith.select %800, %799, %793 : vector<8x128xi1>, vector<8x128xf32>
    %c14_i32_124 = arith.constant 14 : i32
    %802 = vector.broadcast %c14_i32_124 : i32 to vector<8x128xi32>
    %803 = arith.select %800, %802, %795 : vector<8x128xi1>, vector<8x128xi32>
    %804 = vector.extract_strided_slice %681 {offsets = [0, 15], sizes = [8, 1], strides = [1, 1]} : vector<8x128xf32> to vector<8x1xf32>
    %805 = vector.broadcast %804 : vector<8x1xf32> to vector<8x128xf32>
    %806 = vector.broadcast %23 : vector<1x128xf32> to vector<8x128xf32>
    %807 = arith.addf %805, %806 : vector<8x128xf32>
    %808 = arith.cmpf ogt, %807, %801 : vector<8x128xf32>
    %809 = arith.select %808, %807, %801 : vector<8x128xi1>, vector<8x128xf32>
    %c15_i32_125 = arith.constant 15 : i32
    %810 = vector.broadcast %c15_i32_125 : i32 to vector<8x128xi32>
    %811 = arith.select %808, %810, %803 : vector<8x128xi1>, vector<8x128xi32>
    %812 = vector.extract_strided_slice %681 {offsets = [0, 16], sizes = [8, 1], strides = [1, 1]} : vector<8x128xf32> to vector<8x1xf32>
    %813 = vector.broadcast %812 : vector<8x1xf32> to vector<8x128xf32>
    %814 = vector.broadcast %24 : vector<1x128xf32> to vector<8x128xf32>
    %815 = arith.addf %813, %814 : vector<8x128xf32>
    %816 = arith.cmpf ogt, %815, %809 : vector<8x128xf32>
    %817 = arith.select %816, %815, %809 : vector<8x128xi1>, vector<8x128xf32>
    %c16_i32_126 = arith.constant 16 : i32
    %818 = vector.broadcast %c16_i32_126 : i32 to vector<8x128xi32>
    %819 = arith.select %816, %818, %811 : vector<8x128xi1>, vector<8x128xi32>
    %820 = vector.extract_strided_slice %681 {offsets = [0, 17], sizes = [8, 1], strides = [1, 1]} : vector<8x128xf32> to vector<8x1xf32>
    %821 = vector.broadcast %820 : vector<8x1xf32> to vector<8x128xf32>
    %822 = vector.broadcast %25 : vector<1x128xf32> to vector<8x128xf32>
    %823 = arith.addf %821, %822 : vector<8x128xf32>
    %824 = arith.cmpf ogt, %823, %817 : vector<8x128xf32>
    %825 = arith.select %824, %823, %817 : vector<8x128xi1>, vector<8x128xf32>
    %c17_i32_127 = arith.constant 17 : i32
    %826 = vector.broadcast %c17_i32_127 : i32 to vector<8x128xi32>
    %827 = arith.select %824, %826, %819 : vector<8x128xi1>, vector<8x128xi32>
    %828 = vector.extract_strided_slice %681 {offsets = [0, 18], sizes = [8, 1], strides = [1, 1]} : vector<8x128xf32> to vector<8x1xf32>
    %829 = vector.broadcast %828 : vector<8x1xf32> to vector<8x128xf32>
    %830 = vector.broadcast %26 : vector<1x128xf32> to vector<8x128xf32>
    %831 = arith.addf %829, %830 : vector<8x128xf32>
    %832 = arith.cmpf ogt, %831, %825 : vector<8x128xf32>
    %833 = arith.select %832, %831, %825 : vector<8x128xi1>, vector<8x128xf32>
    %c18_i32_128 = arith.constant 18 : i32
    %834 = vector.broadcast %c18_i32_128 : i32 to vector<8x128xi32>
    %835 = arith.select %832, %834, %827 : vector<8x128xi1>, vector<8x128xi32>
    %836 = vector.extract_strided_slice %681 {offsets = [0, 19], sizes = [8, 1], strides = [1, 1]} : vector<8x128xf32> to vector<8x1xf32>
    %837 = vector.broadcast %836 : vector<8x1xf32> to vector<8x128xf32>
    %838 = vector.broadcast %27 : vector<1x128xf32> to vector<8x128xf32>
    %839 = arith.addf %837, %838 : vector<8x128xf32>
    %840 = arith.cmpf ogt, %839, %833 : vector<8x128xf32>
    %841 = arith.select %840, %839, %833 : vector<8x128xi1>, vector<8x128xf32>
    %c19_i32_129 = arith.constant 19 : i32
    %842 = vector.broadcast %c19_i32_129 : i32 to vector<8x128xi32>
    %843 = arith.select %840, %842, %835 : vector<8x128xi1>, vector<8x128xi32>
    %844 = vector.extract_strided_slice %681 {offsets = [0, 20], sizes = [8, 1], strides = [1, 1]} : vector<8x128xf32> to vector<8x1xf32>
    %845 = vector.broadcast %844 : vector<8x1xf32> to vector<8x128xf32>
    %846 = vector.broadcast %28 : vector<1x128xf32> to vector<8x128xf32>
    %847 = arith.addf %845, %846 : vector<8x128xf32>
    %848 = arith.cmpf ogt, %847, %841 : vector<8x128xf32>
    %849 = arith.select %848, %847, %841 : vector<8x128xi1>, vector<8x128xf32>
    %c20_i32_130 = arith.constant 20 : i32
    %850 = vector.broadcast %c20_i32_130 : i32 to vector<8x128xi32>
    %851 = arith.select %848, %850, %843 : vector<8x128xi1>, vector<8x128xi32>
    %852 = vector.extract_strided_slice %681 {offsets = [0, 21], sizes = [8, 1], strides = [1, 1]} : vector<8x128xf32> to vector<8x1xf32>
    %853 = vector.broadcast %852 : vector<8x1xf32> to vector<8x128xf32>
    %854 = vector.broadcast %29 : vector<1x128xf32> to vector<8x128xf32>
    %855 = arith.addf %853, %854 : vector<8x128xf32>
    %856 = arith.cmpf ogt, %855, %849 : vector<8x128xf32>
    %857 = arith.select %856, %855, %849 : vector<8x128xi1>, vector<8x128xf32>
    %c21_i32_131 = arith.constant 21 : i32
    %858 = vector.broadcast %c21_i32_131 : i32 to vector<8x128xi32>
    %859 = arith.select %856, %858, %851 : vector<8x128xi1>, vector<8x128xi32>
    %860 = vector.extract_strided_slice %681 {offsets = [0, 22], sizes = [8, 1], strides = [1, 1]} : vector<8x128xf32> to vector<8x1xf32>
    %861 = vector.broadcast %860 : vector<8x1xf32> to vector<8x128xf32>
    %862 = vector.broadcast %30 : vector<1x128xf32> to vector<8x128xf32>
    %863 = arith.addf %861, %862 : vector<8x128xf32>
    %864 = arith.cmpf ogt, %863, %857 : vector<8x128xf32>
    %865 = arith.select %864, %863, %857 : vector<8x128xi1>, vector<8x128xf32>
    %c22_i32_132 = arith.constant 22 : i32
    %866 = vector.broadcast %c22_i32_132 : i32 to vector<8x128xi32>
    %867 = arith.select %864, %866, %859 : vector<8x128xi1>, vector<8x128xi32>
    %868 = vector.extract_strided_slice %681 {offsets = [0, 23], sizes = [8, 1], strides = [1, 1]} : vector<8x128xf32> to vector<8x1xf32>
    %869 = vector.broadcast %868 : vector<8x1xf32> to vector<8x128xf32>
    %870 = vector.broadcast %31 : vector<1x128xf32> to vector<8x128xf32>
    %871 = arith.addf %869, %870 : vector<8x128xf32>
    %872 = arith.cmpf ogt, %871, %865 : vector<8x128xf32>
    %873 = arith.select %872, %871, %865 : vector<8x128xi1>, vector<8x128xf32>
    %c23_i32_133 = arith.constant 23 : i32
    %874 = vector.broadcast %c23_i32_133 : i32 to vector<8x128xi32>
    %875 = arith.select %872, %874, %867 : vector<8x128xi1>, vector<8x128xi32>
    %876 = vector.extract_strided_slice %681 {offsets = [0, 24], sizes = [8, 1], strides = [1, 1]} : vector<8x128xf32> to vector<8x1xf32>
    %877 = vector.broadcast %876 : vector<8x1xf32> to vector<8x128xf32>
    %878 = vector.broadcast %32 : vector<1x128xf32> to vector<8x128xf32>
    %879 = arith.addf %877, %878 : vector<8x128xf32>
    %880 = arith.cmpf ogt, %879, %873 : vector<8x128xf32>
    %881 = arith.select %880, %879, %873 : vector<8x128xi1>, vector<8x128xf32>
    %c24_i32_134 = arith.constant 24 : i32
    %882 = vector.broadcast %c24_i32_134 : i32 to vector<8x128xi32>
    %883 = arith.select %880, %882, %875 : vector<8x128xi1>, vector<8x128xi32>
    %884 = vector.extract_strided_slice %681 {offsets = [0, 25], sizes = [8, 1], strides = [1, 1]} : vector<8x128xf32> to vector<8x1xf32>
    %885 = vector.broadcast %884 : vector<8x1xf32> to vector<8x128xf32>
    %886 = vector.broadcast %33 : vector<1x128xf32> to vector<8x128xf32>
    %887 = arith.addf %885, %886 : vector<8x128xf32>
    %888 = arith.cmpf ogt, %887, %881 : vector<8x128xf32>
    %889 = arith.select %888, %887, %881 : vector<8x128xi1>, vector<8x128xf32>
    %c25_i32_135 = arith.constant 25 : i32
    %890 = vector.broadcast %c25_i32_135 : i32 to vector<8x128xi32>
    %891 = arith.select %888, %890, %883 : vector<8x128xi1>, vector<8x128xi32>
    %c4_136 = arith.constant 4 : index
    %c0_137 = arith.constant 0 : index
    %c0_138 = arith.constant 0 : index
    %892 = vector.load %arg6[%c4_136, %c0_137, %c0_138] : memref<8x8x128xi32, #tpu.memory_space<vmem>>, vector<1x8x128xi32>
    %893 = vector.shape_cast %892 : vector<1x8x128xi32> to vector<8x128xi32>
    %894 = vector.shape_cast %891 : vector<8x128xi32> to vector<1x8x128xi32>
    tpu.vector_store %arg6[%c4_136, %c0_137, %c0_138], %894 {strides = array<i32>} : memref<8x8x128xi32, #tpu.memory_space<vmem>>, vector<1x8x128xi32>,
    %c4_139 = arith.constant 4 : index
    %c0_140 = arith.constant 0 : index
    %895 = tpu.strided_load %arg5[%c4_139, %c0_140] {strides = array<i32: 8, 1>} : memref<64x128xf32, #tpu.memory_space<vmem>>, vector<8x128xf32>
    %896 = arith.addf %895, %889 : vector<8x128xf32>
    %cst_141 = arith.constant -1.000000e+30 : f32
    %897 = vector.broadcast %cst_141 : f32 to vector<8x128xf32>
    %c0_i32_142 = arith.constant 0 : i32
    %898 = vector.broadcast %c0_i32_142 : i32 to vector<8x128xi32>
    %899 = vector.extract_strided_slice %896 {offsets = [0, 0], sizes = [8, 1], strides = [1, 1]} : vector<8x128xf32> to vector<8x1xf32>
    %900 = vector.broadcast %899 : vector<8x1xf32> to vector<8x128xf32>
    %901 = vector.broadcast %8 : vector<1x128xf32> to vector<8x128xf32>
    %902 = arith.addf %900, %901 : vector<8x128xf32>
    %903 = arith.cmpf ogt, %902, %897 : vector<8x128xf32>
    %904 = arith.select %903, %902, %897 : vector<8x128xi1>, vector<8x128xf32>
    %c0_i32_143 = arith.constant 0 : i32
    %905 = vector.broadcast %c0_i32_143 : i32 to vector<8x128xi32>
    %906 = arith.select %903, %905, %898 : vector<8x128xi1>, vector<8x128xi32>
    %907 = vector.extract_strided_slice %896 {offsets = [0, 1], sizes = [8, 1], strides = [1, 1]} : vector<8x128xf32> to vector<8x1xf32>
    %908 = vector.broadcast %907 : vector<8x1xf32> to vector<8x128xf32>
    %909 = vector.broadcast %9 : vector<1x128xf32> to vector<8x128xf32>
    %910 = arith.addf %908, %909 : vector<8x128xf32>
    %911 = arith.cmpf ogt, %910, %904 : vector<8x128xf32>
    %912 = arith.select %911, %910, %904 : vector<8x128xi1>, vector<8x128xf32>
    %c1_i32_144 = arith.constant 1 : i32
    %913 = vector.broadcast %c1_i32_144 : i32 to vector<8x128xi32>
    %914 = arith.select %911, %913, %906 : vector<8x128xi1>, vector<8x128xi32>
    %915 = vector.extract_strided_slice %896 {offsets = [0, 2], sizes = [8, 1], strides = [1, 1]} : vector<8x128xf32> to vector<8x1xf32>
    %916 = vector.broadcast %915 : vector<8x1xf32> to vector<8x128xf32>
    %917 = vector.broadcast %10 : vector<1x128xf32> to vector<8x128xf32>
    %918 = arith.addf %916, %917 : vector<8x128xf32>
    %919 = arith.cmpf ogt, %918, %912 : vector<8x128xf32>
    %920 = arith.select %919, %918, %912 : vector<8x128xi1>, vector<8x128xf32>
    %c2_i32_145 = arith.constant 2 : i32
    %921 = vector.broadcast %c2_i32_145 : i32 to vector<8x128xi32>
    %922 = arith.select %919, %921, %914 : vector<8x128xi1>, vector<8x128xi32>
    %923 = vector.extract_strided_slice %896 {offsets = [0, 3], sizes = [8, 1], strides = [1, 1]} : vector<8x128xf32> to vector<8x1xf32>
    %924 = vector.broadcast %923 : vector<8x1xf32> to vector<8x128xf32>
    %925 = vector.broadcast %11 : vector<1x128xf32> to vector<8x128xf32>
    %926 = arith.addf %924, %925 : vector<8x128xf32>
    %927 = arith.cmpf ogt, %926, %920 : vector<8x128xf32>
    %928 = arith.select %927, %926, %920 : vector<8x128xi1>, vector<8x128xf32>
    %c3_i32_146 = arith.constant 3 : i32
    %929 = vector.broadcast %c3_i32_146 : i32 to vector<8x128xi32>
    %930 = arith.select %927, %929, %922 : vector<8x128xi1>, vector<8x128xi32>
    %931 = vector.extract_strided_slice %896 {offsets = [0, 4], sizes = [8, 1], strides = [1, 1]} : vector<8x128xf32> to vector<8x1xf32>
    %932 = vector.broadcast %931 : vector<8x1xf32> to vector<8x128xf32>
    %933 = vector.broadcast %12 : vector<1x128xf32> to vector<8x128xf32>
    %934 = arith.addf %932, %933 : vector<8x128xf32>
    %935 = arith.cmpf ogt, %934, %928 : vector<8x128xf32>
    %936 = arith.select %935, %934, %928 : vector<8x128xi1>, vector<8x128xf32>
    %c4_i32_147 = arith.constant 4 : i32
    %937 = vector.broadcast %c4_i32_147 : i32 to vector<8x128xi32>
    %938 = arith.select %935, %937, %930 : vector<8x128xi1>, vector<8x128xi32>
    %939 = vector.extract_strided_slice %896 {offsets = [0, 5], sizes = [8, 1], strides = [1, 1]} : vector<8x128xf32> to vector<8x1xf32>
    %940 = vector.broadcast %939 : vector<8x1xf32> to vector<8x128xf32>
    %941 = vector.broadcast %13 : vector<1x128xf32> to vector<8x128xf32>
    %942 = arith.addf %940, %941 : vector<8x128xf32>
    %943 = arith.cmpf ogt, %942, %936 : vector<8x128xf32>
    %944 = arith.select %943, %942, %936 : vector<8x128xi1>, vector<8x128xf32>
    %c5_i32_148 = arith.constant 5 : i32
    %945 = vector.broadcast %c5_i32_148 : i32 to vector<8x128xi32>
    %946 = arith.select %943, %945, %938 : vector<8x128xi1>, vector<8x128xi32>
    %947 = vector.extract_strided_slice %896 {offsets = [0, 6], sizes = [8, 1], strides = [1, 1]} : vector<8x128xf32> to vector<8x1xf32>
    %948 = vector.broadcast %947 : vector<8x1xf32> to vector<8x128xf32>
    %949 = vector.broadcast %14 : vector<1x128xf32> to vector<8x128xf32>
    %950 = arith.addf %948, %949 : vector<8x128xf32>
    %951 = arith.cmpf ogt, %950, %944 : vector<8x128xf32>
    %952 = arith.select %951, %950, %944 : vector<8x128xi1>, vector<8x128xf32>
    %c6_i32_149 = arith.constant 6 : i32
    %953 = vector.broadcast %c6_i32_149 : i32 to vector<8x128xi32>
    %954 = arith.select %951, %953, %946 : vector<8x128xi1>, vector<8x128xi32>
    %955 = vector.extract_strided_slice %896 {offsets = [0, 7], sizes = [8, 1], strides = [1, 1]} : vector<8x128xf32> to vector<8x1xf32>
    %956 = vector.broadcast %955 : vector<8x1xf32> to vector<8x128xf32>
    %957 = vector.broadcast %15 : vector<1x128xf32> to vector<8x128xf32>
    %958 = arith.addf %956, %957 : vector<8x128xf32>
    %959 = arith.cmpf ogt, %958, %952 : vector<8x128xf32>
    %960 = arith.select %959, %958, %952 : vector<8x128xi1>, vector<8x128xf32>
    %c7_i32_150 = arith.constant 7 : i32
    %961 = vector.broadcast %c7_i32_150 : i32 to vector<8x128xi32>
    %962 = arith.select %959, %961, %954 : vector<8x128xi1>, vector<8x128xi32>
    %963 = vector.extract_strided_slice %896 {offsets = [0, 8], sizes = [8, 1], strides = [1, 1]} : vector<8x128xf32> to vector<8x1xf32>
    %964 = vector.broadcast %963 : vector<8x1xf32> to vector<8x128xf32>
    %965 = vector.broadcast %16 : vector<1x128xf32> to vector<8x128xf32>
    %966 = arith.addf %964, %965 : vector<8x128xf32>
    %967 = arith.cmpf ogt, %966, %960 : vector<8x128xf32>
    %968 = arith.select %967, %966, %960 : vector<8x128xi1>, vector<8x128xf32>
    %c8_i32_151 = arith.constant 8 : i32
    %969 = vector.broadcast %c8_i32_151 : i32 to vector<8x128xi32>
    %970 = arith.select %967, %969, %962 : vector<8x128xi1>, vector<8x128xi32>
    %971 = vector.extract_strided_slice %896 {offsets = [0, 9], sizes = [8, 1], strides = [1, 1]} : vector<8x128xf32> to vector<8x1xf32>
    %972 = vector.broadcast %971 : vector<8x1xf32> to vector<8x128xf32>
    %973 = vector.broadcast %17 : vector<1x128xf32> to vector<8x128xf32>
    %974 = arith.addf %972, %973 : vector<8x128xf32>
    %975 = arith.cmpf ogt, %974, %968 : vector<8x128xf32>
    %976 = arith.select %975, %974, %968 : vector<8x128xi1>, vector<8x128xf32>
    %c9_i32_152 = arith.constant 9 : i32
    %977 = vector.broadcast %c9_i32_152 : i32 to vector<8x128xi32>
    %978 = arith.select %975, %977, %970 : vector<8x128xi1>, vector<8x128xi32>
    %979 = vector.extract_strided_slice %896 {offsets = [0, 10], sizes = [8, 1], strides = [1, 1]} : vector<8x128xf32> to vector<8x1xf32>
    %980 = vector.broadcast %979 : vector<8x1xf32> to vector<8x128xf32>
    %981 = vector.broadcast %18 : vector<1x128xf32> to vector<8x128xf32>
    %982 = arith.addf %980, %981 : vector<8x128xf32>
    %983 = arith.cmpf ogt, %982, %976 : vector<8x128xf32>
    %984 = arith.select %983, %982, %976 : vector<8x128xi1>, vector<8x128xf32>
    %c10_i32_153 = arith.constant 10 : i32
    %985 = vector.broadcast %c10_i32_153 : i32 to vector<8x128xi32>
    %986 = arith.select %983, %985, %978 : vector<8x128xi1>, vector<8x128xi32>
    %987 = vector.extract_strided_slice %896 {offsets = [0, 11], sizes = [8, 1], strides = [1, 1]} : vector<8x128xf32> to vector<8x1xf32>
    %988 = vector.broadcast %987 : vector<8x1xf32> to vector<8x128xf32>
    %989 = vector.broadcast %19 : vector<1x128xf32> to vector<8x128xf32>
    %990 = arith.addf %988, %989 : vector<8x128xf32>
    %991 = arith.cmpf ogt, %990, %984 : vector<8x128xf32>
    %992 = arith.select %991, %990, %984 : vector<8x128xi1>, vector<8x128xf32>
    %c11_i32_154 = arith.constant 11 : i32
    %993 = vector.broadcast %c11_i32_154 : i32 to vector<8x128xi32>
    %994 = arith.select %991, %993, %986 : vector<8x128xi1>, vector<8x128xi32>
    %995 = vector.extract_strided_slice %896 {offsets = [0, 12], sizes = [8, 1], strides = [1, 1]} : vector<8x128xf32> to vector<8x1xf32>
    %996 = vector.broadcast %995 : vector<8x1xf32> to vector<8x128xf32>
    %997 = vector.broadcast %20 : vector<1x128xf32> to vector<8x128xf32>
    %998 = arith.addf %996, %997 : vector<8x128xf32>
    %999 = arith.cmpf ogt, %998, %992 : vector<8x128xf32>
    %1000 = arith.select %999, %998, %992 : vector<8x128xi1>, vector<8x128xf32>
    %c12_i32_155 = arith.constant 12 : i32
    %1001 = vector.broadcast %c12_i32_155 : i32 to vector<8x128xi32>
    %1002 = arith.select %999, %1001, %994 : vector<8x128xi1>, vector<8x128xi32>
    %1003 = vector.extract_strided_slice %896 {offsets = [0, 13], sizes = [8, 1], strides = [1, 1]} : vector<8x128xf32> to vector<8x1xf32>
    %1004 = vector.broadcast %1003 : vector<8x1xf32> to vector<8x128xf32>
    %1005 = vector.broadcast %21 : vector<1x128xf32> to vector<8x128xf32>
    %1006 = arith.addf %1004, %1005 : vector<8x128xf32>
    %1007 = arith.cmpf ogt, %1006, %1000 : vector<8x128xf32>
    %1008 = arith.select %1007, %1006, %1000 : vector<8x128xi1>, vector<8x128xf32>
    %c13_i32_156 = arith.constant 13 : i32
    %1009 = vector.broadcast %c13_i32_156 : i32 to vector<8x128xi32>
    %1010 = arith.select %1007, %1009, %1002 : vector<8x128xi1>, vector<8x128xi32>
    %1011 = vector.extract_strided_slice %896 {offsets = [0, 14], sizes = [8, 1], strides = [1, 1]} : vector<8x128xf32> to vector<8x1xf32>
    %1012 = vector.broadcast %1011 : vector<8x1xf32> to vector<8x128xf32>
    %1013 = vector.broadcast %22 : vector<1x128xf32> to vector<8x128xf32>
    %1014 = arith.addf %1012, %1013 : vector<8x128xf32>
    %1015 = arith.cmpf ogt, %1014, %1008 : vector<8x128xf32>
    %1016 = arith.select %1015, %1014, %1008 : vector<8x128xi1>, vector<8x128xf32>
    %c14_i32_157 = arith.constant 14 : i32
    %1017 = vector.broadcast %c14_i32_157 : i32 to vector<8x128xi32>
    %1018 = arith.select %1015, %1017, %1010 : vector<8x128xi1>, vector<8x128xi32>
    %1019 = vector.extract_strided_slice %896 {offsets = [0, 15], sizes = [8, 1], strides = [1, 1]} : vector<8x128xf32> to vector<8x1xf32>
    %1020 = vector.broadcast %1019 : vector<8x1xf32> to vector<8x128xf32>
    %1021 = vector.broadcast %23 : vector<1x128xf32> to vector<8x128xf32>
    %1022 = arith.addf %1020, %1021 : vector<8x128xf32>
    %1023 = arith.cmpf ogt, %1022, %1016 : vector<8x128xf32>
    %1024 = arith.select %1023, %1022, %1016 : vector<8x128xi1>, vector<8x128xf32>
    %c15_i32_158 = arith.constant 15 : i32
    %1025 = vector.broadcast %c15_i32_158 : i32 to vector<8x128xi32>
    %1026 = arith.select %1023, %1025, %1018 : vector<8x128xi1>, vector<8x128xi32>
    %1027 = vector.extract_strided_slice %896 {offsets = [0, 16], sizes = [8, 1], strides = [1, 1]} : vector<8x128xf32> to vector<8x1xf32>
    %1028 = vector.broadcast %1027 : vector<8x1xf32> to vector<8x128xf32>
    %1029 = vector.broadcast %24 : vector<1x128xf32> to vector<8x128xf32>
    %1030 = arith.addf %1028, %1029 : vector<8x128xf32>
    %1031 = arith.cmpf ogt, %1030, %1024 : vector<8x128xf32>
    %1032 = arith.select %1031, %1030, %1024 : vector<8x128xi1>, vector<8x128xf32>
    %c16_i32_159 = arith.constant 16 : i32
    %1033 = vector.broadcast %c16_i32_159 : i32 to vector<8x128xi32>
    %1034 = arith.select %1031, %1033, %1026 : vector<8x128xi1>, vector<8x128xi32>
    %1035 = vector.extract_strided_slice %896 {offsets = [0, 17], sizes = [8, 1], strides = [1, 1]} : vector<8x128xf32> to vector<8x1xf32>
    %1036 = vector.broadcast %1035 : vector<8x1xf32> to vector<8x128xf32>
    %1037 = vector.broadcast %25 : vector<1x128xf32> to vector<8x128xf32>
    %1038 = arith.addf %1036, %1037 : vector<8x128xf32>
    %1039 = arith.cmpf ogt, %1038, %1032 : vector<8x128xf32>
    %1040 = arith.select %1039, %1038, %1032 : vector<8x128xi1>, vector<8x128xf32>
    %c17_i32_160 = arith.constant 17 : i32
    %1041 = vector.broadcast %c17_i32_160 : i32 to vector<8x128xi32>
    %1042 = arith.select %1039, %1041, %1034 : vector<8x128xi1>, vector<8x128xi32>
    %1043 = vector.extract_strided_slice %896 {offsets = [0, 18], sizes = [8, 1], strides = [1, 1]} : vector<8x128xf32> to vector<8x1xf32>
    %1044 = vector.broadcast %1043 : vector<8x1xf32> to vector<8x128xf32>
    %1045 = vector.broadcast %26 : vector<1x128xf32> to vector<8x128xf32>
    %1046 = arith.addf %1044, %1045 : vector<8x128xf32>
    %1047 = arith.cmpf ogt, %1046, %1040 : vector<8x128xf32>
    %1048 = arith.select %1047, %1046, %1040 : vector<8x128xi1>, vector<8x128xf32>
    %c18_i32_161 = arith.constant 18 : i32
    %1049 = vector.broadcast %c18_i32_161 : i32 to vector<8x128xi32>
    %1050 = arith.select %1047, %1049, %1042 : vector<8x128xi1>, vector<8x128xi32>
    %1051 = vector.extract_strided_slice %896 {offsets = [0, 19], sizes = [8, 1], strides = [1, 1]} : vector<8x128xf32> to vector<8x1xf32>
    %1052 = vector.broadcast %1051 : vector<8x1xf32> to vector<8x128xf32>
    %1053 = vector.broadcast %27 : vector<1x128xf32> to vector<8x128xf32>
    %1054 = arith.addf %1052, %1053 : vector<8x128xf32>
    %1055 = arith.cmpf ogt, %1054, %1048 : vector<8x128xf32>
    %1056 = arith.select %1055, %1054, %1048 : vector<8x128xi1>, vector<8x128xf32>
    %c19_i32_162 = arith.constant 19 : i32
    %1057 = vector.broadcast %c19_i32_162 : i32 to vector<8x128xi32>
    %1058 = arith.select %1055, %1057, %1050 : vector<8x128xi1>, vector<8x128xi32>
    %1059 = vector.extract_strided_slice %896 {offsets = [0, 20], sizes = [8, 1], strides = [1, 1]} : vector<8x128xf32> to vector<8x1xf32>
    %1060 = vector.broadcast %1059 : vector<8x1xf32> to vector<8x128xf32>
    %1061 = vector.broadcast %28 : vector<1x128xf32> to vector<8x128xf32>
    %1062 = arith.addf %1060, %1061 : vector<8x128xf32>
    %1063 = arith.cmpf ogt, %1062, %1056 : vector<8x128xf32>
    %1064 = arith.select %1063, %1062, %1056 : vector<8x128xi1>, vector<8x128xf32>
    %c20_i32_163 = arith.constant 20 : i32
    %1065 = vector.broadcast %c20_i32_163 : i32 to vector<8x128xi32>
    %1066 = arith.select %1063, %1065, %1058 : vector<8x128xi1>, vector<8x128xi32>
    %1067 = vector.extract_strided_slice %896 {offsets = [0, 21], sizes = [8, 1], strides = [1, 1]} : vector<8x128xf32> to vector<8x1xf32>
    %1068 = vector.broadcast %1067 : vector<8x1xf32> to vector<8x128xf32>
    %1069 = vector.broadcast %29 : vector<1x128xf32> to vector<8x128xf32>
    %1070 = arith.addf %1068, %1069 : vector<8x128xf32>
    %1071 = arith.cmpf ogt, %1070, %1064 : vector<8x128xf32>
    %1072 = arith.select %1071, %1070, %1064 : vector<8x128xi1>, vector<8x128xf32>
    %c21_i32_164 = arith.constant 21 : i32
    %1073 = vector.broadcast %c21_i32_164 : i32 to vector<8x128xi32>
    %1074 = arith.select %1071, %1073, %1066 : vector<8x128xi1>, vector<8x128xi32>
    %1075 = vector.extract_strided_slice %896 {offsets = [0, 22], sizes = [8, 1], strides = [1, 1]} : vector<8x128xf32> to vector<8x1xf32>
    %1076 = vector.broadcast %1075 : vector<8x1xf32> to vector<8x128xf32>
    %1077 = vector.broadcast %30 : vector<1x128xf32> to vector<8x128xf32>
    %1078 = arith.addf %1076, %1077 : vector<8x128xf32>
    %1079 = arith.cmpf ogt, %1078, %1072 : vector<8x128xf32>
    %1080 = arith.select %1079, %1078, %1072 : vector<8x128xi1>, vector<8x128xf32>
    %c22_i32_165 = arith.constant 22 : i32
    %1081 = vector.broadcast %c22_i32_165 : i32 to vector<8x128xi32>
    %1082 = arith.select %1079, %1081, %1074 : vector<8x128xi1>, vector<8x128xi32>
    %1083 = vector.extract_strided_slice %896 {offsets = [0, 23], sizes = [8, 1], strides = [1, 1]} : vector<8x128xf32> to vector<8x1xf32>
    %1084 = vector.broadcast %1083 : vector<8x1xf32> to vector<8x128xf32>
    %1085 = vector.broadcast %31 : vector<1x128xf32> to vector<8x128xf32>
    %1086 = arith.addf %1084, %1085 : vector<8x128xf32>
    %1087 = arith.cmpf ogt, %1086, %1080 : vector<8x128xf32>
    %1088 = arith.select %1087, %1086, %1080 : vector<8x128xi1>, vector<8x128xf32>
    %c23_i32_166 = arith.constant 23 : i32
    %1089 = vector.broadcast %c23_i32_166 : i32 to vector<8x128xi32>
    %1090 = arith.select %1087, %1089, %1082 : vector<8x128xi1>, vector<8x128xi32>
    %1091 = vector.extract_strided_slice %896 {offsets = [0, 24], sizes = [8, 1], strides = [1, 1]} : vector<8x128xf32> to vector<8x1xf32>
    %1092 = vector.broadcast %1091 : vector<8x1xf32> to vector<8x128xf32>
    %1093 = vector.broadcast %32 : vector<1x128xf32> to vector<8x128xf32>
    %1094 = arith.addf %1092, %1093 : vector<8x128xf32>
    %1095 = arith.cmpf ogt, %1094, %1088 : vector<8x128xf32>
    %1096 = arith.select %1095, %1094, %1088 : vector<8x128xi1>, vector<8x128xf32>
    %c24_i32_167 = arith.constant 24 : i32
    %1097 = vector.broadcast %c24_i32_167 : i32 to vector<8x128xi32>
    %1098 = arith.select %1095, %1097, %1090 : vector<8x128xi1>, vector<8x128xi32>
    %1099 = vector.extract_strided_slice %896 {offsets = [0, 25], sizes = [8, 1], strides = [1, 1]} : vector<8x128xf32> to vector<8x1xf32>
    %1100 = vector.broadcast %1099 : vector<8x1xf32> to vector<8x128xf32>
    %1101 = vector.broadcast %33 : vector<1x128xf32> to vector<8x128xf32>
    %1102 = arith.addf %1100, %1101 : vector<8x128xf32>
    %1103 = arith.cmpf ogt, %1102, %1096 : vector<8x128xf32>
    %1104 = arith.select %1103, %1102, %1096 : vector<8x128xi1>, vector<8x128xf32>
    %c25_i32_168 = arith.constant 25 : i32
    %1105 = vector.broadcast %c25_i32_168 : i32 to vector<8x128xi32>
    %1106 = arith.select %1103, %1105, %1098 : vector<8x128xi1>, vector<8x128xi32>
    %c5_169 = arith.constant 5 : index
    %c0_170 = arith.constant 0 : index
    %c0_171 = arith.constant 0 : index
    %1107 = vector.load %arg6[%c5_169, %c0_170, %c0_171] : memref<8x8x128xi32, #tpu.memory_space<vmem>>, vector<1x8x128xi32>
    %1108 = vector.shape_cast %1107 : vector<1x8x128xi32> to vector<8x128xi32>
    %1109 = vector.shape_cast %1106 : vector<8x128xi32> to vector<1x8x128xi32>
    tpu.vector_store %arg6[%c5_169, %c0_170, %c0_171], %1109 {strides = array<i32>} : memref<8x8x128xi32, #tpu.memory_space<vmem>>, vector<1x8x128xi32>,
    %c5_172 = arith.constant 5 : index
    %c0_173 = arith.constant 0 : index
    %1110 = tpu.strided_load %arg5[%c5_172, %c0_173] {strides = array<i32: 8, 1>} : memref<64x128xf32, #tpu.memory_space<vmem>>, vector<8x128xf32>
    %1111 = arith.addf %1110, %1104 : vector<8x128xf32>
    %cst_174 = arith.constant -1.000000e+30 : f32
    %1112 = vector.broadcast %cst_174 : f32 to vector<8x128xf32>
    %c0_i32_175 = arith.constant 0 : i32
    %1113 = vector.broadcast %c0_i32_175 : i32 to vector<8x128xi32>
    %1114 = vector.extract_strided_slice %1111 {offsets = [0, 0], sizes = [8, 1], strides = [1, 1]} : vector<8x128xf32> to vector<8x1xf32>
    %1115 = vector.broadcast %1114 : vector<8x1xf32> to vector<8x128xf32>
    %1116 = vector.broadcast %8 : vector<1x128xf32> to vector<8x128xf32>
    %1117 = arith.addf %1115, %1116 : vector<8x128xf32>
    %1118 = arith.cmpf ogt, %1117, %1112 : vector<8x128xf32>
    %1119 = arith.select %1118, %1117, %1112 : vector<8x128xi1>, vector<8x128xf32>
    %c0_i32_176 = arith.constant 0 : i32
    %1120 = vector.broadcast %c0_i32_176 : i32 to vector<8x128xi32>
    %1121 = arith.select %1118, %1120, %1113 : vector<8x128xi1>, vector<8x128xi32>
    %1122 = vector.extract_strided_slice %1111 {offsets = [0, 1], sizes = [8, 1], strides = [1, 1]} : vector<8x128xf32> to vector<8x1xf32>
    %1123 = vector.broadcast %1122 : vector<8x1xf32> to vector<8x128xf32>
    %1124 = vector.broadcast %9 : vector<1x128xf32> to vector<8x128xf32>
    %1125 = arith.addf %1123, %1124 : vector<8x128xf32>
    %1126 = arith.cmpf ogt, %1125, %1119 : vector<8x128xf32>
    %1127 = arith.select %1126, %1125, %1119 : vector<8x128xi1>, vector<8x128xf32>
    %c1_i32_177 = arith.constant 1 : i32
    %1128 = vector.broadcast %c1_i32_177 : i32 to vector<8x128xi32>
    %1129 = arith.select %1126, %1128, %1121 : vector<8x128xi1>, vector<8x128xi32>
    %1130 = vector.extract_strided_slice %1111 {offsets = [0, 2], sizes = [8, 1], strides = [1, 1]} : vector<8x128xf32> to vector<8x1xf32>
    %1131 = vector.broadcast %1130 : vector<8x1xf32> to vector<8x128xf32>
    %1132 = vector.broadcast %10 : vector<1x128xf32> to vector<8x128xf32>
    %1133 = arith.addf %1131, %1132 : vector<8x128xf32>
    %1134 = arith.cmpf ogt, %1133, %1127 : vector<8x128xf32>
    %1135 = arith.select %1134, %1133, %1127 : vector<8x128xi1>, vector<8x128xf32>
    %c2_i32_178 = arith.constant 2 : i32
    %1136 = vector.broadcast %c2_i32_178 : i32 to vector<8x128xi32>
    %1137 = arith.select %1134, %1136, %1129 : vector<8x128xi1>, vector<8x128xi32>
    %1138 = vector.extract_strided_slice %1111 {offsets = [0, 3], sizes = [8, 1], strides = [1, 1]} : vector<8x128xf32> to vector<8x1xf32>
    %1139 = vector.broadcast %1138 : vector<8x1xf32> to vector<8x128xf32>
    %1140 = vector.broadcast %11 : vector<1x128xf32> to vector<8x128xf32>
    %1141 = arith.addf %1139, %1140 : vector<8x128xf32>
    %1142 = arith.cmpf ogt, %1141, %1135 : vector<8x128xf32>
    %1143 = arith.select %1142, %1141, %1135 : vector<8x128xi1>, vector<8x128xf32>
    %c3_i32_179 = arith.constant 3 : i32
    %1144 = vector.broadcast %c3_i32_179 : i32 to vector<8x128xi32>
    %1145 = arith.select %1142, %1144, %1137 : vector<8x128xi1>, vector<8x128xi32>
    %1146 = vector.extract_strided_slice %1111 {offsets = [0, 4], sizes = [8, 1], strides = [1, 1]} : vector<8x128xf32> to vector<8x1xf32>
    %1147 = vector.broadcast %1146 : vector<8x1xf32> to vector<8x128xf32>
    %1148 = vector.broadcast %12 : vector<1x128xf32> to vector<8x128xf32>
    %1149 = arith.addf %1147, %1148 : vector<8x128xf32>
    %1150 = arith.cmpf ogt, %1149, %1143 : vector<8x128xf32>
    %1151 = arith.select %1150, %1149, %1143 : vector<8x128xi1>, vector<8x128xf32>
    %c4_i32_180 = arith.constant 4 : i32
    %1152 = vector.broadcast %c4_i32_180 : i32 to vector<8x128xi32>
    %1153 = arith.select %1150, %1152, %1145 : vector<8x128xi1>, vector<8x128xi32>
    %1154 = vector.extract_strided_slice %1111 {offsets = [0, 5], sizes = [8, 1], strides = [1, 1]} : vector<8x128xf32> to vector<8x1xf32>
    %1155 = vector.broadcast %1154 : vector<8x1xf32> to vector<8x128xf32>
    %1156 = vector.broadcast %13 : vector<1x128xf32> to vector<8x128xf32>
    %1157 = arith.addf %1155, %1156 : vector<8x128xf32>
    %1158 = arith.cmpf ogt, %1157, %1151 : vector<8x128xf32>
    %1159 = arith.select %1158, %1157, %1151 : vector<8x128xi1>, vector<8x128xf32>
    %c5_i32_181 = arith.constant 5 : i32
    %1160 = vector.broadcast %c5_i32_181 : i32 to vector<8x128xi32>
    %1161 = arith.select %1158, %1160, %1153 : vector<8x128xi1>, vector<8x128xi32>
    %1162 = vector.extract_strided_slice %1111 {offsets = [0, 6], sizes = [8, 1], strides = [1, 1]} : vector<8x128xf32> to vector<8x1xf32>
    %1163 = vector.broadcast %1162 : vector<8x1xf32> to vector<8x128xf32>
    %1164 = vector.broadcast %14 : vector<1x128xf32> to vector<8x128xf32>
    %1165 = arith.addf %1163, %1164 : vector<8x128xf32>
    %1166 = arith.cmpf ogt, %1165, %1159 : vector<8x128xf32>
    %1167 = arith.select %1166, %1165, %1159 : vector<8x128xi1>, vector<8x128xf32>
    %c6_i32_182 = arith.constant 6 : i32
    %1168 = vector.broadcast %c6_i32_182 : i32 to vector<8x128xi32>
    %1169 = arith.select %1166, %1168, %1161 : vector<8x128xi1>, vector<8x128xi32>
    %1170 = vector.extract_strided_slice %1111 {offsets = [0, 7], sizes = [8, 1], strides = [1, 1]} : vector<8x128xf32> to vector<8x1xf32>
    %1171 = vector.broadcast %1170 : vector<8x1xf32> to vector<8x128xf32>
    %1172 = vector.broadcast %15 : vector<1x128xf32> to vector<8x128xf32>
    %1173 = arith.addf %1171, %1172 : vector<8x128xf32>
    %1174 = arith.cmpf ogt, %1173, %1167 : vector<8x128xf32>
    %1175 = arith.select %1174, %1173, %1167 : vector<8x128xi1>, vector<8x128xf32>
    %c7_i32_183 = arith.constant 7 : i32
    %1176 = vector.broadcast %c7_i32_183 : i32 to vector<8x128xi32>
    %1177 = arith.select %1174, %1176, %1169 : vector<8x128xi1>, vector<8x128xi32>
    %1178 = vector.extract_strided_slice %1111 {offsets = [0, 8], sizes = [8, 1], strides = [1, 1]} : vector<8x128xf32> to vector<8x1xf32>
    %1179 = vector.broadcast %1178 : vector<8x1xf32> to vector<8x128xf32>
    %1180 = vector.broadcast %16 : vector<1x128xf32> to vector<8x128xf32>
    %1181 = arith.addf %1179, %1180 : vector<8x128xf32>
    %1182 = arith.cmpf ogt, %1181, %1175 : vector<8x128xf32>
    %1183 = arith.select %1182, %1181, %1175 : vector<8x128xi1>, vector<8x128xf32>
    %c8_i32_184 = arith.constant 8 : i32
    %1184 = vector.broadcast %c8_i32_184 : i32 to vector<8x128xi32>
    %1185 = arith.select %1182, %1184, %1177 : vector<8x128xi1>, vector<8x128xi32>
    %1186 = vector.extract_strided_slice %1111 {offsets = [0, 9], sizes = [8, 1], strides = [1, 1]} : vector<8x128xf32> to vector<8x1xf32>
    %1187 = vector.broadcast %1186 : vector<8x1xf32> to vector<8x128xf32>
    %1188 = vector.broadcast %17 : vector<1x128xf32> to vector<8x128xf32>
    %1189 = arith.addf %1187, %1188 : vector<8x128xf32>
    %1190 = arith.cmpf ogt, %1189, %1183 : vector<8x128xf32>
    %1191 = arith.select %1190, %1189, %1183 : vector<8x128xi1>, vector<8x128xf32>
    %c9_i32_185 = arith.constant 9 : i32
    %1192 = vector.broadcast %c9_i32_185 : i32 to vector<8x128xi32>
    %1193 = arith.select %1190, %1192, %1185 : vector<8x128xi1>, vector<8x128xi32>
    %1194 = vector.extract_strided_slice %1111 {offsets = [0, 10], sizes = [8, 1], strides = [1, 1]} : vector<8x128xf32> to vector<8x1xf32>
    %1195 = vector.broadcast %1194 : vector<8x1xf32> to vector<8x128xf32>
    %1196 = vector.broadcast %18 : vector<1x128xf32> to vector<8x128xf32>
    %1197 = arith.addf %1195, %1196 : vector<8x128xf32>
    %1198 = arith.cmpf ogt, %1197, %1191 : vector<8x128xf32>
    %1199 = arith.select %1198, %1197, %1191 : vector<8x128xi1>, vector<8x128xf32>
    %c10_i32_186 = arith.constant 10 : i32
    %1200 = vector.broadcast %c10_i32_186 : i32 to vector<8x128xi32>
    %1201 = arith.select %1198, %1200, %1193 : vector<8x128xi1>, vector<8x128xi32>
    %1202 = vector.extract_strided_slice %1111 {offsets = [0, 11], sizes = [8, 1], strides = [1, 1]} : vector<8x128xf32> to vector<8x1xf32>
    %1203 = vector.broadcast %1202 : vector<8x1xf32> to vector<8x128xf32>
    %1204 = vector.broadcast %19 : vector<1x128xf32> to vector<8x128xf32>
    %1205 = arith.addf %1203, %1204 : vector<8x128xf32>
    %1206 = arith.cmpf ogt, %1205, %1199 : vector<8x128xf32>
    %1207 = arith.select %1206, %1205, %1199 : vector<8x128xi1>, vector<8x128xf32>
    %c11_i32_187 = arith.constant 11 : i32
    %1208 = vector.broadcast %c11_i32_187 : i32 to vector<8x128xi32>
    %1209 = arith.select %1206, %1208, %1201 : vector<8x128xi1>, vector<8x128xi32>
    %1210 = vector.extract_strided_slice %1111 {offsets = [0, 12], sizes = [8, 1], strides = [1, 1]} : vector<8x128xf32> to vector<8x1xf32>
    %1211 = vector.broadcast %1210 : vector<8x1xf32> to vector<8x128xf32>
    %1212 = vector.broadcast %20 : vector<1x128xf32> to vector<8x128xf32>
    %1213 = arith.addf %1211, %1212 : vector<8x128xf32>
    %1214 = arith.cmpf ogt, %1213, %1207 : vector<8x128xf32>
    %1215 = arith.select %1214, %1213, %1207 : vector<8x128xi1>, vector<8x128xf32>
    %c12_i32_188 = arith.constant 12 : i32
    %1216 = vector.broadcast %c12_i32_188 : i32 to vector<8x128xi32>
    %1217 = arith.select %1214, %1216, %1209 : vector<8x128xi1>, vector<8x128xi32>
    %1218 = vector.extract_strided_slice %1111 {offsets = [0, 13], sizes = [8, 1], strides = [1, 1]} : vector<8x128xf32> to vector<8x1xf32>
    %1219 = vector.broadcast %1218 : vector<8x1xf32> to vector<8x128xf32>
    %1220 = vector.broadcast %21 : vector<1x128xf32> to vector<8x128xf32>
    %1221 = arith.addf %1219, %1220 : vector<8x128xf32>
    %1222 = arith.cmpf ogt, %1221, %1215 : vector<8x128xf32>
    %1223 = arith.select %1222, %1221, %1215 : vector<8x128xi1>, vector<8x128xf32>
    %c13_i32_189 = arith.constant 13 : i32
    %1224 = vector.broadcast %c13_i32_189 : i32 to vector<8x128xi32>
    %1225 = arith.select %1222, %1224, %1217 : vector<8x128xi1>, vector<8x128xi32>
    %1226 = vector.extract_strided_slice %1111 {offsets = [0, 14], sizes = [8, 1], strides = [1, 1]} : vector<8x128xf32> to vector<8x1xf32>
    %1227 = vector.broadcast %1226 : vector<8x1xf32> to vector<8x128xf32>
    %1228 = vector.broadcast %22 : vector<1x128xf32> to vector<8x128xf32>
    %1229 = arith.addf %1227, %1228 : vector<8x128xf32>
    %1230 = arith.cmpf ogt, %1229, %1223 : vector<8x128xf32>
    %1231 = arith.select %1230, %1229, %1223 : vector<8x128xi1>, vector<8x128xf32>
    %c14_i32_190 = arith.constant 14 : i32
    %1232 = vector.broadcast %c14_i32_190 : i32 to vector<8x128xi32>
    %1233 = arith.select %1230, %1232, %1225 : vector<8x128xi1>, vector<8x128xi32>
    %1234 = vector.extract_strided_slice %1111 {offsets = [0, 15], sizes = [8, 1], strides = [1, 1]} : vector<8x128xf32> to vector<8x1xf32>
    %1235 = vector.broadcast %1234 : vector<8x1xf32> to vector<8x128xf32>
    %1236 = vector.broadcast %23 : vector<1x128xf32> to vector<8x128xf32>
    %1237 = arith.addf %1235, %1236 : vector<8x128xf32>
    %1238 = arith.cmpf ogt, %1237, %1231 : vector<8x128xf32>
    %1239 = arith.select %1238, %1237, %1231 : vector<8x128xi1>, vector<8x128xf32>
    %c15_i32_191 = arith.constant 15 : i32
    %1240 = vector.broadcast %c15_i32_191 : i32 to vector<8x128xi32>
    %1241 = arith.select %1238, %1240, %1233 : vector<8x128xi1>, vector<8x128xi32>
    %1242 = vector.extract_strided_slice %1111 {offsets = [0, 16], sizes = [8, 1], strides = [1, 1]} : vector<8x128xf32> to vector<8x1xf32>
    %1243 = vector.broadcast %1242 : vector<8x1xf32> to vector<8x128xf32>
    %1244 = vector.broadcast %24 : vector<1x128xf32> to vector<8x128xf32>
    %1245 = arith.addf %1243, %1244 : vector<8x128xf32>
    %1246 = arith.cmpf ogt, %1245, %1239 : vector<8x128xf32>
    %1247 = arith.select %1246, %1245, %1239 : vector<8x128xi1>, vector<8x128xf32>
    %c16_i32_192 = arith.constant 16 : i32
    %1248 = vector.broadcast %c16_i32_192 : i32 to vector<8x128xi32>
    %1249 = arith.select %1246, %1248, %1241 : vector<8x128xi1>, vector<8x128xi32>
    %1250 = vector.extract_strided_slice %1111 {offsets = [0, 17], sizes = [8, 1], strides = [1, 1]} : vector<8x128xf32> to vector<8x1xf32>
    %1251 = vector.broadcast %1250 : vector<8x1xf32> to vector<8x128xf32>
    %1252 = vector.broadcast %25 : vector<1x128xf32> to vector<8x128xf32>
    %1253 = arith.addf %1251, %1252 : vector<8x128xf32>
    %1254 = arith.cmpf ogt, %1253, %1247 : vector<8x128xf32>
    %1255 = arith.select %1254, %1253, %1247 : vector<8x128xi1>, vector<8x128xf32>
    %c17_i32_193 = arith.constant 17 : i32
    %1256 = vector.broadcast %c17_i32_193 : i32 to vector<8x128xi32>
    %1257 = arith.select %1254, %1256, %1249 : vector<8x128xi1>, vector<8x128xi32>
    %1258 = vector.extract_strided_slice %1111 {offsets = [0, 18], sizes = [8, 1], strides = [1, 1]} : vector<8x128xf32> to vector<8x1xf32>
    %1259 = vector.broadcast %1258 : vector<8x1xf32> to vector<8x128xf32>
    %1260 = vector.broadcast %26 : vector<1x128xf32> to vector<8x128xf32>
    %1261 = arith.addf %1259, %1260 : vector<8x128xf32>
    %1262 = arith.cmpf ogt, %1261, %1255 : vector<8x128xf32>
    %1263 = arith.select %1262, %1261, %1255 : vector<8x128xi1>, vector<8x128xf32>
    %c18_i32_194 = arith.constant 18 : i32
    %1264 = vector.broadcast %c18_i32_194 : i32 to vector<8x128xi32>
    %1265 = arith.select %1262, %1264, %1257 : vector<8x128xi1>, vector<8x128xi32>
    %1266 = vector.extract_strided_slice %1111 {offsets = [0, 19], sizes = [8, 1], strides = [1, 1]} : vector<8x128xf32> to vector<8x1xf32>
    %1267 = vector.broadcast %1266 : vector<8x1xf32> to vector<8x128xf32>
    %1268 = vector.broadcast %27 : vector<1x128xf32> to vector<8x128xf32>
    %1269 = arith.addf %1267, %1268 : vector<8x128xf32>
    %1270 = arith.cmpf ogt, %1269, %1263 : vector<8x128xf32>
    %1271 = arith.select %1270, %1269, %1263 : vector<8x128xi1>, vector<8x128xf32>
    %c19_i32_195 = arith.constant 19 : i32
    %1272 = vector.broadcast %c19_i32_195 : i32 to vector<8x128xi32>
    %1273 = arith.select %1270, %1272, %1265 : vector<8x128xi1>, vector<8x128xi32>
    %1274 = vector.extract_strided_slice %1111 {offsets = [0, 20], sizes = [8, 1], strides = [1, 1]} : vector<8x128xf32> to vector<8x1xf32>
    %1275 = vector.broadcast %1274 : vector<8x1xf32> to vector<8x128xf32>
    %1276 = vector.broadcast %28 : vector<1x128xf32> to vector<8x128xf32>
    %1277 = arith.addf %1275, %1276 : vector<8x128xf32>
    %1278 = arith.cmpf ogt, %1277, %1271 : vector<8x128xf32>
    %1279 = arith.select %1278, %1277, %1271 : vector<8x128xi1>, vector<8x128xf32>
    %c20_i32_196 = arith.constant 20 : i32
    %1280 = vector.broadcast %c20_i32_196 : i32 to vector<8x128xi32>
    %1281 = arith.select %1278, %1280, %1273 : vector<8x128xi1>, vector<8x128xi32>
    %1282 = vector.extract_strided_slice %1111 {offsets = [0, 21], sizes = [8, 1], strides = [1, 1]} : vector<8x128xf32> to vector<8x1xf32>
    %1283 = vector.broadcast %1282 : vector<8x1xf32> to vector<8x128xf32>
    %1284 = vector.broadcast %29 : vector<1x128xf32> to vector<8x128xf32>
    %1285 = arith.addf %1283, %1284 : vector<8x128xf32>
    %1286 = arith.cmpf ogt, %1285, %1279 : vector<8x128xf32>
    %1287 = arith.select %1286, %1285, %1279 : vector<8x128xi1>, vector<8x128xf32>
    %c21_i32_197 = arith.constant 21 : i32
    %1288 = vector.broadcast %c21_i32_197 : i32 to vector<8x128xi32>
    %1289 = arith.select %1286, %1288, %1281 : vector<8x128xi1>, vector<8x128xi32>
    %1290 = vector.extract_strided_slice %1111 {offsets = [0, 22], sizes = [8, 1], strides = [1, 1]} : vector<8x128xf32> to vector<8x1xf32>
    %1291 = vector.broadcast %1290 : vector<8x1xf32> to vector<8x128xf32>
    %1292 = vector.broadcast %30 : vector<1x128xf32> to vector<8x128xf32>
    %1293 = arith.addf %1291, %1292 : vector<8x128xf32>
    %1294 = arith.cmpf ogt, %1293, %1287 : vector<8x128xf32>
    %1295 = arith.select %1294, %1293, %1287 : vector<8x128xi1>, vector<8x128xf32>
    %c22_i32_198 = arith.constant 22 : i32
    %1296 = vector.broadcast %c22_i32_198 : i32 to vector<8x128xi32>
    %1297 = arith.select %1294, %1296, %1289 : vector<8x128xi1>, vector<8x128xi32>
    %1298 = vector.extract_strided_slice %1111 {offsets = [0, 23], sizes = [8, 1], strides = [1, 1]} : vector<8x128xf32> to vector<8x1xf32>
    %1299 = vector.broadcast %1298 : vector<8x1xf32> to vector<8x128xf32>
    %1300 = vector.broadcast %31 : vector<1x128xf32> to vector<8x128xf32>
    %1301 = arith.addf %1299, %1300 : vector<8x128xf32>
    %1302 = arith.cmpf ogt, %1301, %1295 : vector<8x128xf32>
    %1303 = arith.select %1302, %1301, %1295 : vector<8x128xi1>, vector<8x128xf32>
    %c23_i32_199 = arith.constant 23 : i32
    %1304 = vector.broadcast %c23_i32_199 : i32 to vector<8x128xi32>
    %1305 = arith.select %1302, %1304, %1297 : vector<8x128xi1>, vector<8x128xi32>
    %1306 = vector.extract_strided_slice %1111 {offsets = [0, 24], sizes = [8, 1], strides = [1, 1]} : vector<8x128xf32> to vector<8x1xf32>
    %1307 = vector.broadcast %1306 : vector<8x1xf32> to vector<8x128xf32>
    %1308 = vector.broadcast %32 : vector<1x128xf32> to vector<8x128xf32>
    %1309 = arith.addf %1307, %1308 : vector<8x128xf32>
    %1310 = arith.cmpf ogt, %1309, %1303 : vector<8x128xf32>
    %1311 = arith.select %1310, %1309, %1303 : vector<8x128xi1>, vector<8x128xf32>
    %c24_i32_200 = arith.constant 24 : i32
    %1312 = vector.broadcast %c24_i32_200 : i32 to vector<8x128xi32>
    %1313 = arith.select %1310, %1312, %1305 : vector<8x128xi1>, vector<8x128xi32>
    %1314 = vector.extract_strided_slice %1111 {offsets = [0, 25], sizes = [8, 1], strides = [1, 1]} : vector<8x128xf32> to vector<8x1xf32>
    %1315 = vector.broadcast %1314 : vector<8x1xf32> to vector<8x128xf32>
    %1316 = vector.broadcast %33 : vector<1x128xf32> to vector<8x128xf32>
    %1317 = arith.addf %1315, %1316 : vector<8x128xf32>
    %1318 = arith.cmpf ogt, %1317, %1311 : vector<8x128xf32>
    %1319 = arith.select %1318, %1317, %1311 : vector<8x128xi1>, vector<8x128xf32>
    %c25_i32_201 = arith.constant 25 : i32
    %1320 = vector.broadcast %c25_i32_201 : i32 to vector<8x128xi32>
    %1321 = arith.select %1318, %1320, %1313 : vector<8x128xi1>, vector<8x128xi32>
    %c6_202 = arith.constant 6 : index
    %c0_203 = arith.constant 0 : index
    %c0_204 = arith.constant 0 : index
    %1322 = vector.load %arg6[%c6_202, %c0_203, %c0_204] : memref<8x8x128xi32, #tpu.memory_space<vmem>>, vector<1x8x128xi32>
    %1323 = vector.shape_cast %1322 : vector<1x8x128xi32> to vector<8x128xi32>
    %1324 = vector.shape_cast %1321 : vector<8x128xi32> to vector<1x8x128xi32>
    tpu.vector_store %arg6[%c6_202, %c0_203, %c0_204], %1324 {strides = array<i32>} : memref<8x8x128xi32, #tpu.memory_space<vmem>>, vector<1x8x128xi32>,
    %c6_205 = arith.constant 6 : index
    %c0_206 = arith.constant 0 : index
    %1325 = tpu.strided_load %arg5[%c6_205, %c0_206] {strides = array<i32: 8, 1>} : memref<64x128xf32, #tpu.memory_space<vmem>>, vector<8x128xf32>
    %1326 = arith.addf %1325, %1319 : vector<8x128xf32>
    %cst_207 = arith.constant -1.000000e+30 : f32
    %1327 = vector.broadcast %cst_207 : f32 to vector<8x128xf32>
    %c0_i32_208 = arith.constant 0 : i32
    %1328 = vector.broadcast %c0_i32_208 : i32 to vector<8x128xi32>
    %1329 = vector.extract_strided_slice %1326 {offsets = [0, 0], sizes = [8, 1], strides = [1, 1]} : vector<8x128xf32> to vector<8x1xf32>
    %1330 = vector.broadcast %1329 : vector<8x1xf32> to vector<8x128xf32>
    %1331 = vector.broadcast %8 : vector<1x128xf32> to vector<8x128xf32>
    %1332 = arith.addf %1330, %1331 : vector<8x128xf32>
    %1333 = arith.cmpf ogt, %1332, %1327 : vector<8x128xf32>
    %1334 = arith.select %1333, %1332, %1327 : vector<8x128xi1>, vector<8x128xf32>
    %c0_i32_209 = arith.constant 0 : i32
    %1335 = vector.broadcast %c0_i32_209 : i32 to vector<8x128xi32>
    %1336 = arith.select %1333, %1335, %1328 : vector<8x128xi1>, vector<8x128xi32>
    %1337 = vector.extract_strided_slice %1326 {offsets = [0, 1], sizes = [8, 1], strides = [1, 1]} : vector<8x128xf32> to vector<8x1xf32>
    %1338 = vector.broadcast %1337 : vector<8x1xf32> to vector<8x128xf32>
    %1339 = vector.broadcast %9 : vector<1x128xf32> to vector<8x128xf32>
    %1340 = arith.addf %1338, %1339 : vector<8x128xf32>
    %1341 = arith.cmpf ogt, %1340, %1334 : vector<8x128xf32>
    %1342 = arith.select %1341, %1340, %1334 : vector<8x128xi1>, vector<8x128xf32>
    %c1_i32_210 = arith.constant 1 : i32
    %1343 = vector.broadcast %c1_i32_210 : i32 to vector<8x128xi32>
    %1344 = arith.select %1341, %1343, %1336 : vector<8x128xi1>, vector<8x128xi32>
    %1345 = vector.extract_strided_slice %1326 {offsets = [0, 2], sizes = [8, 1], strides = [1, 1]} : vector<8x128xf32> to vector<8x1xf32>
    %1346 = vector.broadcast %1345 : vector<8x1xf32> to vector<8x128xf32>
    %1347 = vector.broadcast %10 : vector<1x128xf32> to vector<8x128xf32>
    %1348 = arith.addf %1346, %1347 : vector<8x128xf32>
    %1349 = arith.cmpf ogt, %1348, %1342 : vector<8x128xf32>
    %1350 = arith.select %1349, %1348, %1342 : vector<8x128xi1>, vector<8x128xf32>
    %c2_i32_211 = arith.constant 2 : i32
    %1351 = vector.broadcast %c2_i32_211 : i32 to vector<8x128xi32>
    %1352 = arith.select %1349, %1351, %1344 : vector<8x128xi1>, vector<8x128xi32>
    %1353 = vector.extract_strided_slice %1326 {offsets = [0, 3], sizes = [8, 1], strides = [1, 1]} : vector<8x128xf32> to vector<8x1xf32>
    %1354 = vector.broadcast %1353 : vector<8x1xf32> to vector<8x128xf32>
    %1355 = vector.broadcast %11 : vector<1x128xf32> to vector<8x128xf32>
    %1356 = arith.addf %1354, %1355 : vector<8x128xf32>
    %1357 = arith.cmpf ogt, %1356, %1350 : vector<8x128xf32>
    %1358 = arith.select %1357, %1356, %1350 : vector<8x128xi1>, vector<8x128xf32>
    %c3_i32_212 = arith.constant 3 : i32
    %1359 = vector.broadcast %c3_i32_212 : i32 to vector<8x128xi32>
    %1360 = arith.select %1357, %1359, %1352 : vector<8x128xi1>, vector<8x128xi32>
    %1361 = vector.extract_strided_slice %1326 {offsets = [0, 4], sizes = [8, 1], strides = [1, 1]} : vector<8x128xf32> to vector<8x1xf32>
    %1362 = vector.broadcast %1361 : vector<8x1xf32> to vector<8x128xf32>
    %1363 = vector.broadcast %12 : vector<1x128xf32> to vector<8x128xf32>
    %1364 = arith.addf %1362, %1363 : vector<8x128xf32>
    %1365 = arith.cmpf ogt, %1364, %1358 : vector<8x128xf32>
    %1366 = arith.select %1365, %1364, %1358 : vector<8x128xi1>, vector<8x128xf32>
    %c4_i32_213 = arith.constant 4 : i32
    %1367 = vector.broadcast %c4_i32_213 : i32 to vector<8x128xi32>
    %1368 = arith.select %1365, %1367, %1360 : vector<8x128xi1>, vector<8x128xi32>
    %1369 = vector.extract_strided_slice %1326 {offsets = [0, 5], sizes = [8, 1], strides = [1, 1]} : vector<8x128xf32> to vector<8x1xf32>
    %1370 = vector.broadcast %1369 : vector<8x1xf32> to vector<8x128xf32>
    %1371 = vector.broadcast %13 : vector<1x128xf32> to vector<8x128xf32>
    %1372 = arith.addf %1370, %1371 : vector<8x128xf32>
    %1373 = arith.cmpf ogt, %1372, %1366 : vector<8x128xf32>
    %1374 = arith.select %1373, %1372, %1366 : vector<8x128xi1>, vector<8x128xf32>
    %c5_i32_214 = arith.constant 5 : i32
    %1375 = vector.broadcast %c5_i32_214 : i32 to vector<8x128xi32>
    %1376 = arith.select %1373, %1375, %1368 : vector<8x128xi1>, vector<8x128xi32>
    %1377 = vector.extract_strided_slice %1326 {offsets = [0, 6], sizes = [8, 1], strides = [1, 1]} : vector<8x128xf32> to vector<8x1xf32>
    %1378 = vector.broadcast %1377 : vector<8x1xf32> to vector<8x128xf32>
    %1379 = vector.broadcast %14 : vector<1x128xf32> to vector<8x128xf32>
    %1380 = arith.addf %1378, %1379 : vector<8x128xf32>
    %1381 = arith.cmpf ogt, %1380, %1374 : vector<8x128xf32>
    %1382 = arith.select %1381, %1380, %1374 : vector<8x128xi1>, vector<8x128xf32>
    %c6_i32_215 = arith.constant 6 : i32
    %1383 = vector.broadcast %c6_i32_215 : i32 to vector<8x128xi32>
    %1384 = arith.select %1381, %1383, %1376 : vector<8x128xi1>, vector<8x128xi32>
    %1385 = vector.extract_strided_slice %1326 {offsets = [0, 7], sizes = [8, 1], strides = [1, 1]} : vector<8x128xf32> to vector<8x1xf32>
    %1386 = vector.broadcast %1385 : vector<8x1xf32> to vector<8x128xf32>
    %1387 = vector.broadcast %15 : vector<1x128xf32> to vector<8x128xf32>
    %1388 = arith.addf %1386, %1387 : vector<8x128xf32>
    %1389 = arith.cmpf ogt, %1388, %1382 : vector<8x128xf32>
    %1390 = arith.select %1389, %1388, %1382 : vector<8x128xi1>, vector<8x128xf32>
    %c7_i32_216 = arith.constant 7 : i32
    %1391 = vector.broadcast %c7_i32_216 : i32 to vector<8x128xi32>
    %1392 = arith.select %1389, %1391, %1384 : vector<8x128xi1>, vector<8x128xi32>
    %1393 = vector.extract_strided_slice %1326 {offsets = [0, 8], sizes = [8, 1], strides = [1, 1]} : vector<8x128xf32> to vector<8x1xf32>
    %1394 = vector.broadcast %1393 : vector<8x1xf32> to vector<8x128xf32>
    %1395 = vector.broadcast %16 : vector<1x128xf32> to vector<8x128xf32>
    %1396 = arith.addf %1394, %1395 : vector<8x128xf32>
    %1397 = arith.cmpf ogt, %1396, %1390 : vector<8x128xf32>
    %1398 = arith.select %1397, %1396, %1390 : vector<8x128xi1>, vector<8x128xf32>
    %c8_i32_217 = arith.constant 8 : i32
    %1399 = vector.broadcast %c8_i32_217 : i32 to vector<8x128xi32>
    %1400 = arith.select %1397, %1399, %1392 : vector<8x128xi1>, vector<8x128xi32>
    %1401 = vector.extract_strided_slice %1326 {offsets = [0, 9], sizes = [8, 1], strides = [1, 1]} : vector<8x128xf32> to vector<8x1xf32>
    %1402 = vector.broadcast %1401 : vector<8x1xf32> to vector<8x128xf32>
    %1403 = vector.broadcast %17 : vector<1x128xf32> to vector<8x128xf32>
    %1404 = arith.addf %1402, %1403 : vector<8x128xf32>
    %1405 = arith.cmpf ogt, %1404, %1398 : vector<8x128xf32>
    %1406 = arith.select %1405, %1404, %1398 : vector<8x128xi1>, vector<8x128xf32>
    %c9_i32_218 = arith.constant 9 : i32
    %1407 = vector.broadcast %c9_i32_218 : i32 to vector<8x128xi32>
    %1408 = arith.select %1405, %1407, %1400 : vector<8x128xi1>, vector<8x128xi32>
    %1409 = vector.extract_strided_slice %1326 {offsets = [0, 10], sizes = [8, 1], strides = [1, 1]} : vector<8x128xf32> to vector<8x1xf32>
    %1410 = vector.broadcast %1409 : vector<8x1xf32> to vector<8x128xf32>
    %1411 = vector.broadcast %18 : vector<1x128xf32> to vector<8x128xf32>
    %1412 = arith.addf %1410, %1411 : vector<8x128xf32>
    %1413 = arith.cmpf ogt, %1412, %1406 : vector<8x128xf32>
    %1414 = arith.select %1413, %1412, %1406 : vector<8x128xi1>, vector<8x128xf32>
    %c10_i32_219 = arith.constant 10 : i32
    %1415 = vector.broadcast %c10_i32_219 : i32 to vector<8x128xi32>
    %1416 = arith.select %1413, %1415, %1408 : vector<8x128xi1>, vector<8x128xi32>
    %1417 = vector.extract_strided_slice %1326 {offsets = [0, 11], sizes = [8, 1], strides = [1, 1]} : vector<8x128xf32> to vector<8x1xf32>
    %1418 = vector.broadcast %1417 : vector<8x1xf32> to vector<8x128xf32>
    %1419 = vector.broadcast %19 : vector<1x128xf32> to vector<8x128xf32>
    %1420 = arith.addf %1418, %1419 : vector<8x128xf32>
    %1421 = arith.cmpf ogt, %1420, %1414 : vector<8x128xf32>
    %1422 = arith.select %1421, %1420, %1414 : vector<8x128xi1>, vector<8x128xf32>
    %c11_i32_220 = arith.constant 11 : i32
    %1423 = vector.broadcast %c11_i32_220 : i32 to vector<8x128xi32>
    %1424 = arith.select %1421, %1423, %1416 : vector<8x128xi1>, vector<8x128xi32>
    %1425 = vector.extract_strided_slice %1326 {offsets = [0, 12], sizes = [8, 1], strides = [1, 1]} : vector<8x128xf32> to vector<8x1xf32>
    %1426 = vector.broadcast %1425 : vector<8x1xf32> to vector<8x128xf32>
    %1427 = vector.broadcast %20 : vector<1x128xf32> to vector<8x128xf32>
    %1428 = arith.addf %1426, %1427 : vector<8x128xf32>
    %1429 = arith.cmpf ogt, %1428, %1422 : vector<8x128xf32>
    %1430 = arith.select %1429, %1428, %1422 : vector<8x128xi1>, vector<8x128xf32>
    %c12_i32_221 = arith.constant 12 : i32
    %1431 = vector.broadcast %c12_i32_221 : i32 to vector<8x128xi32>
    %1432 = arith.select %1429, %1431, %1424 : vector<8x128xi1>, vector<8x128xi32>
    %1433 = vector.extract_strided_slice %1326 {offsets = [0, 13], sizes = [8, 1], strides = [1, 1]} : vector<8x128xf32> to vector<8x1xf32>
    %1434 = vector.broadcast %1433 : vector<8x1xf32> to vector<8x128xf32>
    %1435 = vector.broadcast %21 : vector<1x128xf32> to vector<8x128xf32>
    %1436 = arith.addf %1434, %1435 : vector<8x128xf32>
    %1437 = arith.cmpf ogt, %1436, %1430 : vector<8x128xf32>
    %1438 = arith.select %1437, %1436, %1430 : vector<8x128xi1>, vector<8x128xf32>
    %c13_i32_222 = arith.constant 13 : i32
    %1439 = vector.broadcast %c13_i32_222 : i32 to vector<8x128xi32>
    %1440 = arith.select %1437, %1439, %1432 : vector<8x128xi1>, vector<8x128xi32>
    %1441 = vector.extract_strided_slice %1326 {offsets = [0, 14], sizes = [8, 1], strides = [1, 1]} : vector<8x128xf32> to vector<8x1xf32>
    %1442 = vector.broadcast %1441 : vector<8x1xf32> to vector<8x128xf32>
    %1443 = vector.broadcast %22 : vector<1x128xf32> to vector<8x128xf32>
    %1444 = arith.addf %1442, %1443 : vector<8x128xf32>
    %1445 = arith.cmpf ogt, %1444, %1438 : vector<8x128xf32>
    %1446 = arith.select %1445, %1444, %1438 : vector<8x128xi1>, vector<8x128xf32>
    %c14_i32_223 = arith.constant 14 : i32
    %1447 = vector.broadcast %c14_i32_223 : i32 to vector<8x128xi32>
    %1448 = arith.select %1445, %1447, %1440 : vector<8x128xi1>, vector<8x128xi32>
    %1449 = vector.extract_strided_slice %1326 {offsets = [0, 15], sizes = [8, 1], strides = [1, 1]} : vector<8x128xf32> to vector<8x1xf32>
    %1450 = vector.broadcast %1449 : vector<8x1xf32> to vector<8x128xf32>
    %1451 = vector.broadcast %23 : vector<1x128xf32> to vector<8x128xf32>
    %1452 = arith.addf %1450, %1451 : vector<8x128xf32>
    %1453 = arith.cmpf ogt, %1452, %1446 : vector<8x128xf32>
    %1454 = arith.select %1453, %1452, %1446 : vector<8x128xi1>, vector<8x128xf32>
    %c15_i32_224 = arith.constant 15 : i32
    %1455 = vector.broadcast %c15_i32_224 : i32 to vector<8x128xi32>
    %1456 = arith.select %1453, %1455, %1448 : vector<8x128xi1>, vector<8x128xi32>
    %1457 = vector.extract_strided_slice %1326 {offsets = [0, 16], sizes = [8, 1], strides = [1, 1]} : vector<8x128xf32> to vector<8x1xf32>
    %1458 = vector.broadcast %1457 : vector<8x1xf32> to vector<8x128xf32>
    %1459 = vector.broadcast %24 : vector<1x128xf32> to vector<8x128xf32>
    %1460 = arith.addf %1458, %1459 : vector<8x128xf32>
    %1461 = arith.cmpf ogt, %1460, %1454 : vector<8x128xf32>
    %1462 = arith.select %1461, %1460, %1454 : vector<8x128xi1>, vector<8x128xf32>
    %c16_i32_225 = arith.constant 16 : i32
    %1463 = vector.broadcast %c16_i32_225 : i32 to vector<8x128xi32>
    %1464 = arith.select %1461, %1463, %1456 : vector<8x128xi1>, vector<8x128xi32>
    %1465 = vector.extract_strided_slice %1326 {offsets = [0, 17], sizes = [8, 1], strides = [1, 1]} : vector<8x128xf32> to vector<8x1xf32>
    %1466 = vector.broadcast %1465 : vector<8x1xf32> to vector<8x128xf32>
    %1467 = vector.broadcast %25 : vector<1x128xf32> to vector<8x128xf32>
    %1468 = arith.addf %1466, %1467 : vector<8x128xf32>
    %1469 = arith.cmpf ogt, %1468, %1462 : vector<8x128xf32>
    %1470 = arith.select %1469, %1468, %1462 : vector<8x128xi1>, vector<8x128xf32>
    %c17_i32_226 = arith.constant 17 : i32
    %1471 = vector.broadcast %c17_i32_226 : i32 to vector<8x128xi32>
    %1472 = arith.select %1469, %1471, %1464 : vector<8x128xi1>, vector<8x128xi32>
    %1473 = vector.extract_strided_slice %1326 {offsets = [0, 18], sizes = [8, 1], strides = [1, 1]} : vector<8x128xf32> to vector<8x1xf32>
    %1474 = vector.broadcast %1473 : vector<8x1xf32> to vector<8x128xf32>
    %1475 = vector.broadcast %26 : vector<1x128xf32> to vector<8x128xf32>
    %1476 = arith.addf %1474, %1475 : vector<8x128xf32>
    %1477 = arith.cmpf ogt, %1476, %1470 : vector<8x128xf32>
    %1478 = arith.select %1477, %1476, %1470 : vector<8x128xi1>, vector<8x128xf32>
    %c18_i32_227 = arith.constant 18 : i32
    %1479 = vector.broadcast %c18_i32_227 : i32 to vector<8x128xi32>
    %1480 = arith.select %1477, %1479, %1472 : vector<8x128xi1>, vector<8x128xi32>
    %1481 = vector.extract_strided_slice %1326 {offsets = [0, 19], sizes = [8, 1], strides = [1, 1]} : vector<8x128xf32> to vector<8x1xf32>
    %1482 = vector.broadcast %1481 : vector<8x1xf32> to vector<8x128xf32>
    %1483 = vector.broadcast %27 : vector<1x128xf32> to vector<8x128xf32>
    %1484 = arith.addf %1482, %1483 : vector<8x128xf32>
    %1485 = arith.cmpf ogt, %1484, %1478 : vector<8x128xf32>
    %1486 = arith.select %1485, %1484, %1478 : vector<8x128xi1>, vector<8x128xf32>
    %c19_i32_228 = arith.constant 19 : i32
    %1487 = vector.broadcast %c19_i32_228 : i32 to vector<8x128xi32>
    %1488 = arith.select %1485, %1487, %1480 : vector<8x128xi1>, vector<8x128xi32>
    %1489 = vector.extract_strided_slice %1326 {offsets = [0, 20], sizes = [8, 1], strides = [1, 1]} : vector<8x128xf32> to vector<8x1xf32>
    %1490 = vector.broadcast %1489 : vector<8x1xf32> to vector<8x128xf32>
    %1491 = vector.broadcast %28 : vector<1x128xf32> to vector<8x128xf32>
    %1492 = arith.addf %1490, %1491 : vector<8x128xf32>
    %1493 = arith.cmpf ogt, %1492, %1486 : vector<8x128xf32>
    %1494 = arith.select %1493, %1492, %1486 : vector<8x128xi1>, vector<8x128xf32>
    %c20_i32_229 = arith.constant 20 : i32
    %1495 = vector.broadcast %c20_i32_229 : i32 to vector<8x128xi32>
    %1496 = arith.select %1493, %1495, %1488 : vector<8x128xi1>, vector<8x128xi32>
    %1497 = vector.extract_strided_slice %1326 {offsets = [0, 21], sizes = [8, 1], strides = [1, 1]} : vector<8x128xf32> to vector<8x1xf32>
    %1498 = vector.broadcast %1497 : vector<8x1xf32> to vector<8x128xf32>
    %1499 = vector.broadcast %29 : vector<1x128xf32> to vector<8x128xf32>
    %1500 = arith.addf %1498, %1499 : vector<8x128xf32>
    %1501 = arith.cmpf ogt, %1500, %1494 : vector<8x128xf32>
    %1502 = arith.select %1501, %1500, %1494 : vector<8x128xi1>, vector<8x128xf32>
    %c21_i32_230 = arith.constant 21 : i32
    %1503 = vector.broadcast %c21_i32_230 : i32 to vector<8x128xi32>
    %1504 = arith.select %1501, %1503, %1496 : vector<8x128xi1>, vector<8x128xi32>
    %1505 = vector.extract_strided_slice %1326 {offsets = [0, 22], sizes = [8, 1], strides = [1, 1]} : vector<8x128xf32> to vector<8x1xf32>
    %1506 = vector.broadcast %1505 : vector<8x1xf32> to vector<8x128xf32>
    %1507 = vector.broadcast %30 : vector<1x128xf32> to vector<8x128xf32>
    %1508 = arith.addf %1506, %1507 : vector<8x128xf32>
    %1509 = arith.cmpf ogt, %1508, %1502 : vector<8x128xf32>
    %1510 = arith.select %1509, %1508, %1502 : vector<8x128xi1>, vector<8x128xf32>
    %c22_i32_231 = arith.constant 22 : i32
    %1511 = vector.broadcast %c22_i32_231 : i32 to vector<8x128xi32>
    %1512 = arith.select %1509, %1511, %1504 : vector<8x128xi1>, vector<8x128xi32>
    %1513 = vector.extract_strided_slice %1326 {offsets = [0, 23], sizes = [8, 1], strides = [1, 1]} : vector<8x128xf32> to vector<8x1xf32>
    %1514 = vector.broadcast %1513 : vector<8x1xf32> to vector<8x128xf32>
    %1515 = vector.broadcast %31 : vector<1x128xf32> to vector<8x128xf32>
    %1516 = arith.addf %1514, %1515 : vector<8x128xf32>
    %1517 = arith.cmpf ogt, %1516, %1510 : vector<8x128xf32>
    %1518 = arith.select %1517, %1516, %1510 : vector<8x128xi1>, vector<8x128xf32>
    %c23_i32_232 = arith.constant 23 : i32
    %1519 = vector.broadcast %c23_i32_232 : i32 to vector<8x128xi32>
    %1520 = arith.select %1517, %1519, %1512 : vector<8x128xi1>, vector<8x128xi32>
    %1521 = vector.extract_strided_slice %1326 {offsets = [0, 24], sizes = [8, 1], strides = [1, 1]} : vector<8x128xf32> to vector<8x1xf32>
    %1522 = vector.broadcast %1521 : vector<8x1xf32> to vector<8x128xf32>
    %1523 = vector.broadcast %32 : vector<1x128xf32> to vector<8x128xf32>
    %1524 = arith.addf %1522, %1523 : vector<8x128xf32>
    %1525 = arith.cmpf ogt, %1524, %1518 : vector<8x128xf32>
    %1526 = arith.select %1525, %1524, %1518 : vector<8x128xi1>, vector<8x128xf32>
    %c24_i32_233 = arith.constant 24 : i32
    %1527 = vector.broadcast %c24_i32_233 : i32 to vector<8x128xi32>
    %1528 = arith.select %1525, %1527, %1520 : vector<8x128xi1>, vector<8x128xi32>
    %1529 = vector.extract_strided_slice %1326 {offsets = [0, 25], sizes = [8, 1], strides = [1, 1]} : vector<8x128xf32> to vector<8x1xf32>
    %1530 = vector.broadcast %1529 : vector<8x1xf32> to vector<8x128xf32>
    %1531 = vector.broadcast %33 : vector<1x128xf32> to vector<8x128xf32>
    %1532 = arith.addf %1530, %1531 : vector<8x128xf32>
    %1533 = arith.cmpf ogt, %1532, %1526 : vector<8x128xf32>
    %1534 = arith.select %1533, %1532, %1526 : vector<8x128xi1>, vector<8x128xf32>
    %c25_i32_234 = arith.constant 25 : i32
    %1535 = vector.broadcast %c25_i32_234 : i32 to vector<8x128xi32>
    %1536 = arith.select %1533, %1535, %1528 : vector<8x128xi1>, vector<8x128xi32>
    %c7_235 = arith.constant 7 : index
    %c0_236 = arith.constant 0 : index
    %c0_237 = arith.constant 0 : index
    %1537 = vector.load %arg6[%c7_235, %c0_236, %c0_237] : memref<8x8x128xi32, #tpu.memory_space<vmem>>, vector<1x8x128xi32>
    %1538 = vector.shape_cast %1537 : vector<1x8x128xi32> to vector<8x128xi32>
    %1539 = vector.shape_cast %1536 : vector<8x128xi32> to vector<1x8x128xi32>
    tpu.vector_store %arg6[%c7_235, %c0_236, %c0_237], %1539 {strides = array<i32>} : memref<8x8x128xi32, #tpu.memory_space<vmem>>, vector<1x8x128xi32>,
    %c7_238 = arith.constant 7 : index
    %c0_239 = arith.constant 0 : index
    %1540 = tpu.strided_load %arg5[%c7_238, %c0_239] {strides = array<i32: 8, 1>} : memref<64x128xf32, #tpu.memory_space<vmem>>, vector<8x128xf32>
    %1541 = arith.addf %1540, %1534 : vector<8x128xf32>
    %cst_240 = arith.constant dense<0xFF800000> : vector<8xf32>
    %1542 = vector.multi_reduction <maximumf>, %1541, %cst_240 [1] : vector<8x128xf32> to vector<8xf32>
    %1543 = vector.shape_cast %1542 : vector<8xf32> to vector<8x1xf32>
    %1544 = vector.broadcast %1543 : vector<8x1xf32> to vector<8x128xf32>
    %1545 = arith.cmpf oeq, %1541, %1544 : vector<8x128xf32>
    %c128_i32 = arith.constant 128 : i32
    %1546 = vector.broadcast %c128_i32 : i32 to vector<8x128xi32>
    %1547 = arith.select %1545, %4, %1546 : vector<8x128xi1>, vector<8x128xi32>
    %cst_241 = arith.constant dense<2147483647> : vector<8xi32>
    %1548 = vector.multi_reduction <minsi>, %1547, %cst_241 [1] : vector<8x128xi32> to vector<8xi32>
    %1549 = vector.shape_cast %1548 : vector<8xi32> to vector<8x1xi32>
    %c7_i32_242 = arith.constant 7 : i32
    %1550 = vector.broadcast %c7_i32_242 : i32 to vector<8x128xi32>
    %1551 = arith.cmpi eq, %7, %1550 : vector<8x128xi32>
    %c0_i32_243 = arith.constant 0 : i32
    %1552 = vector.shape_cast %1549 : vector<8x1xi32> to vector<8x1xi32>
    %1553 = vector.broadcast %1552 : vector<8x1xi32> to vector<8x128xi32>
    %1554 = vector.broadcast %c0_i32_243 : i32 to vector<8x128xi32>
    %1555 = arith.select %1551, %1553, %1554 : vector<8x128xi1>, vector<8x128xi32>
    %c7_244 = arith.constant 7 : index
    %c0_245 = arith.constant 0 : index
    %c0_246 = arith.constant 0 : index
    %1556 = vector.load %arg6[%c7_244, %c0_245, %c0_246] : memref<8x8x128xi32, #tpu.memory_space<vmem>>, vector<1x8x128xi32>
    %1557 = vector.shape_cast %1556 : vector<1x8x128xi32> to vector<8x128xi32>
    %1558 = vector.broadcast %1549 : vector<8x1xi32> to vector<8x128xi32>
    %1559 = arith.cmpi eq, %4, %1558 : vector<8x128xi32>
    %c0_i32_247 = arith.constant 0 : i32
    %1560 = vector.broadcast %c0_i32_247 : i32 to vector<8x128xi32>
    %1561 = arith.select %1559, %1557, %1560 : vector<8x128xi1>, vector<8x128xi32>
    %cst_248 = arith.constant dense<0> : vector<8xi32>
    %1562 = vector.multi_reduction <add>, %1561, %cst_248 [1] : vector<8x128xi32> to vector<8xi32>
    %1563 = vector.shape_cast %1562 : vector<8xi32> to vector<8x1xi32>
    %c6_i32_249 = arith.constant 6 : i32
    %1564 = vector.broadcast %c6_i32_249 : i32 to vector<8x128xi32>
    %1565 = arith.cmpi eq, %7, %1564 : vector<8x128xi32>
    %1566 = vector.shape_cast %1563 : vector<8x1xi32> to vector<8x1xi32>
    %1567 = vector.broadcast %1566 : vector<8x1xi32> to vector<8x128xi32>
    %1568 = arith.select %1565, %1567, %1555 : vector<8x128xi1>, vector<8x128xi32>
    %c6_250 = arith.constant 6 : index
    %c0_251 = arith.constant 0 : index
    %c0_252 = arith.constant 0 : index
    %1569 = vector.load %arg6[%c6_250, %c0_251, %c0_252] : memref<8x8x128xi32, #tpu.memory_space<vmem>>, vector<1x8x128xi32>
    %1570 = vector.shape_cast %1569 : vector<1x8x128xi32> to vector<8x128xi32>
    %1571 = vector.broadcast %1563 : vector<8x1xi32> to vector<8x128xi32>
    %1572 = arith.cmpi eq, %4, %1571 : vector<8x128xi32>
    %c0_i32_253 = arith.constant 0 : i32
    %1573 = vector.broadcast %c0_i32_253 : i32 to vector<8x128xi32>
    %1574 = arith.select %1572, %1570, %1573 : vector<8x128xi1>, vector<8x128xi32>
    %cst_254 = arith.constant dense<0> : vector<8xi32>
    %1575 = vector.multi_reduction <add>, %1574, %cst_254 [1] : vector<8x128xi32> to vector<8xi32>
    %1576 = vector.shape_cast %1575 : vector<8xi32> to vector<8x1xi32>
    %c5_i32_255 = arith.constant 5 : i32
    %1577 = vector.broadcast %c5_i32_255 : i32 to vector<8x128xi32>
    %1578 = arith.cmpi eq, %7, %1577 : vector<8x128xi32>
    %1579 = vector.shape_cast %1576 : vector<8x1xi32> to vector<8x1xi32>
    %1580 = vector.broadcast %1579 : vector<8x1xi32> to vector<8x128xi32>
    %1581 = arith.select %1578, %1580, %1568 : vector<8x128xi1>, vector<8x128xi32>
    %c5_256 = arith.constant 5 : index
    %c0_257 = arith.constant 0 : index
    %c0_258 = arith.constant 0 : index
    %1582 = vector.load %arg6[%c5_256, %c0_257, %c0_258] : memref<8x8x128xi32, #tpu.memory_space<vmem>>, vector<1x8x128xi32>
    %1583 = vector.shape_cast %1582 : vector<1x8x128xi32> to vector<8x128xi32>
    %1584 = vector.broadcast %1576 : vector<8x1xi32> to vector<8x128xi32>
    %1585 = arith.cmpi eq, %4, %1584 : vector<8x128xi32>
    %c0_i32_259 = arith.constant 0 : i32
    %1586 = vector.broadcast %c0_i32_259 : i32 to vector<8x128xi32>
    %1587 = arith.select %1585, %1583, %1586 : vector<8x128xi1>, vector<8x128xi32>
    %cst_260 = arith.constant dense<0> : vector<8xi32>
    %1588 = vector.multi_reduction <add>, %1587, %cst_260 [1] : vector<8x128xi32> to vector<8xi32>
    %1589 = vector.shape_cast %1588 : vector<8xi32> to vector<8x1xi32>
    %c4_i32_261 = arith.constant 4 : i32
    %1590 = vector.broadcast %c4_i32_261 : i32 to vector<8x128xi32>
    %1591 = arith.cmpi eq, %7, %1590 : vector<8x128xi32>
    %1592 = vector.shape_cast %1589 : vector<8x1xi32> to vector<8x1xi32>
    %1593 = vector.broadcast %1592 : vector<8x1xi32> to vector<8x128xi32>
    %1594 = arith.select %1591, %1593, %1581 : vector<8x128xi1>, vector<8x128xi32>
    %c4_262 = arith.constant 4 : index
    %c0_263 = arith.constant 0 : index
    %c0_264 = arith.constant 0 : index
    %1595 = vector.load %arg6[%c4_262, %c0_263, %c0_264] : memref<8x8x128xi32, #tpu.memory_space<vmem>>, vector<1x8x128xi32>
    %1596 = vector.shape_cast %1595 : vector<1x8x128xi32> to vector<8x128xi32>
    %1597 = vector.broadcast %1589 : vector<8x1xi32> to vector<8x128xi32>
    %1598 = arith.cmpi eq, %4, %1597 : vector<8x128xi32>
    %c0_i32_265 = arith.constant 0 : i32
    %1599 = vector.broadcast %c0_i32_265 : i32 to vector<8x128xi32>
    %1600 = arith.select %1598, %1596, %1599 : vector<8x128xi1>, vector<8x128xi32>
    %cst_266 = arith.constant dense<0> : vector<8xi32>
    %1601 = vector.multi_reduction <add>, %1600, %cst_266 [1] : vector<8x128xi32> to vector<8xi32>
    %1602 = vector.shape_cast %1601 : vector<8xi32> to vector<8x1xi32>
    %c3_i32_267 = arith.constant 3 : i32
    %1603 = vector.broadcast %c3_i32_267 : i32 to vector<8x128xi32>
    %1604 = arith.cmpi eq, %7, %1603 : vector<8x128xi32>
    %1605 = vector.shape_cast %1602 : vector<8x1xi32> to vector<8x1xi32>
    %1606 = vector.broadcast %1605 : vector<8x1xi32> to vector<8x128xi32>
    %1607 = arith.select %1604, %1606, %1594 : vector<8x128xi1>, vector<8x128xi32>
    %c3_268 = arith.constant 3 : index
    %c0_269 = arith.constant 0 : index
    %c0_270 = arith.constant 0 : index
    %1608 = vector.load %arg6[%c3_268, %c0_269, %c0_270] : memref<8x8x128xi32, #tpu.memory_space<vmem>>, vector<1x8x128xi32>
    %1609 = vector.shape_cast %1608 : vector<1x8x128xi32> to vector<8x128xi32>
    %1610 = vector.broadcast %1602 : vector<8x1xi32> to vector<8x128xi32>
    %1611 = arith.cmpi eq, %4, %1610 : vector<8x128xi32>
    %c0_i32_271 = arith.constant 0 : i32
    %1612 = vector.broadcast %c0_i32_271 : i32 to vector<8x128xi32>
    %1613 = arith.select %1611, %1609, %1612 : vector<8x128xi1>, vector<8x128xi32>
    %cst_272 = arith.constant dense<0> : vector<8xi32>
    %1614 = vector.multi_reduction <add>, %1613, %cst_272 [1] : vector<8x128xi32> to vector<8xi32>
    %1615 = vector.shape_cast %1614 : vector<8xi32> to vector<8x1xi32>
    %c2_i32_273 = arith.constant 2 : i32
    %1616 = vector.broadcast %c2_i32_273 : i32 to vector<8x128xi32>
    %1617 = arith.cmpi eq, %7, %1616 : vector<8x128xi32>
    %1618 = vector.shape_cast %1615 : vector<8x1xi32> to vector<8x1xi32>
    %1619 = vector.broadcast %1618 : vector<8x1xi32> to vector<8x128xi32>
    %1620 = arith.select %1617, %1619, %1607 : vector<8x128xi1>, vector<8x128xi32>
    %c2_274 = arith.constant 2 : index
    %c0_275 = arith.constant 0 : index
    %c0_276 = arith.constant 0 : index
    %1621 = vector.load %arg6[%c2_274, %c0_275, %c0_276] : memref<8x8x128xi32, #tpu.memory_space<vmem>>, vector<1x8x128xi32>
    %1622 = vector.shape_cast %1621 : vector<1x8x128xi32> to vector<8x128xi32>
    %1623 = vector.broadcast %1615 : vector<8x1xi32> to vector<8x128xi32>
    %1624 = arith.cmpi eq, %4, %1623 : vector<8x128xi32>
    %c0_i32_277 = arith.constant 0 : i32
    %1625 = vector.broadcast %c0_i32_277 : i32 to vector<8x128xi32>
    %1626 = arith.select %1624, %1622, %1625 : vector<8x128xi1>, vector<8x128xi32>
    %cst_278 = arith.constant dense<0> : vector<8xi32>
    %1627 = vector.multi_reduction <add>, %1626, %cst_278 [1] : vector<8x128xi32> to vector<8xi32>
    %1628 = vector.shape_cast %1627 : vector<8xi32> to vector<8x1xi32>
    %c1_i32_279 = arith.constant 1 : i32
    %1629 = vector.broadcast %c1_i32_279 : i32 to vector<8x128xi32>
    %1630 = arith.cmpi eq, %7, %1629 : vector<8x128xi32>
    %1631 = vector.shape_cast %1628 : vector<8x1xi32> to vector<8x1xi32>
    %1632 = vector.broadcast %1631 : vector<8x1xi32> to vector<8x128xi32>
    %1633 = arith.select %1630, %1632, %1620 : vector<8x128xi1>, vector<8x128xi32>
    %c1_280 = arith.constant 1 : index
    %c0_281 = arith.constant 0 : index
    %c0_282 = arith.constant 0 : index
    %1634 = vector.load %arg6[%c1_280, %c0_281, %c0_282] : memref<8x8x128xi32, #tpu.memory_space<vmem>>, vector<1x8x128xi32>
    %1635 = vector.shape_cast %1634 : vector<1x8x128xi32> to vector<8x128xi32>
    %1636 = vector.broadcast %1628 : vector<8x1xi32> to vector<8x128xi32>
    %1637 = arith.cmpi eq, %4, %1636 : vector<8x128xi32>
    %c0_i32_283 = arith.constant 0 : i32
    %1638 = vector.broadcast %c0_i32_283 : i32 to vector<8x128xi32>
    %1639 = arith.select %1637, %1635, %1638 : vector<8x128xi1>, vector<8x128xi32>
    %cst_284 = arith.constant dense<0> : vector<8xi32>
    %1640 = vector.multi_reduction <add>, %1639, %cst_284 [1] : vector<8x128xi32> to vector<8xi32>
    %1641 = vector.shape_cast %1640 : vector<8xi32> to vector<8x1xi32>
    %c0_i32_285 = arith.constant 0 : i32
    %1642 = vector.broadcast %c0_i32_285 : i32 to vector<8x128xi32>
    %1643 = arith.cmpi eq, %7, %1642 : vector<8x128xi32>
    %1644 = vector.shape_cast %1641 : vector<8x1xi32> to vector<8x1xi32>
    %1645 = vector.broadcast %1644 : vector<8x1xi32> to vector<8x128xi32>
    %1646 = arith.select %1643, %1645, %1633 : vector<8x128xi1>, vector<8x128xi32>
    %c0_286 = arith.constant 0 : index
    %c0_287 = arith.constant 0 : index
    %1647 = vector.load %arg4[%c0_286, %c0_287] : memref<8x128xi32, #tpu.memory_space<vmem>>, vector<8x128xi32>
    tpu.vector_store %arg4[%c0_286, %c0_287], %1646 {strides = array<i32>} : memref<8x128xi32, #tpu.memory_space<vmem>>, vector<8x128xi32>,
    return
  }
  func.func @transform_0(%arg0: i32) -> (i32, i32) {
    %c0_i32 = arith.constant 0 : i32
    %c0_i32_0 = arith.constant 0 : i32
    return %arg0, %c0_i32 : i32, i32
  }
  func.func @transform_1(%arg0: i32) -> (i32, i32) {
    %c0_i32 = arith.constant 0 : i32
    %c0_i32_0 = arith.constant 0 : i32
    %c0_i32_1 = arith.constant 0 : i32
    return %c0_i32, %c0_i32_0 : i32, i32
  }
  func.func @transform_2(%arg0: i32) -> (i32, i32) {
    %c0_i32 = arith.constant 0 : i32
    %c0_i32_0 = arith.constant 0 : i32
    %c0_i32_1 = arith.constant 0 : i32
    return %c0_i32, %c0_i32_0 : i32, i32
  }
  func.func @transform_3(%arg0: i32) -> (i32, i32) {
    %c0_i32 = arith.constant 0 : i32
    %c0_i32_0 = arith.constant 0 : i32
    return %arg0, %c0_i32 : i32, i32
  }
}

</mosaic_0001>

<bundles_post_ra>
// kernel: tpu_custom_call.1
= control target key start
LH: loop header
LB: loop body
LE: loop exit
PB: predicated region body
PF: predicated region fallthrough
CT: control target
= control target key end

     0   :  { %8 = vsyncpa [#allocation5], 0  ;;  %s3125_s0 = inlined_call_operand.hbm [shape: f32[64,128], index: 0, kind: input, shape index: {}]   ;;  %s3126_s1 = inlined_call_operand.hbm [shape: f32[128,128], index: 1, kind: input, shape index: {}]   ;;  %s3127_s2 = inlined_call_operand.hbm [shape: f32[128,128], index: 2, kind: input, shape index: {}]   ;;  %s3128_s3 = inlined_call_operand.hbm [shape: s32[8,128], index: 3, kind: output, shape index: {}]  }
   0x1   :  { %9 = vsyncpa [#allocation8], 0 }
   0x2   :  { %10 = vsyncpa [#allocation6], 0  ;;  %s2494_s12 = smov [#allocation7]   ;;  %s2495_s14 = smov [#allocation4]  }
   0x3   :  { %s28_s13 = sshll.u32 %s2494_s12, 4  ;;  %s16_s15 = sshll.u32 %s2495_s14, 4  ;;  %s29_s13 = int_to_ptr.vmem [resolvable:$true] %s28_s13  ;;  %s2546_s15 = int_to_ptr.vmem [resolvable:$true] %s16_s15 }
   0x4   :  { %s2400_s18 = scalar_lea.hbm %s3126_s1, 2048 }
   0x5   :  { %p2401_p0 = scmp.ne.s32.totalorder %s3126_s1, %s2400_s18  ;;  %p2404_p1 = scmp.lt.u32.totalorder %s2400_s18, %s3126_s1 }
   0x7   :  { %p2406_p2 = pnand %p2404_p1, %p2401_p0 }
   0x9   :  { %2409 = shalt.err (!%p2406_p2)
}
   0xa   :  { %s2410_s23 = scalar_lea.vmem %s29_s13, 2048  ;;  %p2415_p4 = scmp.lt.s32.totalorder %s29_s13, %s29_s13 }
   0xb   :  { %p2411_p3 = scmp.ne.s32.totalorder %s29_s13, %s2410_s23  ;;  %p2416_p5 = scmp.lt.s32.totalorder %s2410_s23, %s2410_s23 }
   0xd   :  { %p2417_p6 = por %p2416_p5, %p2415_p4 }
   0xf   :  { %p2418_p7 = pnand %p2417_p6, %p2411_p3 }
  0x11   :  { %2421 = shalt.err (!%p2418_p7)
}
  0x12   :  { %s2496_s24 = smov 128   ;;  %s2497_s25 = smov 8  }
  0x13   :  { %34 = dma.hbm_to_vmem [thread:$0]  %s3126_s1, 2048, %s29_s13, [#allocation8], %s2496_s24, %s2496_s24, %s2497_s25  }
  0x14   :  { %s2422_s30 = scalar_lea.hbm %s3125_s0, 1024 }
  0x15   :  { %p2423_p8 = scmp.ne.s32.totalorder %s3125_s0, %s2422_s30  ;;  %p2426_p9 = scmp.lt.u32.totalorder %s2422_s30, %s3125_s0 }
  0x17   :  { %p2428_p10 = pnand %p2426_p9, %p2423_p8 }
  0x19   :  { %2431 = shalt.err (!%p2428_p10)
}
  0x1a   :  { %s2432_s8 = scalar_lea.vmem %s2546_s15, 1024  ;;  %p2437_p12 = scmp.lt.s32.totalorder %s2546_s15, %s2546_s15 }
  0x1b   :  { %p2433_p11 = scmp.ne.s32.totalorder %s2546_s15, %s2432_s8  ;;  %p2438_p13 = scmp.lt.s32.totalorder %s2432_s8, %s2432_s8 }
  0x1d   :  { %p2439_p0 = por %p2438_p13, %p2437_p12 }
  0x1f   :  { %p2440_p1 = pnand %p2439_p0, %p2433_p11 }
  0x21   :  { %2443 = shalt.err (!%p2440_p1)
}
  0x22   :  { %22 = dma.hbm_to_vmem [thread:$0]  %s3125_s0, 1024, %s2546_s15, [#allocation5], %s2496_s24, %s2496_s24, %s2497_s25  }
  0x23   :  { %s2498_s10 = smov [#allocation9]   ;;  %s2444_s14 = scalar_lea.hbm %s3127_s2, 2048 }
  0x24   :  { %s40_s11 = sshll.u32 %s2498_s10, 4  ;;  %p2445_p2 = scmp.ne.s32.totalorder %s3127_s2, %s2444_s14  ;;  %s41_s11 = int_to_ptr.vmem [resolvable:$true] %s40_s11 }
  0x25   :  { %p2448_p3 = scmp.lt.u32.totalorder %s2444_s14, %s3127_s2 }
  0x27   :  { %p2450_p4 = pnand %p2448_p3, %p2445_p2 }
  0x29   :  { %2453 = shalt.err (!%p2450_p4)
}
  0x2a   :  { %s2454_s20 = scalar_lea.vmem %s41_s11, 2048  ;;  %p2459_p6 = scmp.lt.s32.totalorder %s41_s11, %s41_s11 }
  0x2b   :  { %p2455_p5 = scmp.ne.s32.totalorder %s41_s11, %s2454_s20  ;;  %p2460_p7 = scmp.lt.s32.totalorder %s2454_s20, %s2454_s20 }
  0x2d   :  { %p2461_p8 = por %p2460_p7, %p2459_p6 }
  0x2f   :  { %p2462_p9 = pnand %p2461_p8, %p2455_p5 }
  0x31   :  { %2465 = shalt.err (!%p2462_p9)
}
  0x32   :  { %46 = dma.hbm_to_vmem [thread:$0]  %s3127_s2, 2048, %s41_s11, [#allocation8], %s2496_s24, %s2496_s24, %s2497_s25  }
  0x33   :  { %2488 = dma.done.wait [#allocation5], 1024  }
  0x34   :  { %2489 = vsyncadd [#allocation5], 4294966272 }
  0x35   :  { %2490 = dma.done.wait [#allocation8], 4096  }
  0x36   :  { %2491 = vsyncadd [#allocation8], 4294963200  ;;  %v64_v0 = vld [vmem:[#allocation7] sm:$0xff]  ;;  %v65_v1 = vld [vmem:[#allocation7 + $0x8] sm:$0xff]  ;;  %v3159_v32 = vmov 2   ;;  %v3129_v33 = vmov 0   ;;  %v193_v40 = vlaneseq }
  0x37   :  { %v66_v2 = vld [vmem:[#allocation7 + $0x10] sm:$0xff]  ;;  %v2085_v3 = vpack.c.bf16 %v65_v1, %v64_v0  ;;  %v67_v4 = vld [vmem:[#allocation7 + $0x18] sm:$0xff]  ;;  %v68_v6 = vld [vmem:[#allocation7 + $0x20] sm:$0xff]  ;;  %2167 = vset.pattern.permute.xlu1 %v3159_v32  ;;  %2165 = vset.pattern.permute.xlu0 %v3129_v33  ;;  %v3179_v48 = vmov 3   ;;  %v3141_v49 = vmov 1   ;;  %v3177_v50 = vmov 4  }
  0x38   :  { %v2089_v5 = vpack.c.bf16 %v67_v4, %v66_v2  ;;  %v69_v7 = vld [vmem:[#allocation7 + $0x28] sm:$0xff]  ;;  %v56_v9 = vld [vmem:[#allocation4] sm:$0xff]  ;;  %v70_v11 = vld [vmem:[#allocation7 + $0x30] sm:$0xff]  ;;  %v2600_v43 = vand.u32 127, %v193_v40  ;;  %v3173_v51 = vmov 5   ;;  %v3175_v52 = vmov 6  }
  0x39   :  { %2086 = vmatprep.subr.bf16.mxu0 %v2085_v3  ;;  %2117 = vmatprep.subr.bf16.mxu1 %v2085_v3  ;;  %v2093_v8 = vpack.c.bf16 %v69_v7, %v68_v6  ;;  %v60_v10 = vld [vmem:[#allocation4 + $0x20] sm:$0xff]  ;;  %v71_v12 = vld [vmem:[#allocation7 + $0x38] sm:$0xff]  ;;  %v73_v15 = vld [vmem:[#allocation7 + $0x48] sm:$0xff]  ;;  %v3171_v53 = vmov 8   ;;  %v3169_v54 = vmov 7   ;;  %v3157_v55 = vmov 11  }
  0x3a   :  { %2088 = vmatpush3.bf16.msra.mxu0 %v2085_v3  ;;  %2125 = vmatpush3.bf16.msra.mxu1 %v2085_v3  ;;  %v2097_v13 = vpack.c.bf16 %v71_v12, %v70_v11  ;;  %v72_v14 = vld [vmem:[#allocation7 + $0x40] sm:$0xff]  ;;  %v74_v17 = vld [vmem:[#allocation7 + $0x50] sm:$0xff]  ;;  %v75_v18 = vld [vmem:[#allocation7 + $0x58] sm:$0xff]  ;;  %3191 = vst [vmem:[#allocation14_spill] sm:$0xff] %v2600_v43  ;;  %vm195_vm0 = vcmp.lt.s32.totalorder %v2600_v43, 26  ;;  %v3167_v56 = vmov 9  }
  0x3b   :  { %2090 = vmatprep.subr.bf16.mxu0 %v2089_v5  ;;  %2118 = vmatprep.subr.bf16.mxu1 %v2089_v5  ;;  %v2101_v16 = vpack.c.bf16 %v73_v15, %v72_v14  ;;  %v2105_v19 = vpack.c.bf16 %v75_v18, %v74_v17  ;;  %v76_v20 = vld [vmem:[#allocation7 + $0x60] sm:$0xff]  ;;  %v77_v21 = vld [vmem:[#allocation7 + $0x68] sm:$0xff]  ;;  %v78_v23 = vld [vmem:[#allocation7 + $0x70] sm:$0xff]  ;;  %v3153_v57 = vmov 14   ;;  %v3165_v58 = vmov 10   ;;  %s2525_s2 = smov [#allocation10]  }
  0x3c   :  { %2073 = vmatprep.mubr.f32.mxu0 %v56_v9  ;;  %2079 = vmatprep.mubr.f32.mxu1 %v60_v10  ;;  %v2109_v22 = vpack.c.bf16 %v77_v21, %v76_v20  ;;  %v79_v24 = vld [vmem:[#allocation7 + $0x78] sm:$0xff]  ;;  %v57_v26 = vld [vmem:[#allocation4 + $0x8] sm:$0xff]  ;;  %v58_v28 = vld [vmem:[#allocation4 + $0x10] sm:$0xff]  ;;  %v3149_v59 = vmov 17   ;;  %v3155_v60 = vmov 12   ;;  %v3137_v61 = vmov 20  }
  0x3d   :  { %v2113_v25 = vpack.c.bf16 %v79_v24, %v78_v23  ;;  %v61_v27 = vld [vmem:[#allocation4 + $0x28] sm:$0xff]  ;;  %v62_v29 = vld [vmem:[#allocation4 + $0x30] sm:$0xff]  ;;  %v59_v30 = vld [vmem:[#allocation4 + $0x18] sm:$0xff]  ;;  %v3163_v62 = vmov 13   ;;  %v3133_v63 = vmov 23   ;;  %v3151_v0 = vmov 15  }
  0x3e   :  { %2092 = vmatpush3.bf16.msra.mxu0 %v2089_v5  ;;  %2126 = vmatpush3.bf16.msra.mxu1 %v2089_v5  ;;  %v63_v31 = vld [vmem:[#allocation4 + $0x38] sm:$0xff]  ;;  %v3161_v1 = vmov 16   ;;  %v3147_v2 = vmov 18   ;;  %v3139_v3 = vmov 19   ;;  %v3145_v4 = vmov 21   ;;  %s1981_s21 = sshll.u32 %s2525_s2, 4  ;;  %s1982_s21 = int_to_ptr.vmem [resolvable:$true] %s1981_s21 }
  0x3f   :  { %2094 = vmatprep.subr.bf16.mxu0 %v2093_v8  ;;  %2119 = vmatprep.subr.bf16.mxu1 %v2093_v8  ;;  %v3135_v5 = vmov 22   ;;  %v3143_v6 = vmov 24   ;;  %v3131_v7 = vmov 25   ;;  %v2660_v12 = vld [vmem:[#allocation9 + $0x1] ss:$0 sm:$0xff]  ;;  %s2466_s22 = scalar_lea.vmem %s1982_s21, 128  ;;  %p2471_p11 = scmp.lt.s32.totalorder %s1982_s21, %s1982_s21 }
  0x40   :  { %v2665_v18 = vld [vmem:[#allocation9 + $0x3] ss:$0 sm:$0xff]  ;;  %v2668_v20 = vld [vmem:[#allocation9 + $0x4] ss:$0 sm:$0xff]  ;;  %p2467_p10 = scmp.ne.s32.totalorder %s1982_s21, %s2466_s22  ;;  %p2472_p12 = scmp.lt.s32.totalorder %s2466_s22, %s2466_s22 }
  0x42   :  { %2096 = vmatpush3.bf16.msra.mxu0 %v2093_v8  ;;  %2127 = vmatpush3.bf16.msra.mxu1 %v2093_v8  ;;  %v2657_v8 = vld [vmem:[#allocation9] ss:$0 sm:$0xff]  ;;  %p2473_p13 = por %p2472_p12, %p2471_p11 }
  0x43   :  { %2098 = vmatprep.subr.bf16.mxu0 %v2097_v13  ;;  %2120 = vmatprep.subr.bf16.mxu1 %v2097_v13 }
  0x44   :  { %p2474_p0 = pnand %p2473_p13, %p2467_p10 }
  0x46   :  { %2100 = vmatpush3.bf16.msra.mxu0 %v2097_v13  ;;  %2128 = vmatpush3.bf16.msra.mxu1 %v2097_v13  ;;  %v2662_v13 = vld [vmem:[#allocation9 + $0x2] ss:$0 sm:$0xff] }
  0x47   :  { %2102 = vmatprep.subr.bf16.mxu0 %v2101_v16  ;;  %2121 = vmatprep.subr.bf16.mxu1 %v2101_v16 }
  0x4a   :  { %2104 = vmatpush3.bf16.msra.mxu0 %v2101_v16  ;;  %2129 = vmatpush3.bf16.msra.mxu1 %v2101_v16 }
  0x4b   :  { %2106 = vmatprep.subr.bf16.mxu0 %v2105_v19  ;;  %2122 = vmatprep.subr.bf16.mxu1 %v2105_v19 }
  0x4e   :  { %2108 = vmatpush3.bf16.msra.mxu0 %v2105_v19  ;;  %2130 = vmatpush3.bf16.msra.mxu1 %v2105_v19 }
  0x4f   :  { %2110 = vmatprep.subr.bf16.mxu0 %v2109_v22  ;;  %2123 = vmatprep.subr.bf16.mxu1 %v2109_v22 }
  0x52   :  { %2112 = vmatpush3.bf16.msra.mxu0 %v2109_v22  ;;  %2131 = vmatpush3.bf16.msra.mxu1 %v2109_v22 }
  0x53   :  { %2114 = vmatprep.subr.bf16.mxu0 %v2113_v25  ;;  %2124 = vmatprep.subr.bf16.mxu1 %v2113_v25 }
  0x56   :  { %2116 = vmatpush3.bf16.msra.mxu0 %v2113_v25  ;;  %2132 = vmatpush3.bf16.msra.mxu1 %v2113_v25 }
  0x59   :  { %2074 = vmatmul.mubr.f32.vlgmr.msra.gmra.mrb[0].mxu0 %v57_v26  ;;  %2080 = vmatmul.mubr.f32.vlgmr.msra.gmra.mrb[0].mxu1 %v61_v27 }
  0x5a   :  { %2076 = vmatprep.mubr.f32.mxu0 %v58_v28  ;;  %2082 = vmatprep.mubr.f32.mxu1 %v62_v29  ;;  %v2673_v28 = vld [vmem:[#allocation9 + $0x5] ss:$0 sm:$0xff] }
  0x5d   :  { %2077 = vmatmul.mubr.f32.gmra.mrb[2].mxu0 %v59_v30  ;;  %2083 = vmatmul.mubr.f32.gmra.mrb[2].mxu1 %v63_v31 }
 0x12c   :  { %v2075_v34 = vpop.f32.mrb[0].mxu0  ;;  %v2081_v35 = vpop.f32.mrb[0].mxu1 }
 0x12d   :  { %186 = vst [vmem:[#allocation2 + $0x8] sm:$0xff] %v2075_v34  ;;  %190 = vst [vmem:[#allocation2 + $0x28] sm:$0xff] %v2081_v35  ;;  %v146_v36 = vpop.f32.mrb[1].mxu0  ;;  %v166_v37 = vpop.f32.mrb[1].mxu1  ;;  %v2675_v34 = vld [vmem:[#allocation9 + $0x6] ss:$0 sm:$0xff] }
 0x12e   :  { %185 = vst [vmem:[#allocation2] sm:$0xff] %v146_v36  ;;  %189 = vst [vmem:[#allocation2 + $0x20] sm:$0xff] %v166_v37 }
 0x130   :  { %v2078_v38 = vpop.f32.mrb[2].mxu0  ;;  %v2084_v39 = vpop.f32.mrb[2].mxu1 }
 0x131   :  { %188 = vst [vmem:[#allocation2 + $0x18] sm:$0xff] %v2078_v38  ;;  %192 = vst [vmem:[#allocation2 + $0x38] sm:$0xff] %v2084_v39  ;;  %v156_v41 = vpop.f32.mrb[3].mxu0  ;;  %v176_v42 = vpop.f32.mrb[3].mxu1 }
 0x132   :  { %187 = vst [vmem:[#allocation2 + $0x10] sm:$0xff] %v156_v41  ;;  %191 = vst [vmem:[#allocation2 + $0x30] sm:$0xff] %v176_v42  ;;  %v2679_v42 = vld [vmem:[#allocation9 + $0x7] ss:$0 sm:$0xff] }
 0x139   :  { %v222_v44 = vld [vmem:[#allocation2] ss:$8 sm:$0xf] }
 0x13a   :  { %v223_v45 = vld [vmem:[#allocation2] ss:$8 sm:$0xf0] }
 0x13b   :  { %v224_v46 = vor.u32 %v223_v45, %v222_v44  ;;  %v2681_v45 = vld [vmem:[#allocation9 + $0x8] ss:$0 sm:$0xff] }
 0x13d   :  { %v2603_v47 = vsel %vm195_vm0, %v224_v46, -1e+30 }
 0x13e   :  { %251 = vperm.xlu1 %2167, %v2603_v47   ;;  %228 = vperm.xlu0 %2165, %v2603_v47  }
 0x142   :  { %2168 = vset.pattern.permute.xlu1 %v3179_v48  ;;  %2166 = vset.pattern.permute.xlu0 %v3141_v49 }
 0x143   :  { %263 = vperm.xlu1 %2168, %v2603_v47   ;;  %239 = vperm.xlu0 %2166, %v2603_v47  }
 0x147   :  { %2169 = vset.pattern.permute.xlu1 %v3177_v50  ;;  %2170 = vset.pattern.permute.xlu0 %v3173_v51 }
 0x148   :  { %275 = vperm.xlu1 %2169, %v2603_v47   ;;  %287 = vperm.xlu0 %2170, %v2603_v47  }
 0x14c   :  { %2171 = vset.pattern.permute.xlu1 %v3175_v52  ;;  %2173 = vset.pattern.permute.xlu0 %v3171_v53 }
 0x14d   :  { %299 = vperm.xlu1 %2171, %v2603_v47   ;;  %323 = vperm.xlu0 %2173, %v2603_v47  }
 0x151   :  { %2172 = vset.pattern.permute.xlu1 %v3169_v54  ;;  %2176 = vset.pattern.permute.xlu0 %v3157_v55 }
 0x152   :  { %311 = vperm.xlu1 %2172, %v2603_v47   ;;  %359 = vperm.xlu0 %2176, %v2603_v47  }
 0x156   :  { %2174 = vset.pattern.permute.xlu1 %v3167_v56  ;;  %2179 = vset.pattern.permute.xlu0 %v3153_v57 }
 0x157   :  { %335 = vperm.xlu1 %2174, %v2603_v47   ;;  %395 = vperm.xlu0 %2179, %v2603_v47  }
 0x15b   :  { %2175 = vset.pattern.permute.xlu1 %v3165_v58  ;;  %2182 = vset.pattern.permute.xlu0 %v3149_v59 }
 0x15c   :  { %347 = vperm.xlu1 %2175, %v2603_v47   ;;  %431 = vperm.xlu0 %2182, %v2603_v47  }
 0x160   :  { %2177 = vset.pattern.permute.xlu1 %v3155_v60  ;;  %2185 = vset.pattern.permute.xlu0 %v3137_v61  ;;  %v541_v61 = vld [vmem:[#allocation2 + $0x1] ss:$8 sm:$0xf] }
 0x161   :  { %371 = vperm.xlu1 %2177, %v2603_v47   ;;  %467 = vperm.xlu0 %2185, %v2603_v47  }
 0x165   :  { %2178 = vset.pattern.permute.xlu1 %v3163_v62  ;;  %2188 = vset.pattern.permute.xlu0 %v3133_v63  ;;  %v2733_v63 = vld [vmem:[#allocation9 + $0x19] ss:$0 sm:$0xff] }
 0x166   :  { %383 = vperm.xlu1 %2178, %v2603_v47   ;;  %503 = vperm.xlu0 %2188, %v2603_v47  }
 0x16a   :  { %2180 = vset.pattern.permute.xlu1 %v3151_v0  ;;  %2191 = vset.pattern.permute.xlu0 %v3129_v33 }
 0x16b   :  { %407 = vperm.xlu1 %2180, %v2603_v47  }
 0x16f   :  { %2181 = vset.pattern.permute.xlu1 %v3161_v1 }
 0x170   :  { %419 = vperm.xlu1 %2181, %v2603_v47  }
 0x174   :  { %2183 = vset.pattern.permute.xlu1 %v3147_v2 }
 0x175   :  { %443 = vperm.xlu1 %2183, %v2603_v47  }
 0x179   :  { %2184 = vset.pattern.permute.xlu1 %v3139_v3 }
 0x17a   :  { %455 = vperm.xlu1 %2184, %v2603_v47  }
 0x17e   :  { %2186 = vset.pattern.permute.xlu1 %v3145_v4 }
 0x17f   :  { %479 = vperm.xlu1 %2186, %v2603_v47  }
 0x183   :  { %2187 = vset.pattern.permute.xlu1 %v3135_v5 }
 0x184   :  { %491 = vperm.xlu1 %2187, %v2603_v47  }
 0x188   :  { %2189 = vset.pattern.permute.xlu1 %v3143_v6 }
 0x189   :  { %515 = vperm.xlu1 %2189, %v2603_v47  }
 0x18d   :  { %2190 = vset.pattern.permute.xlu1 %v3131_v7  ;;  %v2726_v7 = vld [vmem:[#allocation9 + $0x17] ss:$0 sm:$0xff] }
 0x18e   :  { %527 = vperm.xlu1 %2190, %v2603_v47  }
 0x192   :  { %2192 = vset.pattern.permute.xlu1 %v3141_v49 }
 0x1bd   :  { %v252_v9 = vpop.permute.xlu1 %251  ;;  %v229_v10 = vpop.permute.xlu0 %228 }
 0x1be   :  { %v235_v11 = vadd.f32 %v2657_v8, %v229_v10  ;;  %v258_v19 = vadd.f32 %v2662_v13, %v252_v9 }
 0x1c0   :  { %vm236_vm1 = vcmp.gt.f32.partialorder %v235_v11, -1e+30 }
 0x1c1   :  { %v237_v17 = vsel %vm236_vm1, %v235_v11, -1e+30 }
 0x1c2   :  { %v264_v14 = vpop.permute.xlu1 %263  ;;  %v240_v15 = vpop.permute.xlu0 %239 }
 0x1c3   :  { %v246_v16 = vadd.f32 %v2660_v12, %v240_v15  ;;  %v270_v23 = vadd.f32 %v2665_v18, %v264_v14  ;;  %v2685_v14 = vld [vmem:[#allocation9 + $0x9] ss:$0 sm:$0xff] }
 0x1c5   :  { %vm247_vm2 = vcmp.gt.f32.partialorder %v246_v16, %v237_v17 }
 0x1c6   :  { %v248_v21 = vsel %vm247_vm2, %v246_v16, %v237_v17  ;;  %v249_v22 = vsel %vm247_vm2, 1, %v3129_v33 }
 0x1c7   :  { %vm259_vm3 = vcmp.gt.f32.partialorder %v258_v19, %v248_v21  ;;  %v276_v24 = vpop.permute.xlu1 %275  ;;  %v288_v29 = vpop.permute.xlu0 %287 }
 0x1c8   :  { %v260_v25 = vsel %vm259_vm3, %v258_v19, %v248_v21  ;;  %v261_v26 = vsel %vm259_vm3, 2, %v249_v22  ;;  %v282_v27 = vadd.f32 %v2668_v20, %v276_v24  ;;  %v294_v35 = vadd.f32 %v2673_v28, %v288_v29 }
 0x1c9   :  { %vm271_vm4 = vcmp.gt.f32.partialorder %v270_v23, %v260_v25 }
 0x1ca   :  { %v272_v30 = vsel %vm271_vm4, %v270_v23, %v260_v25  ;;  %v273_v31 = vsel %vm271_vm4, 3, %v261_v26  ;;  %v2688_v23 = vld [vmem:[#allocation9 + $0xa] ss:$0 sm:$0xff]  ;;  %v2690_v25 = vld [vmem:[#allocation9 + $0xb] ss:$0 sm:$0xff] }
 0x1cb   :  { %vm283_vm5 = vcmp.gt.f32.partialorder %v282_v27, %v272_v30 }
 0x1cc   :  { %v285_v36 = vsel %vm283_vm5, 4, %v273_v31  ;;  %v284_v37 = vsel %vm283_vm5, %v282_v27, %v272_v30  ;;  %v300_v38 = vpop.permute.xlu1 %299  ;;  %v324_v46 = vpop.permute.xlu0 %323 }
 0x1cd   :  { %vm295_vm6 = vcmp.gt.f32.partialorder %v294_v35, %v284_v37  ;;  %v306_v39 = vadd.f32 %v2675_v34, %v300_v38  ;;  %v330_v11 = vadd.f32 %v2681_v45, %v324_v46 }
 0x1ce   :  { %v297_v40 = vsel %vm295_vm6, 5, %v285_v36  ;;  %v296_v41 = vsel %vm295_vm6, %v294_v35, %v284_v37  ;;  %v2694_v35 = vld [vmem:[#allocation9 + $0xc] ss:$0 sm:$0xff] }
 0x1cf   :  { %vm307_vm7 = vcmp.gt.f32.partialorder %v306_v39, %v296_v41 }
 0x1d0   :  { %v309_v44 = vsel %vm307_vm7, 6, %v297_v40  ;;  %v308_v10 = vsel %vm307_vm7, %v306_v39, %v296_v41 }
 0x1d1   :  { %v312_v47 = vpop.permute.xlu1 %311  ;;  %v360_v26 = vpop.permute.xlu0 %359 }
 0x1d2   :  { %v318_v9 = vadd.f32 %v2679_v42, %v312_v47  ;;  %v366_v31 = vadd.f32 %v2690_v25, %v360_v26  ;;  %v2699_v47 = vld [vmem:[#allocation9 + $0xe] ss:$0 sm:$0xff] }
 0x1d4   :  { %vm319_vm8 = vcmp.gt.f32.partialorder %v318_v9, %v308_v10 }
 0x1d5   :  { %v320_v15 = vsel %vm319_vm8, %v318_v9, %v308_v10  ;;  %v321_v16 = vsel %vm319_vm8, 7, %v309_v44  ;;  %v2697_v44 = vld [vmem:[#allocation9 + $0xd] ss:$0 sm:$0xff] }
 0x1d6   :  { %v336_v17 = vpop.permute.xlu1 %335  ;;  %vm331_vm9 = vcmp.gt.f32.partialorder %v330_v11, %v320_v15  ;;  %v396_v9 = vpop.permute.xlu0 %395 }
 0x1d7   :  { %v332_v19 = vsel %vm331_vm9, %v330_v11, %v320_v15  ;;  %v333_v21 = vsel %vm331_vm9, 8, %v321_v16  ;;  %v342_v22 = vadd.f32 %v2685_v14, %v336_v17  ;;  %v402_v16 = vadd.f32 %v2699_v47, %v396_v9  ;;  %v2703_v17 = vld [vmem:[#allocation9 + $0xf] ss:$0 sm:$0xff] }
 0x1d9   :  { %vm343_vm10 = vcmp.gt.f32.partialorder %v342_v22, %v332_v19 }
 0x1da   :  { %v345_v24 = vsel %vm343_vm10, 9, %v333_v21  ;;  %v344_v30 = vsel %vm343_vm10, %v342_v22, %v332_v19 }
 0x1db   :  { %v348_v27 = vpop.permute.xlu1 %347 }
 0x1dc   :  { %v354_v29 = vadd.f32 %v2688_v23, %v348_v27 }
 0x1de   :  { %vm355_vm11 = vcmp.gt.f32.partialorder %v354_v29, %v344_v30 }
 0x1df   :  { %v356_v36 = vsel %vm355_vm11, %v354_v29, %v344_v30  ;;  %v357_v37 = vsel %vm355_vm11, 10, %v345_v24  ;;  %v2706_v29 = vld [vmem:[#allocation9 + $0x10] ss:$0 sm:$0xff] }
 0x1e0   :  { %v372_v38 = vpop.permute.xlu1 %371  ;;  %vm367_vm12 = vcmp.gt.f32.partialorder %v366_v31, %v356_v36 }
 0x1e1   :  { %v368_v39 = vsel %vm367_vm12, %v366_v31, %v356_v36  ;;  %v369_v40 = vsel %vm367_vm12, 11, %v357_v37  ;;  %v378_v41 = vadd.f32 %v2694_v35, %v372_v38  ;;  %v2708_v31 = vld [vmem:[#allocation9 + $0x11] ss:$0 sm:$0xff]  ;;  %v432_v36 = vpop.permute.xlu0 %431 }
 0x1e3   :  { %vm379_vm13 = vcmp.gt.f32.partialorder %v378_v41, %v368_v39 }
 0x1e4   :  { %v381_v46 = vsel %vm379_vm13, 12, %v369_v40  ;;  %v380_v15 = vsel %vm379_vm13, %v378_v41, %v368_v39  ;;  %v438_v40 = vadd.f32 %v2708_v31, %v432_v36  ;;  %v2712_v41 = vld [vmem:[#allocation9 + $0x12] ss:$0 sm:$0xff] }
 0x1e5   :  { %v384_v10 = vpop.permute.xlu1 %383 }
 0x1e6   :  { %v390_v11 = vadd.f32 %v2697_v44, %v384_v10 }
 0x1e8   :  { %vm391_vm14 = vcmp.gt.f32.partialorder %v390_v11, %v380_v15 }
 0x1e9   :  { %v392_v19 = vsel %vm391_vm14, %v390_v11, %v380_v15  ;;  %v393_v21 = vsel %vm391_vm14, 13, %v381_v46 }
 0x1ea   :  { %v408_v22 = vpop.permute.xlu1 %407  ;;  %vm403_vm15 = vcmp.gt.f32.partialorder %v402_v16, %v392_v19 }
 0x1eb   :  { %v404_v24 = vsel %vm403_vm15, %v402_v16, %v392_v19  ;;  %v405_v26 = vsel %vm403_vm15, 14, %v393_v21  ;;  %v414_v27 = vadd.f32 %v2703_v17, %v408_v22  ;;  %v2715_v19 = vld [vmem:[#allocation9 + $0x13] ss:$0 sm:$0xff]  ;;  %v2717_v22 = vld [vmem:[#allocation9 + $0x14] ss:$0 sm:$0xff] }
 0x1ed   :  { %vm415_vm0 = vcmp.gt.f32.partialorder %v414_v27, %v404_v24 }
 0x1ee   :  { %v417_v30 = vsel %vm415_vm0, 15, %v405_v26  ;;  %v416_v39 = vsel %vm415_vm0, %v414_v27, %v404_v24  ;;  %v468_v24 = vpop.permute.xlu0 %467 }
 0x1ef   :  { %v420_v37 = vpop.permute.xlu1 %419 }
 0x1f0   :  { %v426_v38 = vadd.f32 %v2706_v29, %v420_v37  ;;  %v474_v37 = vadd.f32 %v2717_v22, %v468_v24 }
 0x1f2   :  { %vm427_vm1 = vcmp.gt.f32.partialorder %v426_v38, %v416_v39 }
 0x1f3   :  { %v428_v46 = vsel %vm427_vm1, %v426_v38, %v416_v39  ;;  %v429_v9 = vsel %vm427_vm1, 16, %v417_v30  ;;  %v2721_v30 = vld [vmem:[#allocation9 + $0x15] ss:$0 sm:$0xff] }
 0x1f4   :  { %v444_v10 = vpop.permute.xlu1 %443  ;;  %vm439_vm2 = vcmp.gt.f32.partialorder %v438_v40, %v428_v46 }
 0x1f5   :  { %v440_v11 = vsel %vm439_vm2, %v438_v40, %v428_v46  ;;  %v441_v15 = vsel %vm439_vm2, 17, %v429_v9  ;;  %v450_v16 = vadd.f32 %v2712_v41, %v444_v10 }
 0x1f7   :  { %vm451_vm3 = vcmp.gt.f32.partialorder %v450_v16, %v440_v11 }
 0x1f8   :  { %v453_v21 = vsel %vm451_vm3, 18, %v441_v15  ;;  %v452_v36 = vsel %vm451_vm3, %v450_v16, %v440_v11  ;;  %v2724_v15 = vld [vmem:[#allocation9 + $0x16] ss:$0 sm:$0xff]  ;;  %v504_v11 = vpop.permute.xlu0 %503 }
 0x1f9   :  { %v456_v26 = vpop.permute.xlu1 %455 }
 0x1fa   :  { %v462_v27 = vadd.f32 %v2715_v19, %v456_v26 }
 0x1fc   :  { %vm463_vm4 = vcmp.gt.f32.partialorder %v462_v27, %v452_v36 }
 0x1fd   :  { %v464_v38 = vsel %vm463_vm4, %v462_v27, %v452_v36  ;;  %v465_v39 = vsel %vm463_vm4, 19, %v453_v21  ;;  %v510_v27 = vadd.f32 %v2726_v7, %v504_v11  ;;  %v2730_v21 = vld [vmem:[#allocation9 + $0x18] ss:$0 sm:$0xff] }
 0x1fe   :  { %v480_v40 = vpop.permute.xlu1 %479  ;;  %vm475_vm5 = vcmp.gt.f32.partialorder %v474_v37, %v464_v38 }
 0x1ff   :  { %v476_v46 = vsel %vm475_vm5, %v474_v37, %v464_v38  ;;  %v477_v9 = vsel %vm475_vm5, 20, %v465_v39  ;;  %v486_v10 = vadd.f32 %v2721_v30, %v480_v40 }
 0x201   :  { %vm487_vm6 = vcmp.gt.f32.partialorder %v486_v10, %v476_v46 }
 0x202   :  { %v489_v33 = vsel %vm487_vm6, 21, %v477_v9  ;;  %v488_v26 = vsel %vm487_vm6, %v486_v10, %v476_v46 }
 0x203   :  { %v492_v16 = vpop.permute.xlu1 %491 }
 0x204   :  { %v498_v24 = vadd.f32 %v2724_v15, %v492_v16  ;;  %v542_v16 = vld [vmem:[#allocation2 + $0x1] ss:$8 sm:$0xf0] }
 0x205   :  { %v543_v3 = vor.u32 %v542_v16, %v541_v61  ;;  %v3193_v61 = vmov 19  }
 0x206   :  { %vm499_vm7 = vcmp.gt.f32.partialorder %v498_v24, %v488_v26 }
 0x207   :  { %v500_v36 = vsel %vm499_vm7, %v498_v24, %v488_v26  ;;  %v501_v37 = vsel %vm499_vm7, 22, %v489_v33 }
 0x208   :  { %v516_v38 = vpop.permute.xlu1 %515  ;;  %vm511_vm8 = vcmp.gt.f32.partialorder %v510_v27, %v500_v36 }
 0x209   :  { %v512_v39 = vsel %vm511_vm8, %v510_v27, %v500_v36  ;;  %v513_v40 = vsel %vm511_vm8, 23, %v501_v37  ;;  %v522_v9 = vadd.f32 %v2730_v21, %v516_v38  ;;  %v3196_v27 = vmov 23  }
 0x20a   :  { %v3197_v36 = vmov 25   ;;  %v3198_v37 = vmov 0  }
 0x20b   :  { %vm523_vm9 = vcmp.gt.f32.partialorder %v522_v9, %v512_v39 }
 0x20c   :  { %v525_v5 = vsel %vm523_vm9, 24, %v513_v40  ;;  %v524_v11 = vsel %vm523_vm9, %v522_v9, %v512_v39 }
 0x20d   :  { %v528_v46 = vpop.permute.xlu1 %527 }
 0x20e   :  { %v534_v10 = vadd.f32 %v2733_v63, %v528_v46 }
 0x210   :  { %vm535_vm10 = vcmp.gt.f32.partialorder %v534_v10, %v524_v11 }
 0x211   :  { %v536_v24 = vsel %vm535_vm10, %v534_v10, %v524_v11  ;;  %v2736_v33 = vsel %vm535_vm10, 25, %v525_v5  ;;  %v3195_v5 = vmov 22  }
 0x212   :  { %3192 = vst [vmem:[#allocation15_spill] sm:$0xff] %v2736_v33  ;;  %v544_v26 = vadd.f32 %v543_v3, %v536_v24  ;;  %v3194_v3 = vmov 20   ;;  %v1186_v33 = vld [vmem:[#allocation2 + $0x4] ss:$8 sm:$0xf] }
 0x214   :  { %554 = vperm.xlu1 %2192, %v544_v26   ;;  %547 = vperm.xlu0 %2191, %v544_v26  }
 0x218   :  { %2193 = vset.pattern.permute.xlu1 %v3159_v32  ;;  %2194 = vset.pattern.permute.xlu0 %v3179_v48 }
 0x219   :  { %562 = vperm.xlu1 %2193, %v544_v26   ;;  %570 = vperm.xlu0 %2194, %v544_v26  }
 0x21d   :  { %2195 = vset.pattern.permute.xlu1 %v3177_v50  ;;  %2197 = vset.pattern.permute.xlu0 %v3175_v52 }
 0x21e   :  { %578 = vperm.xlu1 %2195, %v544_v26   ;;  %594 = vperm.xlu0 %2197, %v544_v26  }
 0x222   :  { %2196 = vset.pattern.permute.xlu1 %v3173_v51  ;;  %2200 = vset.pattern.permute.xlu0 %v3167_v56 }
 0x223   :  { %586 = vperm.xlu1 %2196, %v544_v26   ;;  %618 = vperm.xlu0 %2200, %v544_v26  }
 0x227   :  { %2198 = vset.pattern.permute.xlu1 %v3169_v54  ;;  %2203 = vset.pattern.permute.xlu0 %v3155_v60 }
 0x228   :  { %602 = vperm.xlu1 %2198, %v544_v26   ;;  %642 = vperm.xlu0 %2203, %v544_v26  }
 0x22c   :  { %2199 = vset.pattern.permute.xlu1 %v3171_v53  ;;  %2206 = vset.pattern.permute.xlu0 %v3151_v0 }
 0x22d   :  { %610 = vperm.xlu1 %2199, %v544_v26   ;;  %666 = vperm.xlu0 %2206, %v544_v26  }
 0x231   :  { %2201 = vset.pattern.permute.xlu1 %v3165_v58  ;;  %2209 = vset.pattern.permute.xlu0 %v3147_v2 }
 0x232   :  { %626 = vperm.xlu1 %2201, %v544_v26   ;;  %690 = vperm.xlu0 %2209, %v544_v26  }
 0x236   :  { %2202 = vset.pattern.permute.xlu1 %v3157_v55  ;;  %2212 = vset.pattern.permute.xlu0 %v3145_v4 }
 0x237   :  { %634 = vperm.xlu1 %2202, %v544_v26   ;;  %714 = vperm.xlu0 %2212, %v544_v26  }
 0x23b   :  { %2204 = vset.pattern.permute.xlu1 %v3163_v62  ;;  %2215 = vset.pattern.permute.xlu0 %v3143_v6 }
 0x23c   :  { %650 = vperm.xlu1 %2204, %v544_v26   ;;  %738 = vperm.xlu0 %2215, %v544_v26  }
 0x240   :  { %2205 = vset.pattern.permute.xlu1 %v3153_v57  ;;  %2218 = vset.pattern.permute.xlu0 %v3141_v49 }
 0x241   :  { %658 = vperm.xlu1 %2205, %v544_v26  }
 0x245   :  { %2207 = vset.pattern.permute.xlu1 %v3161_v1 }
 0x246   :  { %674 = vperm.xlu1 %2207, %v544_v26  }
 0x24a   :  { %2208 = vset.pattern.permute.xlu1 %v3149_v59 }
 0x24b   :  { %682 = vperm.xlu1 %2208, %v544_v26  }
 0x24f   :  { %2210 = vset.pattern.permute.xlu1 %v3193_v61 }
 0x250   :  { %698 = vperm.xlu1 %2210, %v544_v26  }
 0x254   :  { %2211 = vset.pattern.permute.xlu1 %v3194_v3 }
 0x255   :  { %706 = vperm.xlu1 %2211, %v544_v26  }
 0x259   :  { %2213 = vset.pattern.permute.xlu1 %v3195_v5 }
 0x25a   :  { %722 = vperm.xlu1 %2213, %v544_v26  }
 0x25e   :  { %2214 = vset.pattern.permute.xlu1 %v3196_v27 }
 0x25f   :  { %730 = vperm.xlu1 %2214, %v544_v26  }
 0x263   :  { %2216 = vset.pattern.permute.xlu1 %v3197_v36 }
 0x264   :  { %746 = vperm.xlu1 %2216, %v544_v26  }
 0x268   :  { %2217 = vset.pattern.permute.xlu1 %v3198_v37 }
 0x293   :  { %v555_v38 = vpop.permute.xlu1 %554  ;;  %v548_v39 = vpop.permute.xlu0 %547 }
 0x294   :  { %v550_v40 = vadd.f32 %v2657_v8, %v548_v39  ;;  %v557_v9 = vadd.f32 %v2660_v12, %v555_v38 }
 0x296   :  { %vm551_vm11 = vcmp.gt.f32.partialorder %v550_v40, -1e+30 }
 0x297   :  { %v552_v16 = vsel %vm551_vm11, %v550_v40, -1e+30 }
 0x298   :  { %vm558_vm12 = vcmp.gt.f32.partialorder %v557_v9, %v552_v16  ;;  %v563_v46 = vpop.permute.xlu1 %562  ;;  %v571_v10 = vpop.permute.xlu0 %570 }
 0x299   :  { %v559_v11 = vsel %vm558_vm12, %v557_v9, %v552_v16  ;;  %v565_v24 = vadd.f32 %v2662_v13, %v563_v46  ;;  %v560_v49 = vsel %vm558_vm12, 1, %v3198_v37  ;;  %v573_v26 = vadd.f32 %v2665_v18, %v571_v10 }
 0x29b   :  { %vm566_vm13 = vcmp.gt.f32.partialorder %v565_v24, %v559_v11 }
 0x29c   :  { %v568_v6 = vsel %vm566_vm13, 2, %v560_v49  ;;  %v567_v4 = vsel %vm566_vm13, %v565_v24, %v559_v11 }
 0x29d   :  { %vm574_vm14 = vcmp.gt.f32.partialorder %v573_v26, %v567_v4  ;;  %v579_v2 = vpop.permute.xlu1 %578  ;;  %v595_v0 = vpop.permute.xlu0 %594 }
 0x29e   :  { %v576_v39 = vsel %vm574_vm14, 3, %v568_v6  ;;  %v575_v59 = vsel %vm574_vm14, %v573_v26, %v567_v4  ;;  %v581_v38 = vadd.f32 %v2668_v20, %v579_v2  ;;  %v597_v46 = vadd.f32 %v2675_v34, %v595_v0 }
 0x2a0   :  { %vm582_vm15 = vcmp.gt.f32.partialorder %v581_v38, %v575_v59 }
 0x2a1   :  { %v584_v40 = vsel %vm582_vm15, 4, %v576_v39  ;;  %v583_v16 = vsel %vm582_vm15, %v581_v38, %v575_v59 }
 0x2a2   :  { %v587_v57 = vpop.permute.xlu1 %586  ;;  %v619_v6 = vpop.permute.xlu0 %618 }
 0x2a3   :  { %v589_v9 = vadd.f32 %v2673_v28, %v587_v57  ;;  %v621_v57 = vadd.f32 %v2685_v14, %v619_v6 }
 0x2a5   :  { %vm590_vm0 = vcmp.gt.f32.partialorder %v589_v9, %v583_v16 }
 0x2a6   :  { %v591_v60 = vsel %vm590_vm0, %v589_v9, %v583_v16  ;;  %v592_v10 = vsel %vm590_vm0, 5, %v584_v40 }
 0x2a7   :  { %v603_v49 = vpop.permute.xlu1 %602  ;;  %vm598_vm1 = vcmp.gt.f32.partialorder %v597_v46, %v591_v60 }
 0x2a8   :  { %v599_v11 = vsel %vm598_vm1, %v597_v46, %v591_v60  ;;  %v600_v24 = vsel %vm598_vm1, 6, %v592_v10  ;;  %v605_v4 = vadd.f32 %v2679_v42, %v603_v49  ;;  %v643_v46 = vpop.permute.xlu0 %642 }
 0x2aa   :  { %vm606_vm2 = vcmp.gt.f32.partialorder %v605_v4, %v599_v11 }
 0x2ab   :  { %v608_v2 = vsel %vm606_vm2, 7, %v600_v24  ;;  %v607_v55 = vsel %vm606_vm2, %v605_v4, %v599_v11  ;;  %v645_v11 = vadd.f32 %v2694_v35, %v643_v46 }
 0x2ac   :  { %v611_v26 = vpop.permute.xlu1 %610 }
 0x2ad   :  { %v613_v39 = vadd.f32 %v2681_v45, %v611_v26 }
 0x2af   :  { %vm614_vm3 = vcmp.gt.f32.partialorder %v613_v39, %v607_v55 }
 0x2b0   :  { %v615_v59 = vsel %vm614_vm3, %v613_v39, %v607_v55  ;;  %v616_v0 = vsel %vm614_vm3, 8, %v608_v2 }
 0x2b1   :  { %v627_v38 = vpop.permute.xlu1 %626  ;;  %vm622_vm4 = vcmp.gt.f32.partialorder %v621_v57, %v615_v59 }
 0x2b2   :  { %v623_v40 = vsel %vm622_vm4, %v621_v57, %v615_v59  ;;  %v624_v9 = vsel %vm622_vm4, 9, %v616_v0  ;;  %v629_v60 = vadd.f32 %v2688_v23, %v627_v38  ;;  %v667_v59 = vpop.permute.xlu0 %666 }
 0x2b4   :  { %vm630_vm5 = vcmp.gt.f32.partialorder %v629_v60, %v623_v40 }
 0x2b5   :  { %v632_v16 = vsel %vm630_vm5, 10, %v624_v9  ;;  %v631_v24 = vsel %vm630_vm5, %v629_v60, %v623_v40  ;;  %v669_v40 = vadd.f32 %v2703_v17, %v667_v59 }
 0x2b6   :  { %v635_v10 = vpop.permute.xlu1 %634 }
 0x2b7   :  { %v637_v49 = vadd.f32 %v2690_v25, %v635_v10 }
 0x2b9   :  { %vm638_vm6 = vcmp.gt.f32.partialorder %v637_v49, %v631_v24 }
 0x2ba   :  { %v639_v4 = vsel %vm638_vm6, %v637_v49, %v631_v24  ;;  %v640_v6 = vsel %vm638_vm6, 11, %v632_v16 }
 0x2bb   :  { %v651_v55 = vpop.permute.xlu1 %650  ;;  %vm646_vm7 = vcmp.gt.f32.partialorder %v645_v11, %v639_v4 }
 0x2bc   :  { %v647_v2 = vsel %vm646_vm7, %v645_v11, %v639_v4  ;;  %v648_v26 = vsel %vm646_vm7, 12, %v640_v6  ;;  %v653_v39 = vadd.f32 %v2697_v44, %v651_v55  ;;  %v691_v4 = vpop.permute.xlu0 %690 }
 0x2be   :  { %vm654_vm8 = vcmp.gt.f32.partialorder %v653_v39, %v647_v2 }
 0x2bf   :  { %v656_v57 = vsel %vm654_vm8, 13, %v648_v26  ;;  %v655_v9 = vsel %vm654_vm8, %v653_v39, %v647_v2  ;;  %v693_v2 = vadd.f32 %v2712_v41, %v691_v4 }
 0x2c0   :  { %v659_v0 = vpop.permute.xlu1 %658 }
 0x2c1   :  { %v661_v38 = vadd.f32 %v2699_v47, %v659_v0 }
 0x2c3   :  { %vm662_vm9 = vcmp.gt.f32.partialorder %v661_v38, %v655_v9 }
 0x2c4   :  { %v663_v60 = vsel %vm662_vm9, %v661_v38, %v655_v9  ;;  %v664_v46 = vsel %vm662_vm9, 14, %v656_v57 }
 0x2c5   :  { %v675_v10 = vpop.permute.xlu1 %674  ;;  %vm670_vm10 = vcmp.gt.f32.partialorder %v669_v40, %v663_v60 }
 0x2c6   :  { %v671_v16 = vsel %vm670_vm10, %v669_v40, %v663_v60  ;;  %v672_v49 = vsel %vm670_vm10, 15, %v664_v46  ;;  %v677_v24 = vadd.f32 %v2706_v29, %v675_v10  ;;  %v715_v60 = vpop.permute.xlu0 %714 }
 0x2c8   :  { %vm678_vm11 = vcmp.gt.f32.partialorder %v677_v24, %v671_v16 }
 0x2c9   :  { %v680_v11 = vsel %vm678_vm11, 16, %v672_v49  ;;  %v679_v26 = vsel %vm678_vm11, %v677_v24, %v671_v16  ;;  %v717_v16 = vadd.f32 %v2721_v30, %v715_v60 }
 0x2ca   :  { %v683_v6 = vpop.permute.xlu1 %682 }
 0x2cb   :  { %v685_v55 = vadd.f32 %v2708_v31, %v683_v6 }
 0x2cd   :  { %vm686_vm12 = vcmp.gt.f32.partialorder %v685_v55, %v679_v26 }
 0x2ce   :  { %v687_v39 = vsel %vm686_vm12, %v685_v55, %v679_v26  ;;  %v688_v59 = vsel %vm686_vm12, 17, %v680_v11 }
 0x2cf   :  { %v699_v0 = vpop.permute.xlu1 %698  ;;  %vm694_vm13 = vcmp.gt.f32.partialorder %v693_v2, %v687_v39 }
 0x2d0   :  { %v695_v57 = vsel %vm694_vm13, %v693_v2, %v687_v39  ;;  %v696_v38 = vsel %vm694_vm13, 18, %v688_v59  ;;  %v701_v9 = vadd.f32 %v2715_v19, %v699_v0  ;;  %v739_v39 = vpop.permute.xlu0 %738 }
 0x2d2   :  { %vm702_vm14 = vcmp.gt.f32.partialorder %v701_v9, %v695_v57 }
 0x2d3   :  { %v704_v40 = vsel %vm702_vm14, 19, %v696_v38  ;;  %v703_v49 = vsel %vm702_vm14, %v701_v9, %v695_v57  ;;  %v741_v57 = vadd.f32 %v2730_v21, %v739_v39  ;;  %v3203_v39 = vmov 15  }
 0x2d4   :  { %v707_v46 = vpop.permute.xlu1 %706 }
 0x2d5   :  { %v709_v10 = vadd.f32 %v2717_v22, %v707_v46  ;;  %v756_v46 = vld [vmem:[#allocation2 + $0x2] ss:$8 sm:$0xf] }
 0x2d7   :  { %vm710_vm15 = vcmp.gt.f32.partialorder %v709_v10, %v703_v49 }
 0x2d8   :  { %v711_v24 = vsel %vm710_vm15, %v709_v10, %v703_v49  ;;  %v712_v4 = vsel %vm710_vm15, 20, %v704_v40  ;;  %v757_v40 = vld [vmem:[#allocation2 + $0x2] ss:$8 sm:$0xf0] }
 0x2d9   :  { %v723_v6 = vpop.permute.xlu1 %722  ;;  %vm718_vm0 = vcmp.gt.f32.partialorder %v717_v16, %v711_v24 }
 0x2da   :  { %v719_v11 = vsel %vm718_vm0, %v717_v16, %v711_v24  ;;  %v720_v55 = vsel %vm718_vm0, 21, %v712_v4  ;;  %v725_v26 = vadd.f32 %v2724_v15, %v723_v6  ;;  %v758_v4 = vor.u32 %v757_v40, %v756_v46 }
 0x2dc   :  { %vm726_vm1 = vcmp.gt.f32.partialorder %v725_v26, %v719_v11 }
 0x2dd   :  { %v728_v2 = vsel %vm726_vm1, 22, %v720_v55  ;;  %v727_v38 = vsel %vm726_vm1, %v725_v26, %v719_v11  ;;  %v3200_v11 = vmov 11   ;;  %v3201_v26 = vmov 12  }
 0x2de   :  { %v731_v59 = vpop.permute.xlu1 %730 }
 0x2df   :  { %v733_v0 = vadd.f32 %v2726_v7, %v731_v59 }
 0x2e1   :  { %vm734_vm2 = vcmp.gt.f32.partialorder %v733_v0, %v727_v38 }
 0x2e2   :  { %v735_v9 = vsel %vm734_vm2, %v733_v0, %v727_v38  ;;  %v736_v60 = vsel %vm734_vm2, 23, %v728_v2  ;;  %v3202_v2 = vmov 14   ;;  %v3204_v0 = vmov 17  }
 0x2e3   :  { %v747_v10 = vpop.permute.xlu1 %746  ;;  %vm742_vm3 = vcmp.gt.f32.partialorder %v741_v57, %v735_v9  ;;  %v3205_v38 = vmov 18  }
 0x2e4   :  { %v743_v49 = vsel %vm742_vm3, %v741_v57, %v735_v9  ;;  %v744_v16 = vsel %vm742_vm3, 24, %v736_v60  ;;  %v749_v24 = vadd.f32 %v2733_v63, %v747_v10  ;;  %v3206_v57 = vmov 21  }
 0x2e5   :  { %v3207_v9 = vmov 24  }
 0x2e6   :  { %vm750_vm4 = vcmp.gt.f32.partialorder %v749_v24, %v743_v49 }
 0x2e7   :  { %v751_v6 = vsel %vm750_vm4, %v749_v24, %v743_v49  ;;  %v2791_v55 = vsel %vm750_vm4, 25, %v744_v16 }
 0x2e8   :  { %3199 = vst [vmem:[#allocation16_spill] sm:$0xff] %v2791_v55  ;;  %v759_v59 = vadd.f32 %v758_v4, %v751_v6 }
 0x2ea   :  { %769 = vperm.xlu0 %2218, %v759_v59   ;;  %762 = vperm.xlu1 %2217, %v759_v59  }
 0x2ee   :  { %2221 = vset.pattern.permute.xlu0 %v3177_v50  ;;  %2219 = vset.pattern.permute.xlu1 %v3159_v32 }
 0x2ef   :  { %793 = vperm.xlu0 %2221, %v759_v59   ;;  %777 = vperm.xlu1 %2219, %v759_v59  }
 0x2f3   :  { %2224 = vset.pattern.permute.xlu0 %v3169_v54  ;;  %2220 = vset.pattern.permute.xlu1 %v3179_v48 }
 0x2f4   :  { %817 = vperm.xlu0 %2224, %v759_v59   ;;  %785 = vperm.xlu1 %2220, %v759_v59  }
 0x2f8   :  { %2227 = vset.pattern.permute.xlu0 %v3165_v58  ;;  %2222 = vset.pattern.permute.xlu1 %v3173_v51 }
 0x2f9   :  { %841 = vperm.xlu0 %2227, %v759_v59   ;;  %801 = vperm.xlu1 %2222, %v759_v59  }
 0x2fd   :  { %2230 = vset.pattern.permute.xlu0 %v3163_v62  ;;  %2223 = vset.pattern.permute.xlu1 %v3175_v52 }
 0x2fe   :  { %865 = vperm.xlu0 %2230, %v759_v59   ;;  %809 = vperm.xlu1 %2223, %v759_v59  }
 0x302   :  { %2233 = vset.pattern.permute.xlu0 %v3161_v1  ;;  %2225 = vset.pattern.permute.xlu1 %v3171_v53 }
 0x303   :  { %889 = vperm.xlu0 %2233, %v759_v59   ;;  %825 = vperm.xlu1 %2225, %v759_v59  }
 0x307   :  { %2236 = vset.pattern.permute.xlu0 %v3193_v61  ;;  %2226 = vset.pattern.permute.xlu1 %v3167_v56 }
 0x308   :  { %913 = vperm.xlu0 %2236, %v759_v59   ;;  %833 = vperm.xlu1 %2226, %v759_v59  }
 0x30c   :  { %2239 = vset.pattern.permute.xlu0 %v3195_v5  ;;  %2228 = vset.pattern.permute.xlu1 %v3200_v11 }
 0x30d   :  { %937 = vperm.xlu0 %2239, %v759_v59   ;;  %849 = vperm.xlu1 %2228, %v759_v59  }
 0x311   :  { %2242 = vset.pattern.permute.xlu0 %v3197_v36  ;;  %2229 = vset.pattern.permute.xlu1 %v3201_v26 }
 0x312   :  { %961 = vperm.xlu0 %2242, %v759_v59   ;;  %857 = vperm.xlu1 %2229, %v759_v59  }
 0x316   :  { %2231 = vset.pattern.permute.xlu1 %v3202_v2  ;;  %2245 = vset.pattern.permute.xlu0 %v3159_v32 }
 0x317   :  { %873 = vperm.xlu1 %2231, %v759_v59  }
 0x31b   :  { %2232 = vset.pattern.permute.xlu1 %v3203_v39 }
 0x31c   :  { %881 = vperm.xlu1 %2232, %v759_v59  }
 0x320   :  { %2234 = vset.pattern.permute.xlu1 %v3204_v0 }
 0x321   :  { %897 = vperm.xlu1 %2234, %v759_v59  }
 0x325   :  { %2235 = vset.pattern.permute.xlu1 %v3205_v38 }
 0x326   :  { %905 = vperm.xlu1 %2235, %v759_v59  }
 0x32a   :  { %2237 = vset.pattern.permute.xlu1 %v3194_v3 }
 0x32b   :  { %921 = vperm.xlu1 %2237, %v759_v59  }
 0x32f   :  { %2238 = vset.pattern.permute.xlu1 %v3206_v57 }
 0x330   :  { %929 = vperm.xlu1 %2238, %v759_v59  }
 0x334   :  { %2240 = vset.pattern.permute.xlu1 %v3196_v27 }
 0x335   :  { %945 = vperm.xlu1 %2240, %v759_v59  }
 0x339   :  { %2241 = vset.pattern.permute.xlu1 %v3207_v9 }
 0x33a   :  { %953 = vperm.xlu1 %2241, %v759_v59  }
 0x33e   :  { %2243 = vset.pattern.permute.xlu1 %v3198_v37 }
 0x369   :  { %v770_v60 = vpop.permute.xlu0 %769  ;;  %v763_v46 = vpop.permute.xlu1 %762 }
 0x36a   :  { %v765_v40 = vadd.f32 %v2657_v8, %v763_v46  ;;  %v772_v10 = vadd.f32 %v2660_v12, %v770_v60 }
 0x36c   :  { %vm766_vm5 = vcmp.gt.f32.partialorder %v765_v40, -1e+30 }
 0x36d   :  { %v767_v49 = vsel %vm766_vm5, %v765_v40, -1e+30 }
 0x36e   :  { %vm773_vm6 = vcmp.gt.f32.partialorder %v772_v10, %v767_v49  ;;  %v778_v16 = vpop.permute.xlu1 %777  ;;  %v794_v59 = vpop.permute.xlu0 %793 }
 0x36f   :  { %v774_v24 = vsel %vm773_vm6, %v772_v10, %v767_v49  ;;  %v780_v4 = vadd.f32 %v2662_v13, %v778_v16  ;;  %v775_v6 = vsel %vm773_vm6, 1, %v3198_v37  ;;  %v796_v8 = vadd.f32 %v2668_v20, %v794_v59 }
 0x371   :  { %vm781_vm7 = vcmp.gt.f32.partialorder %v780_v4, %v774_v24 }
 0x372   :  { %v783_v32 = vsel %vm781_vm7, 2, %v775_v6  ;;  %v782_v58 = vsel %vm781_vm7, %v780_v4, %v774_v24 }
 0x373   :  { %v786_v1 = vpop.permute.xlu1 %785  ;;  %v818_v16 = vpop.permute.xlu0 %817 }
 0x374   :  { %v788_v62 = vadd.f32 %v2665_v18, %v786_v1  ;;  %v820_v1 = vadd.f32 %v2679_v42, %v818_v16 }
 0x376   :  { %vm789_vm8 = vcmp.gt.f32.partialorder %v788_v62, %v782_v58 }
 0x377   :  { %v790_v12 = vsel %vm789_vm8, %v788_v62, %v782_v58  ;;  %v791_v60 = vsel %vm789_vm8, 3, %v783_v32 }
 0x378   :  { %vm797_vm9 = vcmp.gt.f32.partialorder %v796_v8, %v790_v12  ;;  %v802_v46 = vpop.permute.xlu1 %801  ;;  %v842_v4 = vpop.permute.xlu0 %841 }
 0x379   :  { %v798_v40 = vsel %vm797_vm9, %v796_v8, %v790_v12  ;;  %v799_v10 = vsel %vm797_vm9, 4, %v791_v60  ;;  %v804_v13 = vadd.f32 %v2673_v28, %v802_v46 }
 0x37b   :  { %vm805_vm10 = vcmp.gt.f32.partialorder %v804_v13, %v798_v40 }
 0x37c   :  { %v807_v49 = vsel %vm805_vm10, 5, %v799_v10  ;;  %v806_v54 = vsel %vm805_vm10, %v804_v13, %v798_v40 }
 0x37d   :  { %v810_v6 = vpop.permute.xlu1 %809  ;;  %v866_v10 = vpop.permute.xlu0 %865 }
 0x37e   :  { %v812_v56 = vadd.f32 %v2675_v34, %v810_v6  ;;  %v844_v34 = vadd.f32 %v2688_v23, %v842_v4 }
 0x380   :  { %vm813_vm11 = vcmp.gt.f32.partialorder %v812_v56, %v806_v54 }
 0x381   :  { %v814_v18 = vsel %vm813_vm11, %v812_v56, %v806_v54  ;;  %v815_v20 = vsel %vm813_vm11, 6, %v807_v49 }
 0x382   :  { %vm821_vm12 = vcmp.gt.f32.partialorder %v820_v1, %v814_v18  ;;  %v826_v32 = vpop.permute.xlu1 %825 }
 0x383   :  { %v822_v58 = vsel %vm821_vm12, %v820_v1, %v814_v18  ;;  %v823_v62 = vsel %vm821_vm12, 7, %v815_v20  ;;  %v828_v24 = vadd.f32 %v2681_v45, %v826_v32 }
 0x385   :  { %vm829_vm13 = vcmp.gt.f32.partialorder %v828_v24, %v822_v58 }
 0x386   :  { %v831_v28 = vsel %vm829_vm13, 8, %v823_v62  ;;  %v830_v12 = vsel %vm829_vm13, %v828_v24, %v822_v58  ;;  %v890_v58 = vpop.permute.xlu0 %889 }
 0x387   :  { %v834_v59 = vpop.permute.xlu1 %833 }
 0x388   :  { %v836_v8 = vadd.f32 %v2685_v14, %v834_v59  ;;  %v868_v14 = vadd.f32 %v2697_v44, %v866_v10 }
 0x38a   :  { %vm837_vm14 = vcmp.gt.f32.partialorder %v836_v8, %v830_v12 }
 0x38b   :  { %v838_v42 = vsel %vm837_vm14, %v836_v8, %v830_v12  ;;  %v839_v60 = vsel %vm837_vm14, 9, %v831_v28 }
 0x38c   :  { %vm845_vm15 = vcmp.gt.f32.partialorder %v844_v34, %v838_v42  ;;  %v850_v54 = vpop.permute.xlu1 %849 }
 0x38d   :  { %v846_v56 = vsel %vm845_vm15, %v844_v34, %v838_v42  ;;  %v847_v46 = vsel %vm845_vm15, 10, %v839_v60  ;;  %v852_v40 = vadd.f32 %v2690_v25, %v850_v54  ;;  %v914_v42 = vpop.permute.xlu0 %913 }
 0x38f   :  { %vm853_vm0 = vcmp.gt.f32.partialorder %v852_v40, %v846_v56 }
 0x390   :  { %v855_v45 = vsel %vm853_vm0, 11, %v847_v46  ;;  %v854_v16 = vsel %vm853_vm0, %v852_v40, %v846_v56 }
 0x391   :  { %v858_v13 = vpop.permute.xlu1 %857 }
 0x392   :  { %v860_v49 = vadd.f32 %v2694_v35, %v858_v13  ;;  %v892_v35 = vadd.f32 %v2706_v29, %v890_v58 }
 0x394   :  { %vm861_vm1 = vcmp.gt.f32.partialorder %v860_v49, %v854_v16 }
 0x395   :  { %v862_v23 = vsel %vm861_vm1, %v860_v49, %v854_v16  ;;  %v863_v6 = vsel %vm861_vm1, 12, %v855_v45  ;;  %v938_v49 = vpop.permute.xlu0 %937 }
 0x396   :  { %vm869_vm2 = vcmp.gt.f32.partialorder %v868_v14, %v862_v23  ;;  %v874_v1 = vpop.permute.xlu1 %873 }
 0x397   :  { %v870_v18 = vsel %vm869_vm2, %v868_v14, %v862_v23  ;;  %v871_v20 = vsel %vm869_vm2, 13, %v863_v6  ;;  %v876_v32 = vadd.f32 %v2699_v47, %v874_v1 }
 0x399   :  { %vm877_vm3 = vcmp.gt.f32.partialorder %v876_v32, %v870_v18 }
 0x39a   :  { %v879_v25 = vsel %vm877_vm3, 14, %v871_v20  ;;  %v878_v28 = vsel %vm877_vm3, %v876_v32, %v870_v18 }
 0x39b   :  { %v882_v62 = vpop.permute.xlu1 %881 }
 0x39c   :  { %v884_v24 = vadd.f32 %v2703_v17, %v882_v62  ;;  %v916_v17 = vadd.f32 %v2715_v19, %v914_v42  ;;  %v3214_v42 = vmov 16  }
 0x39e   :  { %vm885_vm4 = vcmp.gt.f32.partialorder %v884_v24, %v878_v28 }
 0x39f   :  { %v886_v44 = vsel %vm885_vm4, %v884_v24, %v878_v28  ;;  %v887_v4 = vsel %vm885_vm4, 15, %v879_v25  ;;  %v962_v25 = vpop.permute.xlu0 %961  ;;  %v972_v28 = vld [vmem:[#allocation2 + $0x3] ss:$8 sm:$0xf0] }
 0x3a0   :  { %vm893_vm5 = vcmp.gt.f32.partialorder %v892_v35, %v886_v44  ;;  %v898_v59 = vpop.permute.xlu1 %897 }
 0x3a1   :  { %v894_v8 = vsel %vm893_vm5, %v892_v35, %v886_v44  ;;  %v895_v12 = vsel %vm893_vm5, 16, %v887_v4  ;;  %v900_v34 = vadd.f32 %v2708_v31, %v898_v59 }
 0x3a3   :  { %vm901_vm6 = vcmp.gt.f32.partialorder %v900_v34, %v894_v8 }
 0x3a4   :  { %v903_v47 = vsel %vm901_vm6, 17, %v895_v12  ;;  %v902_v56 = vsel %vm901_vm6, %v900_v34, %v894_v8  ;;  %v3209_v12 = vmov 1   ;;  %v3212_v34 = vmov 10  }
 0x3a5   :  { %v906_v60 = vpop.permute.xlu1 %905 }
 0x3a6   :  { %v908_v54 = vadd.f32 %v2712_v41, %v906_v60  ;;  %v940_v41 = vadd.f32 %v2724_v15, %v938_v49  ;;  %v964_v15 = vadd.f32 %v2733_v63, %v962_v25  ;;  %v3210_v63 = vmov 7   ;;  %v2890_v25 = vld [vmem:[#allocation9 + $0x5] ss:$0 sm:$0xff] }
 0x3a8   :  { %vm909_vm7 = vcmp.gt.f32.partialorder %v908_v54, %v902_v56 }
 0x3a9   :  { %v910_v29 = vsel %vm909_vm7, %v908_v54, %v902_v56  ;;  %v911_v46 = vsel %vm909_vm7, 18, %v903_v47  ;;  %v3213_v47 = vmov 13   ;;  %v2874_v54 = vld [vmem:[#allocation9] ss:$0 sm:$0xff] }
 0x3aa   :  { %vm917_vm8 = vcmp.gt.f32.partialorder %v916_v17, %v910_v29  ;;  %v922_v40 = vpop.permute.xlu1 %921  ;;  %3215 = vst [vmem:[#allocation18_spill] sm:$0xff] %v2874_v54 }
 0x3ab   :  { %v918_v45 = vsel %vm917_vm8, %v916_v17, %v910_v29  ;;  %v919_v10 = vsel %vm917_vm8, 19, %v911_v46  ;;  %v924_v13 = vadd.f32 %v2717_v22, %v922_v40  ;;  %v2877_v46 = vld [vmem:[#allocation9 + $0x1] ss:$0 sm:$0xff] }
 0x3ac   :  { %3216 = vst [vmem:[#allocation19_spill] sm:$0xff] %v2877_v46 }
 0x3ad   :  { %vm925_vm9 = vcmp.gt.f32.partialorder %v924_v13, %v918_v45 }
 0x3ae   :  { %v927_v31 = vsel %vm925_vm9, 20, %v919_v10  ;;  %v926_v23 = vsel %vm925_vm9, %v924_v13, %v918_v45  ;;  %v2880_v10 = vld [vmem:[#allocation9 + $0x2] ss:$0 sm:$0xff] }
 0x3af   :  { %v930_v16 = vpop.permute.xlu1 %929  ;;  %3217 = vst [vmem:[#allocation20_spill] sm:$0xff] %v2880_v10 }
 0x3b0   :  { %v932_v14 = vadd.f32 %v2721_v30, %v930_v16  ;;  %v971_v30 = vld [vmem:[#allocation2 + $0x3] ss:$8 sm:$0xf] }
 0x3b1   :  { %v973_v4 = vor.u32 %v972_v28, %v971_v30 }
 0x3b2   :  { %vm933_vm10 = vcmp.gt.f32.partialorder %v932_v14, %v926_v23 }
 0x3b3   :  { %v934_v19 = vsel %vm933_vm10, %v932_v14, %v926_v23  ;;  %v935_v6 = vsel %vm933_vm10, 21, %v927_v31 }
 0x3b4   :  { %vm941_vm11 = vcmp.gt.f32.partialorder %v940_v41, %v934_v19  ;;  %v946_v1 = vpop.permute.xlu1 %945 }
 0x3b5   :  { %v942_v18 = vsel %vm941_vm11, %v940_v41, %v934_v19  ;;  %v943_v20 = vsel %vm941_vm11, 22, %v935_v6  ;;  %v948_v32 = vadd.f32 %v2726_v7, %v946_v1  ;;  %v2884_v41 = vld [vmem:[#allocation9 + $0x3] ss:$0 sm:$0xff] }
 0x3b7   :  { %vm949_vm12 = vcmp.gt.f32.partialorder %v948_v32, %v942_v18 }
 0x3b8   :  { %v951_v22 = vsel %vm949_vm12, 23, %v943_v20  ;;  %v950_v24 = vsel %vm949_vm12, %v948_v32, %v942_v18  ;;  %v2887_v20 = vld [vmem:[#allocation9 + $0x4] ss:$0 sm:$0xff] }
 0x3b9   :  { %v954_v58 = vpop.permute.xlu1 %953  ;;  %3218 = vst [vmem:[#allocation21_spill] sm:$0xff] %v2887_v20 }
 0x3ba   :  { %v956_v62 = vadd.f32 %v2730_v21, %v954_v58  ;;  %v3211_v21 = vmov 9  }
 0x3bc   :  { %vm957_vm13 = vcmp.gt.f32.partialorder %v956_v62, %v950_v24 }
 0x3bd   :  { %v958_v35 = vsel %vm957_vm13, %v956_v62, %v950_v24  ;;  %v959_v44 = vsel %vm957_vm13, 24, %v951_v22 }
 0x3be   :  { %vm965_vm14 = vcmp.gt.f32.partialorder %v964_v15, %v958_v35 }
 0x3bf   :  { %v966_v59 = vsel %vm965_vm14, %v964_v15, %v958_v35  ;;  %v2846_v8 = vsel %vm965_vm14, 25, %v959_v44  ;;  %v2893_v35 = vld [vmem:[#allocation9 + $0x6] ss:$0 sm:$0xff] }
 0x3c0   :  { %3208 = vst [vmem:[#allocation17_spill] sm:$0xff] %v2846_v8  ;;  %v974_v7 = vadd.f32 %v973_v4, %v966_v59 }
 0x3c2   :  { %992 = vperm.xlu0 %2245, %v974_v7   ;;  %977 = vperm.xlu1 %2243, %v974_v7  }
 0x3c6   :  { %2248 = vset.pattern.permute.xlu0 %v3173_v51  ;;  %2244 = vset.pattern.permute.xlu1 %v3209_v12 }
 0x3c7   :  { %1016 = vperm.xlu0 %2248, %v974_v7   ;;  %984 = vperm.xlu1 %2244, %v974_v7  }
 0x3cb   :  { %2251 = vset.pattern.permute.xlu0 %v3171_v53  ;;  %2246 = vset.pattern.permute.xlu1 %v3179_v48  ;;  %v2935_v53 = vld [vmem:[#allocation9 + $0x14] ss:$0 sm:$0xff] }
 0x3cc   :  { %1040 = vperm.xlu0 %2251, %v974_v7   ;;  %1000 = vperm.xlu1 %2246, %v974_v7  }
 0x3d0   :  { %2254 = vset.pattern.permute.xlu0 %v3200_v11  ;;  %2247 = vset.pattern.permute.xlu1 %v3177_v50  ;;  %v2944_v50 = vld [vmem:[#allocation9 + $0x17] ss:$0 sm:$0xff] }
 0x3d1   :  { %1064 = vperm.xlu0 %2254, %v974_v7   ;;  %1008 = vperm.xlu1 %2247, %v974_v7  }
 0x3d5   :  { %2257 = vset.pattern.permute.xlu0 %v3202_v2  ;;  %2249 = vset.pattern.permute.xlu1 %v3175_v52 }
 0x3d6   :  { %1088 = vperm.xlu0 %2257, %v974_v7   ;;  %1024 = vperm.xlu1 %2249, %v974_v7  }
 0x3da   :  { %2260 = vset.pattern.permute.xlu0 %v3204_v0  ;;  %2250 = vset.pattern.permute.xlu1 %v3210_v63 }
 0x3db   :  { %1112 = vperm.xlu0 %2260, %v974_v7   ;;  %1032 = vperm.xlu1 %2250, %v974_v7  }
 0x3df   :  { %2263 = vset.pattern.permute.xlu0 %v3194_v3  ;;  %2252 = vset.pattern.permute.xlu1 %v3211_v21 }
 0x3e0   :  { %1136 = vperm.xlu0 %2263, %v974_v7   ;;  %1048 = vperm.xlu1 %2252, %v974_v7  }
 0x3e4   :  { %2266 = vset.pattern.permute.xlu0 %v3196_v27  ;;  %2253 = vset.pattern.permute.xlu1 %v3212_v34 }
 0x3e5   :  { %1160 = vperm.xlu0 %2266, %v974_v7   ;;  %1056 = vperm.xlu1 %2253, %v974_v7  }
 0x3e9   :  { %2255 = vset.pattern.permute.xlu1 %v3201_v26  ;;  %2269 = vset.pattern.permute.xlu0 %v3198_v37 }
 0x3ea   :  { %1072 = vperm.xlu1 %2255, %v974_v7  }
 0x3ee   :  { %2256 = vset.pattern.permute.xlu1 %v3213_v47 }
 0x3ef   :  { %1080 = vperm.xlu1 %2256, %v974_v7  }
 0x3f3   :  { %2258 = vset.pattern.permute.xlu1 %v3203_v39 }
 0x3f4   :  { %1096 = vperm.xlu1 %2258, %v974_v7  }
 0x3f8   :  { %2259 = vset.pattern.permute.xlu1 %v3214_v42 }
 0x3f9   :  { %1104 = vperm.xlu1 %2259, %v974_v7  }
 0x3fd   :  { %2261 = vset.pattern.permute.xlu1 %v3205_v38 }
 0x3fe   :  { %1120 = vperm.xlu1 %2261, %v974_v7  }
 0x402   :  { %2262 = vset.pattern.permute.xlu1 %v3193_v61 }
 0x403   :  { %1128 = vperm.xlu1 %2262, %v974_v7  }
 0x407   :  { %2264 = vset.pattern.permute.xlu1 %v3206_v57 }
 0x408   :  { %1144 = vperm.xlu1 %2264, %v974_v7  }
 0x40c   :  { %2265 = vset.pattern.permute.xlu1 %v3195_v5 }
 0x40d   :  { %1152 = vperm.xlu1 %2265, %v974_v7  }
 0x411   :  { %2267 = vset.pattern.permute.xlu1 %v3207_v9 }
 0x412   :  { %1168 = vperm.xlu1 %2267, %v974_v7  }
 0x416   :  { %2268 = vset.pattern.permute.xlu1 %v3197_v36 }
 0x417   :  { %1176 = vperm.xlu1 %2268, %v974_v7  }
 0x41b   :  { %2270 = vset.pattern.permute.xlu1 %v3209_v12 }
 0x441   :  { %v978_v60 = vpop.permute.xlu1 %977  ;;  %v993_v17 = vpop.permute.xlu0 %992 }
 0x442   :  { %v980_v56 = vadd.f32 %v2874_v54, %v978_v60  ;;  %v995_v13 = vadd.f32 %v2880_v10, %v993_v17  ;;  %v2896_v60 = vld [vmem:[#allocation9 + $0x7] ss:$0 sm:$0xff] }
 0x444   :  { %vm981_vm15 = vcmp.gt.f32.partialorder %v980_v56, -1e+30 }
 0x445   :  { %v982_v45 = vsel %vm981_vm15, %v980_v56, -1e+30 }
 0x446   :  { %v985_v29 = vpop.permute.xlu1 %984  ;;  %v1017_v1 = vpop.permute.xlu0 %1016 }
 0x447   :  { %v987_v40 = vadd.f32 %v2877_v46, %v985_v29  ;;  %v1019_v58 = vadd.f32 %v2890_v25, %v1017_v1  ;;  %v2899_v29 = vld [vmem:[#allocation9 + $0x8] ss:$0 sm:$0xff] }
 0x449   :  { %vm988_vm0 = vcmp.gt.f32.partialorder %v987_v40, %v982_v45 }
 0x44a   :  { %v989_v31 = vsel %vm988_vm0, %v987_v40, %v982_v45  ;;  %v990_v49 = vsel %vm988_vm0, 1, %v3198_v37 }
 0x44b   :  { %vm996_vm1 = vcmp.gt.f32.partialorder %v995_v13, %v989_v31  ;;  %v1001_v16 = vpop.permute.xlu1 %1000  ;;  %v1041_v59 = vpop.permute.xlu0 %1040 }
 0x44c   :  { %v997_v14 = vsel %vm996_vm1, %v995_v13, %v989_v31  ;;  %v998_v23 = vsel %vm996_vm1, 2, %v990_v49  ;;  %v1003_v19 = vadd.f32 %v2884_v41, %v1001_v16  ;;  %v1043_v40 = vadd.f32 %v2899_v29, %v1041_v59 }
 0x44e   :  { %vm1004_vm2 = vcmp.gt.f32.partialorder %v1003_v19, %v997_v14 }
 0x44f   :  { %v1006_v6 = vsel %vm1004_vm2, 3, %v998_v23  ;;  %v1005_v22 = vsel %vm1004_vm2, %v1003_v19, %v997_v14  ;;  %v2902_v14 = vld [vmem:[#allocation9 + $0x9] ss:$0 sm:$0xff] }
 0x450   :  { %v1009_v18 = vpop.permute.xlu1 %1008 }
 0x451   :  { %v1011_v32 = vadd.f32 %v2887_v20, %v1009_v18  ;;  %v2905_v18 = vld [vmem:[#allocation9 + $0xa] ss:$0 sm:$0xff] }
 0x453   :  { %vm1012_vm3 = vcmp.gt.f32.partialorder %v1011_v32, %v1005_v22 }
 0x454   :  { %v1013_v62 = vsel %vm1012_vm3, %v1011_v32, %v1005_v22  ;;  %v1014_v24 = vsel %vm1012_vm3, 4, %v1006_v6  ;;  %v1065_v6 = vpop.permute.xlu0 %1064 }
 0x455   :  { %vm1020_vm4 = vcmp.gt.f32.partialorder %v1019_v58, %v1013_v62  ;;  %v1025_v30 = vpop.permute.xlu1 %1024 }
 0x456   :  { %v1021_v28 = vsel %vm1020_vm4, %v1019_v58, %v1013_v62  ;;  %v1022_v15 = vsel %vm1020_vm4, 5, %v1014_v24  ;;  %v1027_v44 = vadd.f32 %v2893_v35, %v1025_v30  ;;  %v2908_v58 = vld [vmem:[#allocation9 + $0xb] ss:$0 sm:$0xff] }
 0x457   :  { %v1067_v62 = vadd.f32 %v2908_v58, %v1065_v6 }
 0x458   :  { %vm1028_vm5 = vcmp.gt.f32.partialorder %v1027_v44, %v1021_v28 }
 0x459   :  { %v1030_v4 = vsel %vm1028_vm5, 6, %v1022_v15  ;;  %v1029_v17 = vsel %vm1028_vm5, %v1027_v44, %v1021_v28 }
 0x45a   :  { %v1033_v7 = vpop.permute.xlu1 %1032 }
 0x45b   :  { %v1035_v56 = vadd.f32 %v2896_v60, %v1033_v7 }
 0x45d   :  { %vm1036_vm6 = vcmp.gt.f32.partialorder %v1035_v56, %v1029_v17 }
 0x45e   :  { %v1037_v45 = vsel %vm1036_vm6, %v1035_v56, %v1029_v17  ;;  %v1038_v13 = vsel %vm1036_vm6, 7, %v1030_v4  ;;  %v2911_v4 = vld [vmem:[#allocation9 + $0xc] ss:$0 sm:$0xff]  ;;  %v1089_v56 = vpop.permute.xlu0 %1088 }
 0x45f   :  { %vm1044_vm7 = vcmp.gt.f32.partialorder %v1043_v40, %v1037_v45  ;;  %v1049_v31 = vpop.permute.xlu1 %1048 }
 0x460   :  { %v1045_v49 = vsel %vm1044_vm7, %v1043_v40, %v1037_v45  ;;  %v1046_v16 = vsel %vm1044_vm7, 8, %v1038_v13  ;;  %v1051_v23 = vadd.f32 %v2902_v14, %v1049_v31  ;;  %v2914_v40 = vld [vmem:[#allocation9 + $0xd] ss:$0 sm:$0xff]  ;;  %v2917_v31 = vld [vmem:[#allocation9 + $0xe] ss:$0 sm:$0xff] }
 0x462   :  { %vm1052_vm8 = vcmp.gt.f32.partialorder %v1051_v23, %v1045_v49 }
 0x463   :  { %v1054_v19 = vsel %vm1052_vm8, 9, %v1046_v16  ;;  %v1053_v22 = vsel %vm1052_vm8, %v1051_v23, %v1045_v49  ;;  %v1091_v49 = vadd.f32 %v2917_v31, %v1089_v56 }
 0x464   :  { %v1057_v1 = vpop.permute.xlu1 %1056 }
 0x465   :  { %v1059_v32 = vadd.f32 %v2905_v18, %v1057_v1 }
 0x467   :  { %vm1060_vm9 = vcmp.gt.f32.partialorder %v1059_v32, %v1053_v22 }
 0x468   :  { %v1061_v24 = vsel %vm1060_vm9, %v1059_v32, %v1053_v22  ;;  %v1062_v30 = vsel %vm1060_vm9, 10, %v1054_v19  ;;  %v2920_v32 = vld [vmem:[#allocation9 + $0xf] ss:$0 sm:$0xff] }
 0x469   :  { %vm1068_vm10 = vcmp.gt.f32.partialorder %v1067_v62, %v1061_v24  ;;  %v1073_v28 = vpop.permute.xlu1 %1072 }
 0x46a   :  { %v1069_v15 = vsel %vm1068_vm10, %v1067_v62, %v1061_v24  ;;  %v1070_v44 = vsel %vm1068_vm10, 11, %v1062_v30  ;;  %v1075_v59 = vadd.f32 %v2911_v4, %v1073_v28  ;;  %v1113_v24 = vpop.permute.xlu0 %1112  ;;  %v2923_v28 = vld [vmem:[#allocation9 + $0x10] ss:$0 sm:$0xff] }
 0x46c   :  { %vm1076_vm11 = vcmp.gt.f32.partialorder %v1075_v59, %v1069_v15 }
 0x46d   :  { %v1078_v7 = vsel %vm1076_vm11, 12, %v1070_v44  ;;  %v1077_v13 = vsel %vm1076_vm11, %v1075_v59, %v1069_v15  ;;  %v2926_v59 = vld [vmem:[#allocation9 + $0x11] ss:$0 sm:$0xff] }
 0x46e   :  { %v1081_v17 = vpop.permute.xlu1 %1080 }
 0x46f   :  { %v1083_v45 = vadd.f32 %v2914_v40, %v1081_v17 }
 0x471   :  { %vm1084_vm12 = vcmp.gt.f32.partialorder %v1083_v45, %v1077_v13 }
 0x472   :  { %v1085_v16 = vsel %vm1084_vm12, %v1083_v45, %v1077_v13  ;;  %v1086_v23 = vsel %vm1084_vm12, 13, %v1078_v7  ;;  %v1115_v7 = vadd.f32 %v2926_v59, %v1113_v24 }
 0x473   :  { %vm1092_vm13 = vcmp.gt.f32.partialorder %v1091_v49, %v1085_v16  ;;  %v1097_v19 = vpop.permute.xlu1 %1096 }
 0x474   :  { %v1093_v6 = vsel %vm1092_vm13, %v1091_v49, %v1085_v16  ;;  %v1094_v1 = vsel %vm1092_vm13, 14, %v1086_v23  ;;  %v1099_v22 = vadd.f32 %v2920_v32, %v1097_v19  ;;  %v2929_v16 = vld [vmem:[#allocation9 + $0x12] ss:$0 sm:$0xff] }
 0x476   :  { %vm1100_vm14 = vcmp.gt.f32.partialorder %v1099_v22, %v1093_v6 }
 0x477   :  { %v1102_v62 = vsel %vm1100_vm14, 15, %v1094_v1  ;;  %v1101_v44 = vsel %vm1100_vm14, %v1099_v22, %v1093_v6  ;;  %v1137_v1 = vpop.permute.xlu0 %1136  ;;  %v2932_v6 = vld [vmem:[#allocation9 + $0x13] ss:$0 sm:$0xff] }
 0x478   :  { %v1105_v30 = vpop.permute.xlu1 %1104 }
 0x479   :  { %v1107_v15 = vadd.f32 %v2923_v28, %v1105_v30 }
 0x47b   :  { %vm1108_vm15 = vcmp.gt.f32.partialorder %v1107_v15, %v1101_v44  ;;  %v1161_v52 = vpop.permute.xlu0 %1160 }
 0x47c   :  { %v1109_v56 = vsel %vm1108_vm15, %v1107_v15, %v1101_v44  ;;  %v1110_v17 = vsel %vm1108_vm15, 16, %v1102_v62  ;;  %v1139_v62 = vadd.f32 %v2935_v53, %v1137_v1 }
 0x47d   :  { %vm1116_vm0 = vcmp.gt.f32.partialorder %v1115_v7, %v1109_v56  ;;  %v1121_v45 = vpop.permute.xlu1 %1120 }
 0x47e   :  { %v1117_v13 = vsel %vm1116_vm0, %v1115_v7, %v1109_v56  ;;  %v1118_v49 = vsel %vm1116_vm0, 17, %v1110_v17  ;;  %v1123_v23 = vadd.f32 %v2929_v16, %v1121_v45  ;;  %v2938_v45 = vld [vmem:[#allocation9 + $0x15] ss:$0 sm:$0xff] }
 0x480   :  { %vm1124_vm1 = vcmp.gt.f32.partialorder %v1123_v23, %v1117_v13 }
 0x481   :  { %v1126_v19 = vsel %vm1124_vm1, 18, %v1118_v49  ;;  %v1125_v24 = vsel %vm1124_vm1, %v1123_v23, %v1117_v13  ;;  %v2941_v13 = vld [vmem:[#allocation9 + $0x16] ss:$0 sm:$0xff] }
 0x482   :  { %v1129_v30 = vpop.permute.xlu1 %1128 }
 0x483   :  { %v1131_v22 = vadd.f32 %v2932_v6, %v1129_v30 }
 0x485   :  { %vm1132_vm2 = vcmp.gt.f32.partialorder %v1131_v22, %v1125_v24 }
 0x486   :  { %v1133_v15 = vsel %vm1132_vm2, %v1131_v22, %v1125_v24  ;;  %v1134_v44 = vsel %vm1132_vm2, 19, %v1126_v19  ;;  %v1163_v19 = vadd.f32 %v2944_v50, %v1161_v52 }
 0x487   :  { %vm1140_vm3 = vcmp.gt.f32.partialorder %v1139_v62, %v1133_v15  ;;  %v1145_v7 = vpop.permute.xlu1 %1144 }
 0x488   :  { %v1141_v56 = vsel %vm1140_vm3, %v1139_v62, %v1133_v15  ;;  %v1142_v17 = vsel %vm1140_vm3, 20, %v1134_v44  ;;  %v1147_v49 = vadd.f32 %v2938_v45, %v1145_v7  ;;  %v2947_v7 = vld [vmem:[#allocation9 + $0x18] ss:$0 sm:$0xff] }
 0x48a   :  { %vm1148_vm4 = vcmp.gt.f32.partialorder %v1147_v49, %v1141_v56 }
 0x48b   :  { %v1150_v51 = vsel %vm1148_vm4, 21, %v1142_v17  ;;  %v1149_v1 = vsel %vm1148_vm4, %v1147_v49, %v1141_v56  ;;  %v2950_v49 = vld [vmem:[#allocation9 + $0x19] ss:$0 sm:$0xff] }
 0x48c   :  { %v1153_v30 = vpop.permute.xlu1 %1152 }
 0x48d   :  { %v1155_v23 = vadd.f32 %v2941_v13, %v1153_v30  ;;  %v1187_v30 = vld [vmem:[#allocation2 + $0x4] ss:$8 sm:$0xf0] }
 0x48f   :  { %vm1156_vm5 = vcmp.gt.f32.partialorder %v1155_v23, %v1149_v1 }
 0x490   :  { %v1157_v22 = vsel %vm1156_vm5, %v1155_v23, %v1149_v1  ;;  %v1158_v24 = vsel %vm1156_vm5, 22, %v1150_v51  ;;  %v1188_v23 = vor.u32 %v1187_v30, %v1186_v33  ;;  %v3224_v33 = vmov 5  }
 0x491   :  { %vm1164_vm6 = vcmp.gt.f32.partialorder %v1163_v19, %v1157_v22  ;;  %v1169_v62 = vpop.permute.xlu1 %1168 }
 0x492   :  { %v1165_v15 = vsel %vm1164_vm6, %v1163_v19, %v1157_v22  ;;  %v1166_v44 = vsel %vm1164_vm6, 23, %v1158_v24  ;;  %v1171_v17 = vadd.f32 %v2947_v7, %v1169_v62  ;;  %v3220_v22 = vmov 2  }
 0x493   :  { %v3221_v24 = vmov 3   ;;  %v3222_v62 = vmov 4  }
 0x494   :  { %vm1172_vm7 = vcmp.gt.f32.partialorder %v1171_v17, %v1165_v15 }
 0x495   :  { %v1174_v48 = vsel %vm1172_vm7, 24, %v1166_v44  ;;  %v1173_v55 = vsel %vm1172_vm7, %v1171_v17, %v1165_v15  ;;  %v3223_v44 = vmov 6  }
 0x496   :  { %v1177_v56 = vpop.permute.xlu1 %1176 }
 0x497   :  { %v1179_v52 = vadd.f32 %v2950_v49, %v1177_v56 }
 0x499   :  { %vm1180_vm8 = vcmp.gt.f32.partialorder %v1179_v52, %v1173_v55 }
 0x49a   :  { %v1181_v51 = vsel %vm1180_vm8, %v1179_v52, %v1173_v55  ;;  %v2953_v1 = vsel %vm1180_vm8, 25, %v1174_v48  ;;  %v3225_v48 = vmov 8  }
 0x49b   :  { %3219 = vst [vmem:[#allocation22_spill] sm:$0xff] %v2953_v1  ;;  %v1189_v19 = vadd.f32 %v1188_v23, %v1181_v51 }
 0x49d   :  { %1199 = vperm.xlu1 %2270, %v1189_v19   ;;  %1192 = vperm.xlu0 %2269, %v1189_v19  }
 0x4a1   :  { %2271 = vset.pattern.permute.xlu1 %v3220_v22  ;;  %2272 = vset.pattern.permute.xlu0 %v3221_v24 }
 0x4a2   :  { %1207 = vperm.xlu1 %2271, %v1189_v19   ;;  %1215 = vperm.xlu0 %2272, %v1189_v19  }
 0x4a6   :  { %2273 = vset.pattern.permute.xlu1 %v3222_v62  ;;  %2275 = vset.pattern.permute.xlu0 %v3223_v44 }
 0x4a7   :  { %1223 = vperm.xlu1 %2273, %v1189_v19   ;;  %1239 = vperm.xlu0 %2275, %v1189_v19  }
 0x4ab   :  { %2274 = vset.pattern.permute.xlu1 %v3224_v33  ;;  %2278 = vset.pattern.permute.xlu0 %v3211_v21 }
 0x4ac   :  { %1231 = vperm.xlu1 %2274, %v1189_v19   ;;  %1263 = vperm.xlu0 %2278, %v1189_v19  }
 0x4b0   :  { %2276 = vset.pattern.permute.xlu1 %v3210_v63  ;;  %2281 = vset.pattern.permute.xlu0 %v3201_v26 }
 0x4b1   :  { %1247 = vperm.xlu1 %2276, %v1189_v19   ;;  %1287 = vperm.xlu0 %2281, %v1189_v19  }
 0x4b5   :  { %2277 = vset.pattern.permute.xlu1 %v3225_v48  ;;  %2284 = vset.pattern.permute.xlu0 %v3203_v39 }
 0x4b6   :  { %1255 = vperm.xlu1 %2277, %v1189_v19   ;;  %1311 = vperm.xlu0 %2284, %v1189_v19  }
 0x4ba   :  { %2279 = vset.pattern.permute.xlu1 %v3212_v34  ;;  %2287 = vset.pattern.permute.xlu0 %v3205_v38 }
 0x4bb   :  { %1271 = vperm.xlu1 %2279, %v1189_v19   ;;  %1335 = vperm.xlu0 %2287, %v1189_v19  }
 0x4bf   :  { %2280 = vset.pattern.permute.xlu1 %v3200_v11  ;;  %2290 = vset.pattern.permute.xlu0 %v3206_v57 }
 0x4c0   :  { %1279 = vperm.xlu1 %2280, %v1189_v19   ;;  %1359 = vperm.xlu0 %2290, %v1189_v19  }
 0x4c4   :  { %2282 = vset.pattern.permute.xlu1 %v3213_v47  ;;  %2293 = vset.pattern.permute.xlu0 %v3207_v9 }
 0x4c5   :  { %1295 = vperm.xlu1 %2282, %v1189_v19   ;;  %1383 = vperm.xlu0 %2293, %v1189_v19  }
 0x4c9   :  { %2283 = vset.pattern.permute.xlu1 %v3202_v2  ;;  %2296 = vset.pattern.permute.xlu0 %v3209_v12 }
 0x4ca   :  { %1303 = vperm.xlu1 %2283, %v1189_v19  }
 0x4ce   :  { %2285 = vset.pattern.permute.xlu1 %v3214_v42 }
 0x4cf   :  { %1319 = vperm.xlu1 %2285, %v1189_v19  }
 0x4d3   :  { %2286 = vset.pattern.permute.xlu1 %v3204_v0 }
 0x4d4   :  { %1327 = vperm.xlu1 %2286, %v1189_v19  }
 0x4d8   :  { %2288 = vset.pattern.permute.xlu1 %v3193_v61 }
 0x4d9   :  { %1343 = vperm.xlu1 %2288, %v1189_v19  }
 0x4dd   :  { %2289 = vset.pattern.permute.xlu1 %v3194_v3 }
 0x4de   :  { %1351 = vperm.xlu1 %2289, %v1189_v19  }
 0x4e2   :  { %2291 = vset.pattern.permute.xlu1 %v3195_v5 }
 0x4e3   :  { %1367 = vperm.xlu1 %2291, %v1189_v19  }
 0x4e7   :  { %2292 = vset.pattern.permute.xlu1 %v3196_v27 }
 0x4e8   :  { %1375 = vperm.xlu1 %2292, %v1189_v19  }
 0x4ec   :  { %2294 = vset.pattern.permute.xlu1 %v3197_v36 }
 0x4ed   :  { %1391 = vperm.xlu1 %2294, %v1189_v19  }
 0x4f1   :  { %2295 = vset.pattern.permute.xlu1 %v3198_v37 }
 0x51c   :  { %v1200_v55 = vpop.permute.xlu1 %1199  ;;  %v1193_v15 = vpop.permute.xlu0 %1192 }
 0x51d   :  { %v1195_v17 = vadd.f32 %v2874_v54, %v1193_v15  ;;  %v1202_v30 = vadd.f32 %v2877_v46, %v1200_v55 }
 0x51f   :  { %vm1196_vm9 = vcmp.gt.f32.partialorder %v1195_v17, -1e+30 }
 0x520   :  { %v1197_v56 = vsel %vm1196_vm9, %v1195_v17, -1e+30 }
 0x521   :  { %vm1203_vm10 = vcmp.gt.f32.partialorder %v1202_v30, %v1197_v56  ;;  %v1208_v52 = vpop.permute.xlu1 %1207  ;;  %v1216_v23 = vpop.permute.xlu0 %1215 }
 0x522   :  { %v1204_v51 = vsel %vm1203_vm10, %v1202_v30, %v1197_v56  ;;  %v1210_v8 = vadd.f32 %v2880_v10, %v1208_v52  ;;  %v1205_v1 = vsel %vm1203_vm10, 1, %v3198_v37  ;;  %v1218_v19 = vadd.f32 %v2884_v41, %v1216_v23 }
 0x524   :  { %vm1211_vm11 = vcmp.gt.f32.partialorder %v1210_v8, %v1204_v51 }
 0x525   :  { %v1212_v43 = vsel %vm1211_vm11, %v1210_v8, %v1204_v51  ;;  %v1213_v12 = vsel %vm1211_vm11, 2, %v1205_v1 }
 0x526   :  { %vm1219_vm12 = vcmp.gt.f32.partialorder %v1218_v19, %v1212_v43  ;;  %v1224_v9 = vpop.permute.xlu1 %1223  ;;  %v1240_v46 = vpop.permute.xlu0 %1239 }
 0x527   :  { %v1221_v15 = vsel %vm1219_vm12, 3, %v1213_v12  ;;  %v1220_v54 = vsel %vm1219_vm12, %v1218_v19, %v1212_v43  ;;  %v1226_v55 = vadd.f32 %v2887_v20, %v1224_v9  ;;  %v1242_v52 = vadd.f32 %v2893_v35, %v1240_v46 }
 0x529   :  { %vm1227_vm13 = vcmp.gt.f32.partialorder %v1226_v55, %v1220_v54 }
 0x52a   :  { %v1229_v17 = vsel %vm1227_vm13, 4, %v1221_v15  ;;  %v1228_v56 = vsel %vm1227_vm13, %v1226_v55, %v1220_v54 }
 0x52b   :  { %v1232_v27 = vpop.permute.xlu1 %1231  ;;  %v1264_v12 = vpop.permute.xlu0 %1263 }
 0x52c   :  { %v1234_v30 = vadd.f32 %v2890_v25, %v1232_v27  ;;  %v1266_v27 = vadd.f32 %v2902_v14, %v1264_v12 }
 0x52e   :  { %vm1235_vm14 = vcmp.gt.f32.partialorder %v1234_v30, %v1228_v56 }
 0x52f   :  { %v1236_v10 = vsel %vm1235_vm14, %v1234_v30, %v1228_v56  ;;  %v1237_v23 = vsel %vm1235_vm14, 5, %v1229_v17 }
 0x530   :  { %v1248_v8 = vpop.permute.xlu1 %1247  ;;  %vm1243_vm15 = vcmp.gt.f32.partialorder %v1242_v52, %v1236_v10 }
 0x531   :  { %v1244_v1 = vsel %vm1243_vm15, %v1242_v52, %v1236_v10  ;;  %v1245_v51 = vsel %vm1243_vm15, 6, %v1237_v23  ;;  %v1250_v43 = vadd.f32 %v2896_v60, %v1248_v8  ;;  %v1288_v52 = vpop.permute.xlu0 %1287 }
 0x533   :  { %vm1251_vm0 = vcmp.gt.f32.partialorder %v1250_v43, %v1244_v1 }
 0x534   :  { %v1253_v9 = vsel %vm1251_vm0, 7, %v1245_v51  ;;  %v1252_v20 = vsel %vm1251_vm0, %v1250_v43, %v1244_v1  ;;  %v1290_v1 = vadd.f32 %v2911_v4, %v1288_v52 }
 0x535   :  { %v1256_v19 = vpop.permute.xlu1 %1255 }
 0x536   :  { %v1258_v15 = vadd.f32 %v2899_v29, %v1256_v19 }
 0x538   :  { %vm1259_vm1 = vcmp.gt.f32.partialorder %v1258_v15, %v1252_v20 }
 0x539   :  { %v1260_v54 = vsel %vm1259_vm1, %v1258_v15, %v1252_v20  ;;  %v1261_v46 = vsel %vm1259_vm1, 8, %v1253_v9 }
 0x53a   :  { %v1272_v55 = vpop.permute.xlu1 %1271  ;;  %vm1267_vm2 = vcmp.gt.f32.partialorder %v1266_v27, %v1260_v54 }
 0x53b   :  { %v1268_v17 = vsel %vm1267_vm2, %v1266_v27, %v1260_v54  ;;  %v1269_v30 = vsel %vm1267_vm2, 9, %v1261_v46  ;;  %v1274_v10 = vadd.f32 %v2905_v18, %v1272_v55  ;;  %v1312_v54 = vpop.permute.xlu0 %1311 }
 0x53d   :  { %vm1275_vm3 = vcmp.gt.f32.partialorder %v1274_v10, %v1268_v17 }
 0x53e   :  { %v1277_v56 = vsel %vm1275_vm3, 10, %v1269_v30  ;;  %v1276_v51 = vsel %vm1275_vm3, %v1274_v10, %v1268_v17  ;;  %v1314_v17 = vadd.f32 %v2920_v32, %v1312_v54 }
 0x53f   :  { %v1280_v23 = vpop.permute.xlu1 %1279 }
 0x540   :  { %v1282_v8 = vadd.f32 %v2908_v58, %v1280_v23 }
 0x542   :  { %vm1283_vm4 = vcmp.gt.f32.partialorder %v1282_v8, %v1276_v51 }
 0x543   :  { %v1284_v43 = vsel %vm1283_vm4, %v1282_v8, %v1276_v51  ;;  %v1285_v12 = vsel %vm1283_vm4, 11, %v1277_v56 }
 0x544   :  { %v1296_v20 = vpop.permute.xlu1 %1295  ;;  %vm1291_vm5 = vcmp.gt.f32.partialorder %v1290_v1, %v1284_v43 }
 0x545   :  { %v1292_v9 = vsel %vm1291_vm5, %v1290_v1, %v1284_v43  ;;  %v1293_v19 = vsel %vm1291_vm5, 12, %v1285_v12  ;;  %v1298_v15 = vadd.f32 %v2914_v40, %v1296_v20  ;;  %v1336_v43 = vpop.permute.xlu0 %1335 }
 0x547   :  { %vm1299_vm6 = vcmp.gt.f32.partialorder %v1298_v15, %v1292_v9 }
 0x548   :  { %v1301_v27 = vsel %vm1299_vm6, 13, %v1293_v19  ;;  %v1300_v30 = vsel %vm1299_vm6, %v1298_v15, %v1292_v9  ;;  %v1338_v9 = vadd.f32 %v2929_v16, %v1336_v43 }
 0x549   :  { %v1304_v46 = vpop.permute.xlu1 %1303 }
 0x54a   :  { %v1306_v55 = vadd.f32 %v2917_v31, %v1304_v46 }
 0x54c   :  { %vm1307_vm7 = vcmp.gt.f32.partialorder %v1306_v55, %v1300_v30 }
 0x54d   :  { %v1308_v10 = vsel %vm1307_vm7, %v1306_v55, %v1300_v30  ;;  %v1309_v52 = vsel %vm1307_vm7, 14, %v1301_v27 }
 0x54e   :  { %v1320_v23 = vpop.permute.xlu1 %1319  ;;  %vm1315_vm8 = vcmp.gt.f32.partialorder %v1314_v17, %v1308_v10 }
 0x54f   :  { %v1316_v56 = vsel %vm1315_vm8, %v1314_v17, %v1308_v10  ;;  %v1322_v8 = vadd.f32 %v2923_v28, %v1320_v23  ;;  %v1317_v51 = vsel %vm1315_vm8, 15, %v1309_v52  ;;  %v1360_v10 = vpop.permute.xlu0 %1359 }
 0x551   :  { %vm1323_vm9 = vcmp.gt.f32.partialorder %v1322_v8, %v1316_v56 }
 0x552   :  { %v1325_v1 = vsel %vm1323_vm9, 16, %v1317_v51  ;;  %v1324_v19 = vsel %vm1323_vm9, %v1322_v8, %v1316_v56  ;;  %v1362_v56 = vadd.f32 %v2938_v45, %v1360_v10 }
 0x553   :  { %v1328_v12 = vpop.permute.xlu1 %1327 }
 0x554   :  { %v1330_v20 = vadd.f32 %v2926_v59, %v1328_v12 }
 0x556   :  { %vm1331_vm10 = vcmp.gt.f32.partialorder %v1330_v20, %v1324_v19 }
 0x557   :  { %v1332_v15 = vsel %vm1331_vm10, %v1330_v20, %v1324_v19  ;;  %v1333_v54 = vsel %vm1331_vm10, 17, %v1325_v1 }
 0x558   :  { %v1344_v46 = vpop.permute.xlu1 %1343  ;;  %vm1339_vm11 = vcmp.gt.f32.partialorder %v1338_v9, %v1332_v15 }
 0x559   :  { %v1340_v27 = vsel %vm1339_vm11, %v1338_v9, %v1332_v15  ;;  %v1341_v55 = vsel %vm1339_vm11, 18, %v1333_v54  ;;  %v1346_v30 = vadd.f32 %v2932_v6, %v1344_v46  ;;  %v1384_v15 = vpop.permute.xlu0 %1383 }
 0x55b   :  { %vm1347_vm12 = vcmp.gt.f32.partialorder %v1346_v30, %v1340_v27 }
 0x55c   :  { %v1349_v17 = vsel %vm1347_vm12, 19, %v1341_v55  ;;  %v1348_v51 = vsel %vm1347_vm12, %v1346_v30, %v1340_v27  ;;  %v1386_v27 = vadd.f32 %v2947_v7, %v1384_v15  ;;  %v3229_v15 = vld [vmem:[#allocation18_spill] sm:$0xff] }
 0x55d   :  { %v1352_v52 = vpop.permute.xlu1 %1351 }
 0x55e   :  { %v1354_v23 = vadd.f32 %v2935_v53, %v1352_v52  ;;  %v1401_v52 = vld [vmem:[#allocation2 + $0x5] ss:$8 sm:$0xf] }
 0x560   :  { %vm1355_vm13 = vcmp.gt.f32.partialorder %v1354_v23, %v1348_v51 }
 0x561   :  { %v1356_v8 = vsel %vm1355_vm13, %v1354_v23, %v1348_v51  ;;  %v1357_v43 = vsel %vm1355_vm13, 20, %v1349_v17  ;;  %v1402_v17 = vld [vmem:[#allocation2 + $0x5] ss:$8 sm:$0xf0] }
 0x562   :  { %v1368_v12 = vpop.permute.xlu1 %1367  ;;  %vm1363_vm14 = vcmp.gt.f32.partialorder %v1362_v56, %v1356_v8 }
 0x563   :  { %v1364_v1 = vsel %vm1363_vm14, %v1362_v56, %v1356_v8  ;;  %v1365_v20 = vsel %vm1363_vm14, 21, %v1357_v43  ;;  %v1370_v19 = vadd.f32 %v2941_v13, %v1368_v12  ;;  %v1403_v43 = vor.u32 %v1402_v17, %v1401_v52  ;;  %v3231_v17 = vld [vmem:[#allocation20_spill] sm:$0xff] }
 0x565   :  { %vm1371_vm15 = vcmp.gt.f32.partialorder %v1370_v19, %v1364_v1 }
 0x566   :  { %v1373_v9 = vsel %vm1371_vm15, 22, %v1365_v20  ;;  %v1372_v55 = vsel %vm1371_vm15, %v1370_v19, %v1364_v1  ;;  %v3227_v1 = vmov 23  }
 0x567   :  { %v1376_v54 = vpop.permute.xlu1 %1375 }
 0x568   :  { %v1378_v46 = vadd.f32 %v2944_v50, %v1376_v54 }
 0x56a   :  { %vm1379_vm0 = vcmp.gt.f32.partialorder %v1378_v46, %v1372_v55 }
 0x56b   :  { %v1380_v30 = vsel %vm1379_vm0, %v1378_v46, %v1372_v55  ;;  %v1381_v10 = vsel %vm1379_vm0, 23, %v1373_v9  ;;  %v3230_v55 = vld [vmem:[#allocation19_spill] sm:$0xff] }
 0x56c   :  { %v1392_v23 = vpop.permute.xlu1 %1391  ;;  %vm1387_vm1 = vcmp.gt.f32.partialorder %v1386_v27, %v1380_v30 }
 0x56d   :  { %v1388_v51 = vsel %vm1387_vm1, %v1386_v27, %v1380_v30  ;;  %v1389_v56 = vsel %vm1387_vm1, 24, %v1381_v10  ;;  %v1394_v8 = vadd.f32 %v2950_v49, %v1392_v23 }
 0x56f   :  { %vm1395_vm2 = vcmp.gt.f32.partialorder %v1394_v8, %v1388_v51 }
 0x570   :  { %v1396_v12 = vsel %vm1395_vm2, %v1394_v8, %v1388_v51  ;;  %v3008_v20 = vsel %vm1395_vm2, 25, %v1389_v56 }
 0x571   :  { %3226 = vst [vmem:[#allocation23_spill] sm:$0xff] %v3008_v20  ;;  %v1404_v54 = vadd.f32 %v1403_v43, %v1396_v12  ;;  %v3232_v20 = vld [vmem:[#allocation21_spill] sm:$0xff] }
 0x573   :  { %1414 = vperm.xlu0 %2296, %v1404_v54   ;;  %1407 = vperm.xlu1 %2295, %v1404_v54  }
 0x577   :  { %2299 = vset.pattern.permute.xlu0 %v3222_v62  ;;  %2297 = vset.pattern.permute.xlu1 %v3220_v22 }
 0x578   :  { %1438 = vperm.xlu0 %2299, %v1404_v54   ;;  %1422 = vperm.xlu1 %2297, %v1404_v54  }
 0x57c   :  { %2302 = vset.pattern.permute.xlu0 %v3210_v63  ;;  %2298 = vset.pattern.permute.xlu1 %v3221_v24 }
 0x57d   :  { %1462 = vperm.xlu0 %2302, %v1404_v54   ;;  %1430 = vperm.xlu1 %2298, %v1404_v54  }
 0x581   :  { %2305 = vset.pattern.permute.xlu0 %v3212_v34  ;;  %2300 = vset.pattern.permute.xlu1 %v3224_v33 }
 0x582   :  { %1486 = vperm.xlu0 %2305, %v1404_v54   ;;  %1446 = vperm.xlu1 %2300, %v1404_v54  }
 0x586   :  { %2308 = vset.pattern.permute.xlu0 %v3213_v47  ;;  %2301 = vset.pattern.permute.xlu1 %v3223_v44 }
 0x587   :  { %1510 = vperm.xlu0 %2308, %v1404_v54   ;;  %1454 = vperm.xlu1 %2301, %v1404_v54  }
 0x58b   :  { %2311 = vset.pattern.permute.xlu0 %v3214_v42  ;;  %2303 = vset.pattern.permute.xlu1 %v3225_v48 }
 0x58c   :  { %1534 = vperm.xlu0 %2311, %v1404_v54   ;;  %1470 = vperm.xlu1 %2303, %v1404_v54  }
 0x590   :  { %2314 = vset.pattern.permute.xlu0 %v3193_v61  ;;  %2304 = vset.pattern.permute.xlu1 %v3211_v21 }
 0x591   :  { %1558 = vperm.xlu0 %2314, %v1404_v54   ;;  %1478 = vperm.xlu1 %2304, %v1404_v54  }
 0x595   :  { %2317 = vset.pattern.permute.xlu0 %v3195_v5  ;;  %2306 = vset.pattern.permute.xlu1 %v3200_v11 }
 0x596   :  { %1582 = vperm.xlu0 %2317, %v1404_v54   ;;  %1494 = vperm.xlu1 %2306, %v1404_v54  }
 0x59a   :  { %2320 = vset.pattern.permute.xlu0 %v3197_v36  ;;  %2307 = vset.pattern.permute.xlu1 %v3201_v26 }
 0x59b   :  { %1606 = vperm.xlu0 %2320, %v1404_v54   ;;  %1502 = vperm.xlu1 %2307, %v1404_v54  }
 0x59f   :  { %2309 = vset.pattern.permute.xlu1 %v3202_v2  ;;  %2323 = vset.pattern.permute.xlu0 %v3220_v22  ;;  %v3228_v22 = vmov 24  }
 0x5a0   :  { %1518 = vperm.xlu1 %2309, %v1404_v54  }
 0x5a4   :  { %2310 = vset.pattern.permute.xlu1 %v3203_v39 }
 0x5a5   :  { %1526 = vperm.xlu1 %2310, %v1404_v54  }
 0x5a9   :  { %2312 = vset.pattern.permute.xlu1 %v3204_v0 }
 0x5aa   :  { %1542 = vperm.xlu1 %2312, %v1404_v54  }
 0x5ae   :  { %2313 = vset.pattern.permute.xlu1 %v3205_v38 }
 0x5af   :  { %1550 = vperm.xlu1 %2313, %v1404_v54  }
 0x5b3   :  { %2315 = vset.pattern.permute.xlu1 %v3194_v3 }
 0x5b4   :  { %1566 = vperm.xlu1 %2315, %v1404_v54  }
 0x5b8   :  { %2316 = vset.pattern.permute.xlu1 %v3206_v57 }
 0x5b9   :  { %1574 = vperm.xlu1 %2316, %v1404_v54  }
 0x5bd   :  { %2318 = vset.pattern.permute.xlu1 %v3227_v1 }
 0x5be   :  { %1590 = vperm.xlu1 %2318, %v1404_v54  }
 0x5c2   :  { %2319 = vset.pattern.permute.xlu1 %v3228_v22 }
 0x5c3   :  { %1598 = vperm.xlu1 %2319, %v1404_v54  }
 0x5c7   :  { %2321 = vset.pattern.permute.xlu1 %v3198_v37 }
 0x5f2   :  { %v1415_v19 = vpop.permute.xlu0 %1414  ;;  %v1408_v9 = vpop.permute.xlu1 %1407 }
 0x5f3   :  { %v1410_v46 = vadd.f32 %v3229_v15, %v1408_v9  ;;  %v1417_v27 = vadd.f32 %v3230_v55, %v1415_v19 }
 0x5f5   :  { %vm1411_vm3 = vcmp.gt.f32.partialorder %v1410_v46, -1e+30 }
 0x5f6   :  { %v1412_v30 = vsel %vm1411_vm3, %v1410_v46, -1e+30 }
 0x5f7   :  { %vm1418_vm4 = vcmp.gt.f32.partialorder %v1417_v27, %v1412_v30  ;;  %v1423_v10 = vpop.permute.xlu1 %1422  ;;  %v1439_v8 = vpop.permute.xlu0 %1438 }
 0x5f8   :  { %v1419_v52 = vsel %vm1418_vm4, %v1417_v27, %v1412_v30  ;;  %v1425_v23 = vadd.f32 %v3231_v17, %v1423_v10  ;;  %v1420_v51 = vsel %vm1418_vm4, 1, %v3198_v37  ;;  %v1441_v9 = vadd.f32 %v3232_v20, %v1439_v8 }
 0x5fa   :  { %vm1426_vm5 = vcmp.gt.f32.partialorder %v1425_v23, %v1419_v52 }
 0x5fb   :  { %v1428_v56 = vsel %vm1426_vm5, 2, %v1420_v51  ;;  %v1427_v54 = vsel %vm1426_vm5, %v1425_v23, %v1419_v52 }
 0x5fc   :  { %v1431_v43 = vpop.permute.xlu1 %1430  ;;  %v1463_v17 = vpop.permute.xlu0 %1462 }
 0x5fd   :  { %v1433_v12 = vadd.f32 %v2884_v41, %v1431_v43  ;;  %v1465_v41 = vadd.f32 %v2896_v60, %v1463_v17 }
 0x5ff   :  { %vm1434_vm6 = vcmp.gt.f32.partialorder %v1433_v12, %v1427_v54 }
 0x600   :  { %v1435_v19 = vsel %vm1434_vm6, %v1433_v12, %v1427_v54  ;;  %v1436_v15 = vsel %vm1434_vm6, 3, %v1428_v56 }
 0x601   :  { %vm1442_vm7 = vcmp.gt.f32.partialorder %v1441_v9, %v1435_v19  ;;  %v1447_v46 = vpop.permute.xlu1 %1446  ;;  %v1487_v12 = vpop.permute.xlu0 %1486 }
 0x602   :  { %v1443_v55 = vsel %vm1442_vm7, %v1441_v9, %v1435_v19  ;;  %v1444_v27 = vsel %vm1442_vm7, 4, %v1436_v15  ;;  %v1449_v30 = vadd.f32 %v2890_v25, %v1447_v46 }
 0x604   :  { %vm1450_vm8 = vcmp.gt.f32.partialorder %v1449_v30, %v1443_v55 }
 0x605   :  { %v1452_v10 = vsel %vm1450_vm8, 5, %v1444_v27  ;;  %v1451_v22 = vsel %vm1450_vm8, %v1449_v30, %v1443_v55 }
 0x606   :  { %v1455_v51 = vpop.permute.xlu1 %1454  ;;  %v1511_v27 = vpop.permute.xlu0 %1510 }
 0x607   :  { %v1457_v37 = vadd.f32 %v2893_v35, %v1455_v51  ;;  %v1489_v35 = vadd.f32 %v2905_v18, %v1487_v12 }
 0x609   :  { %vm1458_vm9 = vcmp.gt.f32.partialorder %v1457_v37, %v1451_v22 }
 0x60a   :  { %v1459_v20 = vsel %vm1458_vm9, %v1457_v37, %v1451_v22  ;;  %v1460_v52 = vsel %vm1458_vm9, 6, %v1452_v10 }
 0x60b   :  { %vm1466_vm10 = vcmp.gt.f32.partialorder %v1465_v41, %v1459_v20  ;;  %v1471_v23 = vpop.permute.xlu1 %1470 }
 0x60c   :  { %v1467_v56 = vsel %vm1466_vm10, %v1465_v41, %v1459_v20  ;;  %v1468_v8 = vsel %vm1466_vm10, 7, %v1460_v52  ;;  %v1473_v43 = vadd.f32 %v2899_v29, %v1471_v23 }
 0x60e   :  { %vm1474_vm11 = vcmp.gt.f32.partialorder %v1473_v43, %v1467_v56 }
 0x60f   :  { %v1476_v25 = vsel %vm1474_vm11, 8, %v1468_v8  ;;  %v1475_v19 = vsel %vm1474_vm11, %v1473_v43, %v1467_v56  ;;  %v1535_v56 = vpop.permute.xlu0 %1534 }
 0x610   :  { %v1479_v54 = vpop.permute.xlu1 %1478 }
 0x611   :  { %v1481_v9 = vadd.f32 %v2902_v14, %v1479_v54  ;;  %v1513_v14 = vadd.f32 %v2914_v40, %v1511_v27 }
 0x613   :  { %vm1482_vm12 = vcmp.gt.f32.partialorder %v1481_v9, %v1475_v19 }
 0x614   :  { %v1483_v60 = vsel %vm1482_vm12, %v1481_v9, %v1475_v19  ;;  %v1484_v15 = vsel %vm1482_vm12, 9, %v1476_v25 }
 0x615   :  { %vm1490_vm13 = vcmp.gt.f32.partialorder %v1489_v35, %v1483_v60  ;;  %v1495_v37 = vpop.permute.xlu1 %1494 }
 0x616   :  { %v1491_v22 = vsel %vm1490_vm13, %v1489_v35, %v1483_v60  ;;  %v1492_v46 = vsel %vm1490_vm13, 10, %v1484_v15  ;;  %v1497_v55 = vadd.f32 %v2908_v58, %v1495_v37  ;;  %v1559_v60 = vpop.permute.xlu0 %1558 }
 0x618   :  { %vm1498_vm14 = vcmp.gt.f32.partialorder %v1497_v55, %v1491_v22 }
 0x619   :  { %v1500_v29 = vsel %vm1498_vm14, 11, %v1492_v46  ;;  %v1499_v17 = vsel %vm1498_vm14, %v1497_v55, %v1491_v22 }
 0x61a   :  { %v1503_v30 = vpop.permute.xlu1 %1502 }
 0x61b   :  { %v1505_v10 = vadd.f32 %v2911_v4, %v1503_v30  ;;  %v1537_v4 = vadd.f32 %v2923_v28, %v1535_v56 }
 0x61d   :  { %vm1506_vm15 = vcmp.gt.f32.partialorder %v1505_v10, %v1499_v17 }
 0x61e   :  { %v1507_v18 = vsel %vm1506_vm15, %v1505_v10, %v1499_v17  ;;  %v1508_v51 = vsel %vm1506_vm15, 12, %v1500_v29  ;;  %v1583_v10 = vpop.permute.xlu0 %1582 }
 0x61f   :  { %vm1514_vm0 = vcmp.gt.f32.partialorder %v1513_v14, %v1507_v18  ;;  %v1519_v41 = vpop.permute.xlu1 %1518 }
 0x620   :  { %v1515_v20 = vsel %vm1514_vm0, %v1513_v14, %v1507_v18  ;;  %v1516_v52 = vsel %vm1514_vm0, 13, %v1508_v51  ;;  %v1521_v23 = vadd.f32 %v2917_v31, %v1519_v41 }
 0x622   :  { %vm1522_vm1 = vcmp.gt.f32.partialorder %v1521_v23, %v1515_v20 }
 0x623   :  { %v1524_v58 = vsel %vm1522_vm1, 14, %v1516_v52  ;;  %v1523_v25 = vsel %vm1522_vm1, %v1521_v23, %v1515_v20 }
 0x624   :  { %v1527_v8 = vpop.permute.xlu1 %1526 }
 0x625   :  { %v1529_v43 = vadd.f32 %v2920_v32, %v1527_v8  ;;  %v1561_v32 = vadd.f32 %v2932_v6, %v1559_v60 }
 0x627   :  { %vm1530_vm2 = vcmp.gt.f32.partialorder %v1529_v43, %v1523_v25 }
 0x628   :  { %v1531_v40 = vsel %vm1530_vm2, %v1529_v43, %v1523_v25  ;;  %v1532_v12 = vsel %vm1530_vm2, 15, %v1524_v58  ;;  %v1607_v58 = vpop.permute.xlu0 %1606  ;;  %v1617_v25 = vld [vmem:[#allocation2 + $0x6] ss:$8 sm:$0xf0] }
 0x629   :  { %vm1538_vm3 = vcmp.gt.f32.partialorder %v1537_v4, %v1531_v40  ;;  %v1543_v54 = vpop.permute.xlu1 %1542 }
 0x62a   :  { %v1539_v9 = vsel %vm1538_vm3, %v1537_v4, %v1531_v40  ;;  %v1540_v19 = vsel %vm1538_vm3, 16, %v1532_v12  ;;  %v1545_v35 = vadd.f32 %v2926_v59, %v1543_v54 }
 0x62c   :  { %vm1546_vm4 = vcmp.gt.f32.partialorder %v1545_v35, %v1539_v9 }
 0x62d   :  { %v1548_v31 = vsel %vm1546_vm4, 17, %v1540_v19  ;;  %v1547_v22 = vsel %vm1546_vm4, %v1545_v35, %v1539_v9  ;;  %v3233_v19 = vmov 1  }
 0x62e   :  { %v1551_v15 = vpop.permute.xlu1 %1550 }
 0x62f   :  { %v1553_v37 = vadd.f32 %v2929_v16, %v1551_v15  ;;  %v1585_v16 = vadd.f32 %v2941_v13, %v1583_v10  ;;  %v1609_v13 = vadd.f32 %v2950_v49, %v1607_v58  ;;  %v2377_v49 = vld [vmem:[#allocation9 + $0x3] ss:$0 sm:$0xff] }
 0x631   :  { %vm1554_vm5 = vcmp.gt.f32.partialorder %v1553_v37, %v1547_v22 }
 0x632   :  { %v1555_v28 = vsel %vm1554_vm5, %v1553_v37, %v1547_v22  ;;  %v1556_v46 = vsel %vm1554_vm5, 18, %v1548_v31  ;;  %v2379_v31 = vld [vmem:[#allocation9 + $0x5] ss:$0 sm:$0xff] }
 0x633   :  { %vm1562_vm6 = vcmp.gt.f32.partialorder %v1561_v32, %v1555_v28  ;;  %v1567_v55 = vpop.permute.xlu1 %1566 }
 0x634   :  { %v1563_v29 = vsel %vm1562_vm6, %v1561_v32, %v1555_v28  ;;  %v1564_v27 = vsel %vm1562_vm6, 19, %v1556_v46  ;;  %v1569_v30 = vadd.f32 %v2935_v53, %v1567_v55  ;;  %v2380_v46 = vld [vmem:[#allocation9 + $0x6] ss:$0 sm:$0xff] }
 0x636   :  { %vm1570_vm7 = vcmp.gt.f32.partialorder %v1569_v30, %v1563_v29 }
 0x637   :  { %v1572_v59 = vsel %vm1570_vm7, 20, %v1564_v27  ;;  %v1571_v18 = vsel %vm1570_vm7, %v1569_v30, %v1563_v29 }
 0x638   :  { %v1575_v17 = vpop.permute.xlu1 %1574 }
 0x639   :  { %v1577_v14 = vadd.f32 %v2938_v45, %v1575_v17  ;;  %v1616_v45 = vld [vmem:[#allocation2 + $0x6] ss:$8 sm:$0xf] }
 0x63a   :  { %v1618_v12 = vor.u32 %v1617_v25, %v1616_v45  ;;  %v2385_v25 = vld [vmem:[#allocation9 + $0xb] ss:$0 sm:$0xff] }
 0x63b   :  { %vm1578_vm8 = vcmp.gt.f32.partialorder %v1577_v14, %v1571_v18 }
 0x63c   :  { %v1579_v6 = vsel %vm1578_vm8, %v1577_v14, %v1571_v18  ;;  %v1580_v51 = vsel %vm1578_vm8, 21, %v1572_v59  ;;  %v2381_v59 = vld [vmem:[#allocation9 + $0x7] ss:$0 sm:$0xff]  ;;  %v2382_v14 = vld [vmem:[#allocation9 + $0x8] ss:$0 sm:$0xff] }
 0x63d   :  { %vm1586_vm9 = vcmp.gt.f32.partialorder %v1585_v16, %v1579_v6  ;;  %v1591_v41 = vpop.permute.xlu1 %1590 }
 0x63e   :  { %v1587_v20 = vsel %vm1586_vm9, %v1585_v16, %v1579_v6  ;;  %v1588_v52 = vsel %vm1586_vm9, 22, %v1580_v51  ;;  %v1593_v23 = vadd.f32 %v2944_v50, %v1591_v41 }
 0x640   :  { %vm1594_vm10 = vcmp.gt.f32.partialorder %v1593_v23, %v1587_v20 }
 0x641   :  { %v1596_v53 = vsel %vm1594_vm10, 23, %v1588_v52  ;;  %v1595_v43 = vsel %vm1594_vm10, %v1593_v23, %v1587_v20  ;;  %v2383_v52 = vld [vmem:[#allocation9 + $0x9] ss:$0 sm:$0xff] }
 0x642   :  { %v1599_v56 = vpop.permute.xlu1 %1598 }
 0x643   :  { %v1601_v8 = vadd.f32 %v2947_v7, %v1599_v56 }
 0x645   :  { %vm1602_vm11 = vcmp.gt.f32.partialorder %v1601_v8, %v1595_v43 }
 0x646   :  { %v1603_v4 = vsel %vm1602_vm11, %v1601_v8, %v1595_v43  ;;  %v1604_v40 = vsel %vm1602_vm11, 24, %v1596_v53  ;;  %v2384_v8 = vld [vmem:[#allocation9 + $0xa] ss:$0 sm:$0xff] }
 0x647   :  { %vm1610_vm12 = vcmp.gt.f32.partialorder %v1609_v13, %v1603_v4 }
 0x648   :  { %v1611_v54 = vsel %vm1610_vm12, %v1609_v13, %v1603_v4  ;;  %v3063_v9 = vsel %vm1610_vm12, 25, %v1604_v40 }
 0x649   :  { %v1619_v50 = vadd.f32 %v1618_v12, %v1611_v54 }
 0x64b   :  { %1637 = vperm.xlu0 %2323, %v1619_v50   ;;  %1622 = vperm.xlu1 %2321, %v1619_v50  }
 0x64f   :  { %2326 = vset.pattern.permute.xlu0 %v3224_v33  ;;  %2322 = vset.pattern.permute.xlu1 %v3233_v19  ;;  %v2386_v19 = vld [vmem:[#allocation9 + $0xc] ss:$0 sm:$0xff] }
 0x650   :  { %1661 = vperm.xlu0 %2326, %v1619_v50   ;;  %1629 = vperm.xlu1 %2322, %v1619_v50  }
 0x654   :  { %2329 = vset.pattern.permute.xlu0 %v3225_v48  ;;  %2324 = vset.pattern.permute.xlu1 %v3221_v24  ;;  %v2378_v48 = vld [vmem:[#allocation9 + $0x4] ss:$0 sm:$0xff] }
 0x655   :  { %1685 = vperm.xlu0 %2329, %v1619_v50   ;;  %1645 = vperm.xlu1 %2324, %v1619_v50  }
 0x659   :  { %2332 = vset.pattern.permute.xlu0 %v3200_v11  ;;  %2325 = vset.pattern.permute.xlu1 %v3222_v62 }
 0x65a   :  { %1709 = vperm.xlu0 %2332, %v1619_v50   ;;  %1653 = vperm.xlu1 %2325, %v1619_v50  }
 0x65e   :  { %2335 = vset.pattern.permute.xlu0 %v3202_v2  ;;  %2327 = vset.pattern.permute.xlu1 %v3223_v44 }
 0x65f   :  { %1733 = vperm.xlu0 %2335, %v1619_v50   ;;  %1669 = vperm.xlu1 %2327, %v1619_v50  }
 0x663   :  { %2338 = vset.pattern.permute.xlu0 %v3204_v0  ;;  %2328 = vset.pattern.permute.xlu1 %v3210_v63 }
 0x664   :  { %1757 = vperm.xlu0 %2338, %v1619_v50   ;;  %1677 = vperm.xlu1 %2328, %v1619_v50  }
 0x668   :  { %2341 = vset.pattern.permute.xlu0 %v3194_v3  ;;  %2330 = vset.pattern.permute.xlu1 %v3211_v21  ;;  %v3234_v3 = vmov 24  }
 0x669   :  { %1781 = vperm.xlu0 %2341, %v1619_v50   ;;  %1693 = vperm.xlu1 %2330, %v1619_v50  }
 0x66d   :  { %2344 = vset.pattern.permute.xlu0 %v3227_v1  ;;  %2331 = vset.pattern.permute.xlu1 %v3212_v34  ;;  %v3235_v34 = vmov 0  }
 0x66e   :  { %1805 = vperm.xlu0 %2344, %v1619_v50   ;;  %1701 = vperm.xlu1 %2331, %v1619_v50  }
 0x672   :  { %2333 = vset.pattern.permute.xlu1 %v3201_v26  ;;  %2347 = vset.pattern.permute.xlu0 %v3197_v36  ;;  %v2374_v26 = vld [vmem:[#allocation9] ss:$0 sm:$0xff] }
 0x673   :  { %1717 = vperm.xlu1 %2333, %v1619_v50  }
 0x677   :  { %2334 = vset.pattern.permute.xlu1 %v3213_v47 }
 0x678   :  { %1725 = vperm.xlu1 %2334, %v1619_v50  }
 0x67c   :  { %2336 = vset.pattern.permute.xlu1 %v3203_v39 }
 0x67d   :  { %1741 = vperm.xlu1 %2336, %v1619_v50  }
 0x681   :  { %2337 = vset.pattern.permute.xlu1 %v3214_v42 }
 0x682   :  { %1749 = vperm.xlu1 %2337, %v1619_v50  }
 0x686   :  { %2339 = vset.pattern.permute.xlu1 %v3205_v38 }
 0x687   :  { %1765 = vperm.xlu1 %2339, %v1619_v50  }
 0x68b   :  { %2340 = vset.pattern.permute.xlu1 %v3193_v61  ;;  %v2375_v61 = vld [vmem:[#allocation9 + $0x1] ss:$0 sm:$0xff] }
 0x68c   :  { %1773 = vperm.xlu1 %2340, %v1619_v50  }
 0x690   :  { %2342 = vset.pattern.permute.xlu1 %v3206_v57  ;;  %v2376_v57 = vld [vmem:[#allocation9 + $0x2] ss:$0 sm:$0xff] }
 0x691   :  { %1789 = vperm.xlu1 %2342, %v1619_v50  }
 0x695   :  { %2343 = vset.pattern.permute.xlu1 %v3195_v5 }
 0x696   :  { %1797 = vperm.xlu1 %2343, %v1619_v50  }
 0x69a   :  { %2345 = vset.pattern.permute.xlu1 %v3234_v3 }
 0x69b   :  { %1813 = vperm.xlu1 %2345, %v1619_v50  }
 0x69f   :  { %2346 = vset.pattern.permute.xlu1 %v3197_v36 }
 0x6a0   :  { %1821 = vperm.xlu1 %2346, %v1619_v50  }
 0x6ca   :  { %v1623_v11 = vpop.permute.xlu1 %1622  ;;  %v1638_v39 = vpop.permute.xlu0 %1637 }
 0x6cb   :  { %v1625_v2 = vadd.f32 %v2374_v26, %v1623_v11  ;;  %v1640_v21 = vadd.f32 %v2376_v57, %v1638_v39  ;;  %v2387_v39 = vld [vmem:[#allocation9 + $0xd] ss:$0 sm:$0xff] }
 0x6cd   :  { %vm1626_vm13 = vcmp.gt.f32.partialorder %v1625_v2, -1e+30 }
 0x6ce   :  { %v1627_v63 = vsel %vm1626_vm13, %v1625_v2, -1e+30 }
 0x6cf   :  { %v1630_v0 = vpop.permute.xlu1 %1629  ;;  %v1662_v44 = vpop.permute.xlu0 %1661 }
 0x6d0   :  { %v1632_v38 = vadd.f32 %v2375_v61, %v1630_v0  ;;  %v1664_v60 = vadd.f32 %v2379_v31, %v1662_v44 }
 0x6d2   :  { %vm1633_vm14 = vcmp.gt.f32.partialorder %v1632_v38, %v1627_v63 }
 0x6d3   :  { %v1634_v5 = vsel %vm1633_vm14, %v1632_v38, %v1627_v63  ;;  %v1635_v47 = vsel %vm1633_vm14, 1, %v3235_v34  ;;  %v2388_v38 = vld [vmem:[#allocation9 + $0xe] ss:$0 sm:$0xff] }
 0x6d4   :  { %vm1641_vm15 = vcmp.gt.f32.partialorder %v1640_v21, %v1634_v5  ;;  %v1646_v42 = vpop.permute.xlu1 %1645  ;;  %v1686_v27 = vpop.permute.xlu0 %1685 }
 0x6d5   :  { %v1642_v7 = vsel %vm1641_vm15, %v1640_v21, %v1634_v5  ;;  %v1643_v36 = vsel %vm1641_vm15, 2, %v1635_v47  ;;  %v1648_v24 = vadd.f32 %v2377_v49, %v1646_v42  ;;  %v1688_v18 = vadd.f32 %v2382_v14, %v1686_v27  ;;  %v2389_v42 = vld [vmem:[#allocation9 + $0xf] ss:$0 sm:$0xff] }
 0x6d7   :  { %vm1649_vm0 = vcmp.gt.f32.partialorder %v1648_v24, %v1642_v7 }
 0x6d8   :  { %v1651_v62 = vsel %vm1649_vm0, 3, %v1643_v36  ;;  %v1650_v35 = vsel %vm1649_vm0, %v1648_v24, %v1642_v7 }
 0x6d9   :  { %v1654_v33 = vpop.permute.xlu1 %1653  ;;  %v1710_v58 = vpop.permute.xlu0 %1709 }
 0x6da   :  { %v1656_v1 = vadd.f32 %v2378_v48, %v1654_v33  ;;  %v1712_v13 = vadd.f32 %v2385_v25, %v1710_v58  ;;  %v2391_v48 = vld [vmem:[#allocation9 + $0x11] ss:$0 sm:$0xff] }
 0x6dc   :  { %vm1657_vm1 = vcmp.gt.f32.partialorder %v1656_v1, %v1650_v35 }
 0x6dd   :  { %v1658_v15 = vsel %vm1657_vm1, %v1656_v1, %v1650_v35  ;;  %v1659_v37 = vsel %vm1657_vm1, 4, %v1651_v62  ;;  %v2390_v62 = vld [vmem:[#allocation9 + $0x10] ss:$0 sm:$0xff] }
 0x6de   :  { %vm1665_vm2 = vcmp.gt.f32.partialorder %v1664_v60, %v1658_v15  ;;  %v1670_v22 = vpop.permute.xlu1 %1669  ;;  %v1734_v26 = vpop.permute.xlu0 %1733 }
 0x6df   :  { %v1666_v32 = vsel %vm1665_vm2, %v1664_v60, %v1658_v15  ;;  %v1667_v28 = vsel %vm1665_vm2, 5, %v1659_v37  ;;  %v1672_v55 = vadd.f32 %v2380_v46, %v1670_v22  ;;  %v1736_v63 = vadd.f32 %v2388_v38, %v1734_v26  ;;  %v2392_v22 = vld [vmem:[#allocation9 + $0x12] ss:$0 sm:$0xff]  ;;  %v2399_v26 = vld [vmem:[#allocation9 + $0x19] ss:$0 sm:$0xff] }
 0x6e1   :  { %vm1673_vm3 = vcmp.gt.f32.partialorder %v1672_v55, %v1666_v32 }
 0x6e2   :  { %v1675_v29 = vsel %vm1673_vm3, 6, %v1667_v28  ;;  %v1674_v17 = vsel %vm1673_vm3, %v1672_v55, %v1666_v32 }
 0x6e3   :  { %v1678_v30 = vpop.permute.xlu1 %1677  ;;  %v1758_v49 = vpop.permute.xlu0 %1757 }
 0x6e4   :  { %v1680_v10 = vadd.f32 %v2381_v59, %v1678_v30  ;;  %v1760_v1 = vadd.f32 %v2391_v48, %v1758_v49  ;;  %v2394_v59 = vld [vmem:[#allocation9 + $0x14] ss:$0 sm:$0xff] }
 0x6e6   :  { %vm1681_vm4 = vcmp.gt.f32.partialorder %v1680_v10, %v1674_v17 }
 0x6e7   :  { %v1682_v16 = vsel %vm1681_vm4, %v1680_v10, %v1674_v17  ;;  %v1683_v6 = vsel %vm1681_vm4, 7, %v1675_v29  ;;  %v2393_v29 = vld [vmem:[#allocation9 + $0x13] ss:$0 sm:$0xff] }
 0x6e8   :  { %vm1689_vm5 = vcmp.gt.f32.partialorder %v1688_v18, %v1682_v16  ;;  %v1694_v51 = vpop.permute.xlu1 %1693  ;;  %v1782_v46 = vpop.permute.xlu0 %1781 }
 0x6e9   :  { %v1690_v41 = vsel %vm1689_vm5, %v1688_v18, %v1682_v16  ;;  %v1691_v20 = vsel %vm1689_vm5, 8, %v1683_v6  ;;  %v1696_v23 = vadd.f32 %v2383_v52, %v1694_v51  ;;  %v1784_v10 = vadd.f32 %v2394_v59, %v1782_v46  ;;  %v2395_v51 = vld [vmem:[#allocation9 + $0x15] ss:$0 sm:$0xff] }
 0x6eb   :  { %vm1697_vm6 = vcmp.gt.f32.partialorder %v1696_v23, %v1690_v41 }
 0x6ec   :  { %v1699_v53 = vsel %vm1697_vm6, 9, %v1691_v20  ;;  %v1698_v45 = vsel %vm1697_vm6, %v1696_v23, %v1690_v41 }
 0x6ed   :  { %v1702_v56 = vpop.permute.xlu1 %1701  ;;  %v1806_v52 = vpop.permute.xlu0 %1805 }
 0x6ee   :  { %v1704_v43 = vadd.f32 %v2384_v8, %v1702_v56  ;;  %v2397_v8 = vld [vmem:[#allocation9 + $0x17] ss:$0 sm:$0xff] }
 0x6f0   :  { %vm1705_vm7 = vcmp.gt.f32.partialorder %v1704_v43, %v1698_v45 }
 0x6f1   :  { %v1706_v4 = vsel %vm1705_vm7, %v1704_v43, %v1698_v45  ;;  %v1707_v40 = vsel %vm1705_vm7, 10, %v1699_v53  ;;  %v2396_v53 = vld [vmem:[#allocation9 + $0x16] ss:$0 sm:$0xff]  ;;  %v1808_v43 = vadd.f32 %v2397_v8, %v1806_v52 }
 0x6f2   :  { %vm1713_vm8 = vcmp.gt.f32.partialorder %v1712_v13, %v1706_v4  ;;  %v1718_v12 = vpop.permute.xlu1 %1717 }
 0x6f3   :  { %v1714_v54 = vsel %vm1713_vm8, %v1712_v13, %v1706_v4  ;;  %v1715_v50 = vsel %vm1713_vm8, 11, %v1707_v40  ;;  %v1720_v3 = vadd.f32 %v2386_v19, %v1718_v12  ;;  %v2398_v12 = vld [vmem:[#allocation9 + $0x18] ss:$0 sm:$0xff] }
 0x6f5   :  { %vm1721_vm9 = vcmp.gt.f32.partialorder %v1720_v3, %v1714_v54 }
 0x6f6   :  { %v1723_v11 = vsel %vm1721_vm9, 12, %v1715_v50  ;;  %v1722_v61 = vsel %vm1721_vm9, %v1720_v3, %v1714_v54  ;;  %v1831_v3 = vld [vmem:[#allocation2 + $0x7] ss:$8 sm:$0xf] }
 0x6f7   :  { %v1726_v2 = vpop.permute.xlu1 %1725 }
 0x6f8   :  { %v1728_v0 = vadd.f32 %v2387_v39, %v1726_v2 }
 0x6fa   :  { %vm1729_vm10 = vcmp.gt.f32.partialorder %v1728_v0, %v1722_v61 }
 0x6fb   :  { %v1730_v57 = vsel %vm1729_vm10, %v1728_v0, %v1722_v61  ;;  %v1731_v21 = vsel %vm1729_vm10, 13, %v1723_v11  ;;  %v1832_v11 = vld [vmem:[#allocation2 + $0x7] ss:$8 sm:$0xf0] }
 0x6fc   :  { %vm1737_vm11 = vcmp.gt.f32.partialorder %v1736_v63, %v1730_v57  ;;  %v1742_v5 = vpop.permute.xlu1 %1741  ;;  %v1833_v0 = vor.u32 %v1832_v11, %v1831_v3 }
 0x6fd   :  { %v1738_v34 = vsel %vm1737_vm11, %v1736_v63, %v1730_v57  ;;  %v1739_v47 = vsel %vm1737_vm11, 14, %v1731_v21  ;;  %v1744_v7 = vadd.f32 %v2389_v42, %v1742_v5  ;;  %v3236_v21 = vld [vmem:[#allocation14_spill] sm:$0xff] }
 0x6fe   :  { %vm1853_vm10 = vcmp.eq.s32.totalorder %v3236_v21, 7  ;;  %vm1870_vm11 = vcmp.eq.s32.totalorder %v3236_v21, 6 }
 0x6ff   :  { %vm1745_vm12 = vcmp.gt.f32.partialorder %v1744_v7, %v1738_v34 }
 0x700   :  { %v1747_v36 = vsel %vm1745_vm12, 15, %v1739_v47  ;;  %v1746_v33 = vsel %vm1745_vm12, %v1744_v7, %v1738_v34 }
 0x701   :  { %v1750_v24 = vpop.permute.xlu1 %1749 }
 0x702   :  { %v1752_v44 = vadd.f32 %v2390_v62, %v1750_v24 }
 0x704   :  { %vm1753_vm13 = vcmp.gt.f32.partialorder %v1752_v44, %v1746_v33 }
 0x705   :  { %v1754_v35 = vsel %vm1753_vm13, %v1752_v44, %v1746_v33  ;;  %v1755_v31 = vsel %vm1753_vm13, 16, %v1747_v36  ;;  %vm1887_vm13 = vcmp.eq.s32.totalorder %v3236_v21, 5 }
 0x706   :  { %vm1761_vm14 = vcmp.gt.f32.partialorder %v1760_v1, %v1754_v35  ;;  %v1766_v60 = vpop.permute.xlu1 %1765 }
 0x707   :  { %v1762_v15 = vsel %vm1761_vm14, %v1760_v1, %v1754_v35  ;;  %v1763_v37 = vsel %vm1761_vm14, 17, %v1755_v31  ;;  %v1768_v32 = vadd.f32 %v2392_v22, %v1766_v60 }
 0x709   :  { %vm1769_vm15 = vcmp.gt.f32.partialorder %v1768_v32, %v1762_v15 }
 0x70a   :  { %v1771_v28 = vsel %vm1769_vm15, 18, %v1763_v37  ;;  %v1770_v30 = vsel %vm1769_vm15, %v1768_v32, %v1762_v15  ;;  %vm1904_vm15 = vcmp.eq.s32.totalorder %v3236_v21, 4 }
 0x70b   :  { %v1774_v55 = vpop.permute.xlu1 %1773 }
 0x70c   :  { %v1776_v27 = vadd.f32 %v2393_v29, %v1774_v55 }
 0x70e   :  { %vm1777_vm0 = vcmp.gt.f32.partialorder %v1776_v27, %v1770_v30 }
 0x70f   :  { %v1778_v17 = vsel %vm1777_vm0, %v1776_v27, %v1770_v30  ;;  %v1779_v14 = vsel %vm1777_vm0, 19, %v1771_v28 }
 0x710   :  { %vm1785_vm1 = vcmp.gt.f32.partialorder %v1784_v10, %v1778_v17  ;;  %v1790_v18 = vpop.permute.xlu1 %1789 }
 0x711   :  { %v1786_v16 = vsel %vm1785_vm1, %v1784_v10, %v1778_v17  ;;  %v1787_v6 = vsel %vm1785_vm1, 20, %v1779_v14  ;;  %v1792_v41 = vadd.f32 %v2395_v51, %v1790_v18  ;;  %vm1921_vm1 = vcmp.eq.s32.totalorder %v3236_v21, 3 }
 0x713   :  { %vm1793_vm2 = vcmp.gt.f32.partialorder %v1792_v41, %v1786_v16 }
 0x714   :  { %v1795_v20 = vsel %vm1793_vm2, 21, %v1787_v6  ;;  %v1794_v56 = vsel %vm1793_vm2, %v1792_v41, %v1786_v16 }
 0x715   :  { %v1798_v23 = vpop.permute.xlu1 %1797 }
 0x716   :  { %v1800_v58 = vadd.f32 %v2396_v53, %v1798_v23  ;;  %v3237_v23 = vld [vmem:[#allocation23_spill] sm:$0xff] }
 0x718   :  { %vm1801_vm3 = vcmp.gt.f32.partialorder %v1800_v58, %v1794_v56 }
 0x719   :  { %v1802_v45 = vsel %vm1801_vm3, %v1800_v58, %v1794_v56  ;;  %v1803_v25 = vsel %vm1801_vm3, 22, %v1795_v20  ;;  %vm1938_vm3 = vcmp.eq.s32.totalorder %v3236_v21, 2 }
 0x71a   :  { %vm1809_vm4 = vcmp.gt.f32.partialorder %v1808_v43, %v1802_v45  ;;  %v1814_v13 = vpop.permute.xlu1 %1813 }
 0x71b   :  { %v1810_v4 = vsel %vm1809_vm4, %v1808_v43, %v1802_v45  ;;  %v1811_v40 = vsel %vm1809_vm4, 23, %v1803_v25  ;;  %v1816_v54 = vadd.f32 %v2398_v12, %v1814_v13 }
 0x71d   :  { %vm1817_vm5 = vcmp.gt.f32.partialorder %v1816_v54, %v1810_v4 }
 0x71e   :  { %v1819_v50 = vsel %vm1817_vm5, 24, %v1811_v40  ;;  %v1818_v39 = vsel %vm1817_vm5, %v1816_v54, %v1810_v4  ;;  %v3238_v54 = vld [vmem:[#allocation22_spill] sm:$0xff]  ;;  %vm1955_vm5 = vcmp.eq.s32.totalorder %v3236_v21, 1 }
 0x71f   :  { %v1822_v19 = vpop.permute.xlu1 %1821 }
 0x720   :  { %v1824_v2 = vadd.f32 %v2399_v26, %v1822_v19 }
 0x722   :  { %vm1825_vm6 = vcmp.gt.f32.partialorder %v1824_v2, %v1818_v39 }
 0x723   :  { %v1826_v61 = vsel %vm1825_vm6, %v1824_v2, %v1818_v39  ;;  %v1827_v38 = vsel %vm1825_vm6, 25, %v1819_v50 }
 0x724   :  { %v1834_v63 = vadd.f32 %v1833_v0, %v1826_v61 }
 0x726   :  { %1835 = vmax.xlane.f32.xlu0 %v1834_v63 }
 0x7b3   :  { %v1836_v57 = vpop.xlane.xlu0 %1835 }
 0x7b4   :  { %vm1837_vm7 = vcmp.eq.f32.partialorder %v1834_v63, %v1836_v57 }
 0x7b5   :  { %v1838_v5 = vsel %vm1837_vm7, %v3236_v21, 128  ;;  %vm1972_vm7 = vcmp.eq.s32.totalorder %v3236_v21, 0 }
 0x7b6   :  { %v1840_v34 = vshra.s32 %v1838_v5, 16  ;;  %v1839_v42 = vand.u32 65535, %v1838_v5  ;;  %v3239_v5 = vld [vmem:[#allocation17_spill] sm:$0xff] }
 0x7b8   :  { %v1842_v47 = vcvt.s32.f32 %v1840_v34  ;;  %v1841_v7 = vcvt.s32.f32 %v1839_v42 }
 0x7ba   :  { %1843 = vmin.xlane.f32.xlu1 %v1842_v47 }
 0x847   :  { %v1844_v36 = vpop.xlane.xlu1 %1843 }
 0x848   :  { %vm1845_vm8 = vcmp.eq.f32.partialorder %v1842_v47, %v1844_v36  ;;  %v1850_v24 = vcvt.f32.s32 %v1844_v36 }
 0x849   :  { %v1846_v49 = vsel %vm1845_vm8, %v1841_v7, inf }
 0x84a   :  { %1847 = vmin.xlane.f32.xlu0 %v1846_v49  ;;  %v1851_v44 = vshll.u32 %v1850_v24, 16 }
 0x8d7   :  { %v1848_v62 = vpop.xlane.xlu0 %1847 }
 0x8d8   :  { %v1849_v33 = vcvt.f32.s32 %v1848_v62 }
 0x8da   :  { %v1852_v48 = vadd.s32 %v1851_v44, %v1849_v33 }
 0x8dc   :  { %vm1856_vm9 = vcmp.eq.s32.totalorder %v3236_v21, %v1852_v48  ;;  %v1854_v29 = vsel %vm1853_vm10, %v1852_v48, 0 }
 0x8dd   :  { %v1857_v1 = vsel %vm1856_vm9, %v1827_v38, 0 }
 0x8de   :  { %v1859_v35 = vshrl.u32 %v1857_v1, 16  ;;  %v1858_v31 = vand.u32 65535, %v1857_v1 }
 0x8e0   :  { %v1861_v60 = vcvt.s32.f32 %v1859_v35  ;;  %v1860_v15 = vcvt.s32.f32 %v1858_v31  ;;  %v3240_v35 = vld [vmem:[#allocation16_spill] sm:$0xff] }
 0x8e2   :  { %1864 = vadd.xlane.f32.xlu0 %v1861_v60  ;;  %1862 = vadd.xlane.f32.xlu1 %v1860_v15 }
 0x96f   :  { %v1865_v37 = vpop.xlane.xlu0 %1864  ;;  %v1863_v22 = vpop.xlane.xlu1 %1862 }
 0x970   :  { %v1867_v32 = vcvt.f32.s32 %v1865_v37  ;;  %v1866_v46 = vcvt.f32.s32 %v1863_v22 }
 0x972   :  { %v1868_v28 = vshll.u32 %v1867_v32, 16 }
 0x974   :  { %v1869_v55 = vadd.s32 %v1868_v28, %v1866_v46 }
 0x976   :  { %v1871_v27 = vsel %vm1870_vm11, %v1869_v55, %v1854_v29  ;;  %vm1873_vm12 = vcmp.eq.s32.totalorder %v3236_v21, %v1869_v55 }
 0x977   :  { %v1874_v30 = vsel %vm1873_vm12, %v3063_v9, 0 }
 0x978   :  { %v1876_v59 = vshrl.u32 %v1874_v30, 16  ;;  %v1875_v10 = vand.u32 65535, %v1874_v30 }
 0x97a   :  { %v1878_v17 = vcvt.s32.f32 %v1876_v59  ;;  %v1877_v14 = vcvt.s32.f32 %v1875_v10  ;;  %v3241_v59 = vld [vmem:[#allocation15_spill] sm:$0xff] }
 0x97c   :  { %1881 = vadd.xlane.f32.xlu0 %v1878_v17  ;;  %1879 = vadd.xlane.f32.xlu1 %v1877_v14 }
 0xa09   :  { %v1882_v18 = vpop.xlane.xlu0 %1881  ;;  %v1880_v16 = vpop.xlane.xlu1 %1879 }
 0xa0a   :  { %v1884_v6 = vcvt.f32.s32 %v1882_v18  ;;  %v1883_v41 = vcvt.f32.s32 %v1880_v16 }
 0xa0c   :  { %v1885_v51 = vshll.u32 %v1884_v6, 16 }
 0xa0e   :  { %v1886_v20 = vadd.s32 %v1885_v51, %v1883_v41 }
 0xa10   :  { %v1888_v52 = vsel %vm1887_vm13, %v1886_v20, %v1871_v27  ;;  %vm1890_vm14 = vcmp.eq.s32.totalorder %v3236_v21, %v1886_v20 }
 0xa11   :  { %v1891_v53 = vsel %vm1890_vm14, %v3237_v23, 0 }
 0xa12   :  { %v1893_v9 = vshrl.u32 %v1891_v53, 16  ;;  %v1892_v58 = vand.u32 65535, %v1891_v53 }
 0xa14   :  { %v1895_v56 = vcvt.s32.f32 %v1893_v9  ;;  %v1894_v8 = vcvt.s32.f32 %v1892_v58 }
 0xa16   :  { %1898 = vadd.xlane.f32.xlu0 %v1895_v56  ;;  %1896 = vadd.xlane.f32.xlu1 %v1894_v8 }
 0xaa3   :  { %v1899_v43 = vpop.xlane.xlu0 %1898  ;;  %v1897_v45 = vpop.xlane.xlu1 %1896 }
 0xaa4   :  { %v1901_v25 = vcvt.f32.s32 %v1899_v43  ;;  %v1900_v4 = vcvt.f32.s32 %v1897_v45 }
 0xaa6   :  { %v1902_v13 = vshll.u32 %v1901_v25, 16 }
 0xaa8   :  { %v1903_v40 = vadd.s32 %v1902_v13, %v1900_v4 }
 0xaaa   :  { %v1905_v12 = vsel %vm1904_vm15, %v1903_v40, %v1888_v52  ;;  %vm1907_vm0 = vcmp.eq.s32.totalorder %v3236_v21, %v1903_v40 }
 0xaab   :  { %v1908_v50 = vsel %vm1907_vm0, %v3238_v54, 0 }
 0xaac   :  { %v1910_v19 = vshrl.u32 %v1908_v50, 16  ;;  %v1909_v3 = vand.u32 65535, %v1908_v50 }
 0xaae   :  { %v1912_v11 = vcvt.s32.f32 %v1910_v19  ;;  %v1911_v26 = vcvt.s32.f32 %v1909_v3 }
 0xab0   :  { %1915 = vadd.xlane.f32.xlu0 %v1912_v11  ;;  %1913 = vadd.xlane.f32.xlu1 %v1911_v26 }
 0xb3d   :  { %v1916_v2 = vpop.xlane.xlu0 %1915  ;;  %v1914_v39 = vpop.xlane.xlu1 %1913 }
 0xb3e   :  { %v1918_v0 = vcvt.f32.s32 %v1916_v2  ;;  %v1917_v38 = vcvt.f32.s32 %v1914_v39 }
 0xb40   :  { %v1919_v61 = vshll.u32 %v1918_v0, 16 }
 0xb42   :  { %v1920_v63 = vadd.s32 %v1919_v61, %v1917_v38 }
 0xb44   :  { %v1922_v57 = vsel %vm1921_vm1, %v1920_v63, %v1905_v12  ;;  %vm1924_vm2 = vcmp.eq.s32.totalorder %v3236_v21, %v1920_v63 }
 0xb45   :  { %v1925_v34 = vsel %vm1924_vm2, %v3239_v5, 0 }
 0xb46   :  { %v1927_v47 = vshrl.u32 %v1925_v34, 16  ;;  %v1926_v42 = vand.u32 65535, %v1925_v34 }
 0xb48   :  { %v1929_v7 = vcvt.s32.f32 %v1927_v47  ;;  %v1928_v36 = vcvt.s32.f32 %v1926_v42 }
 0xb4a   :  { %1932 = vadd.xlane.f32.xlu0 %v1929_v7  ;;  %1930 = vadd.xlane.f32.xlu1 %v1928_v36 }
 0xbd7   :  { %v1933_v49 = vpop.xlane.xlu0 %1932  ;;  %v1931_v24 = vpop.xlane.xlu1 %1930 }
 0xbd8   :  { %v1935_v62 = vcvt.f32.s32 %v1933_v49  ;;  %v1934_v33 = vcvt.f32.s32 %v1931_v24 }
 0xbda   :  { %v1936_v44 = vshll.u32 %v1935_v62, 16 }
 0xbdc   :  { %v1937_v48 = vadd.s32 %v1936_v44, %v1934_v33 }
 0xbde   :  { %v1939_v1 = vsel %vm1938_vm3, %v1937_v48, %v1922_v57  ;;  %vm1941_vm4 = vcmp.eq.s32.totalorder %v3236_v21, %v1937_v48 }
 0xbdf   :  { %v1942_v31 = vsel %vm1941_vm4, %v3240_v35, 0 }
 0xbe0   :  { %v1944_v60 = vshrl.u32 %v1942_v31, 16  ;;  %v1943_v15 = vand.u32 65535, %v1942_v31 }
 0xbe2   :  { %v1946_v37 = vcvt.s32.f32 %v1944_v60  ;;  %v1945_v22 = vcvt.s32.f32 %v1943_v15 }
 0xbe4   :  { %1949 = vadd.xlane.f32.xlu0 %v1946_v37  ;;  %1947 = vadd.xlane.f32.xlu1 %v1945_v22 }
 0xc71   :  { %v1950_v32 = vpop.xlane.xlu0 %1949  ;;  %v1948_v28 = vpop.xlane.xlu1 %1947 }
 0xc72   :  { %v1952_v46 = vcvt.f32.s32 %v1950_v32  ;;  %v1951_v29 = vcvt.f32.s32 %v1948_v28 }
 0xc74   :  { %v1953_v55 = vshll.u32 %v1952_v46, 16 }
 0xc76   :  { %v1954_v27 = vadd.s32 %v1953_v55, %v1951_v29 }
 0xc78   :  { %vm1958_vm6 = vcmp.eq.s32.totalorder %v3236_v21, %v1954_v27  ;;  %v1956_v30 = vsel %vm1955_vm5, %v1954_v27, %v1939_v1 }
 0xc79   :  { %v1959_v10 = vsel %vm1958_vm6, %v3241_v59, 0 }
 0xc7a   :  { %v1961_v17 = vshrl.u32 %v1959_v10, 16  ;;  %v1960_v14 = vand.u32 65535, %v1959_v10 }
 0xc7c   :  { %v1963_v18 = vcvt.s32.f32 %v1961_v17  ;;  %v1962_v16 = vcvt.s32.f32 %v1960_v14 }
 0xc7e   :  { %1966 = vadd.xlane.f32.xlu0 %v1963_v18  ;;  %1964 = vadd.xlane.f32.xlu1 %v1962_v16 }
 0xd0b   :  { %v1967_v6 = vpop.xlane.xlu0 %1966  ;;  %v1965_v51 = vpop.xlane.xlu1 %1964 }
 0xd0c   :  { %v1969_v41 = vcvt.f32.s32 %v1967_v6  ;;  %v1968_v52 = vcvt.f32.s32 %v1965_v51 }
 0xd0e   :  { %v1970_v20 = vshll.u32 %v1969_v41, 16 }
 0xd10   :  { %v1971_v23 = vadd.s32 %v1970_v20, %v1968_v52 }
 0xd12   :  { %v1973_v53 = vsel %vm1972_vm7, %v1971_v23, %v1956_v30 }
 0xd13   :  { %1974 = vst [vmem:[#allocation10] sm:$0xff] %v1973_v53 }
 0xd14   :  { %2477 = shalt.err (!%p2474_p0)
}
 0xd15   :  { %s2478_s25 = scalar_lea.hbm %s3128_s3, 128 }
 0xd16   :  { %p2479_p1 = scmp.ne.s32.totalorder %s3128_s3, %s2478_s25  ;;  %p2482_p2 = scmp.lt.u32.totalorder %s2478_s25, %s3128_s3 }
 0xd18   :  { %p2484_p3 = pnand %p2482_p2, %p2479_p1 }
 0xd1a   :  { %2487 = shalt.err (!%p2484_p3)
}
 0xd1b   :  { %1984 = dma.vmem_to_hbm [thread:$0]  %s1982_s21, 128, %s3128_s3, [#allocation6]  }
 0xd1c   :  { %2492 = dma.done.wait [#allocation6], 128  }
 0xd1d   :  { %2493 = vsyncadd [#allocation6], 4294967168 }
 0xd1e   :  { %1988 = vsyncpa [#allocation5], 1 }
 0xd1f   :  { %1989 = vsyncpa [#allocation8], 1 }
 0xd20   :  { %1990 = vsyncpa [#allocation6], 1 }

</bundles_post_ra>
